<compile_context>
chip_gen: v5e
topology: v5e:2x2
jax: 0.10.0
libtpu: 0.0.40
codegen_flags: <defaults>
</compile_context>

<pallas_src>
import jax
import jax.numpy as jnp
from jax import lax
from jax.experimental import pallas as pl
from jax.experimental.pallas import tpu as pltpu


VMEM_LIMIT_BYTES = 48 * 1024 * 1024      # explicit scoped limit (v7x-safe)
BLOCK_VMEM_BUDGET = 32 * 1024 * 1024     # budget used when picking the batch block


# ----------------------------------------------------------------------------
# Fused Bottleneck block (conv1x1+bn+relu -> conv3x3+bn+relu -> conv1x1+bn
#                         -> +residual -> relu), stride=1, downsample=None.
# ----------------------------------------------------------------------------
def bottleneck_kernel(x_ref, w1_ref, w2_ref, w3_ref, b1_ref, b2_ref, b3_ref,
                      out_ref, pad_ref):
    nb, H, W, cin = x_ref.shape
    p = w1_ref.shape[1]
    cout = w3_ref.shape[1]
    m = nb * H * W

    x_flat = x_ref[...].reshape(m, cin)                  # f32, kept for residual
    x_bf16 = x_flat.astype(jnp.bfloat16)

    # conv1 (1x1, BN scale folded into w1) + bias + relu
    y1 = jnp.dot(x_bf16, w1_ref[...], preferred_element_type=jnp.float32)
    y1 = jnp.maximum(y1 + b1_ref[...], 0.0)

    # conv2 (3x3, pad=1): padded scratch + single im2col matmul (K = 9*P).
    # Only the 1-wide border is zeroed each step; the interior is fully
    # overwritten, so no full-scratch clear is needed.
    zrow = jnp.zeros((nb, 1, W + 2, p), jnp.float32)
    zcol = jnp.zeros((nb, H + 2, 1, p), jnp.float32)
    pad_ref[:, 0:1, :, :] = zrow
    pad_ref[:, H + 1:H + 2, :, :] = zrow
    pad_ref[:, :, 0:1, :] = zcol
    pad_ref[:, :, W + 1:W + 2, :] = zcol
    pad_ref[:, 1:H + 1, 1:W + 1, :] = y1.reshape(nb, H, W, p)

    taps = []
    for dy in range(3):
        for dx in range(3):
            taps.append(pad_ref[:, dy:dy + H, dx:dx + W, :].reshape(m, p))
    patches = jnp.concatenate(taps, axis=-1).astype(jnp.bfloat16)   # (m, 9P)

    y2 = jnp.dot(patches, w2_ref[...], preferred_element_type=jnp.float32)
    y2 = jnp.maximum(y2 + b2_ref[...], 0.0)

    # conv3 (1x1) + bias + residual (f32) + relu
    y3 = jnp.dot(y2.astype(jnp.bfloat16), w3_ref[...],
                 preferred_element_type=jnp.float32) + b3_ref[...]
    out = jnp.maximum(y3 + x_flat, 0.0)
    out_ref[...] = out.reshape(nb, H, W, cout).astype(out_ref.dtype)


def _vmem_bytes_estimate(nb, H, W, cin, p, cout):
    m = nb * H * W
    io = 2 * m * cin * 4 + 2 * m * cout * 4                 # double-buffered x / out
    wts = 2 * 2 * (cin * p + 9 * p * p + p * cout)          # bf16 weights, dbl-buffered
    scratch = nb * (H + 2) * (W + 2) * p * 4                # f32 padded scratch
    interm = m * (9 * p) * (4 + 2) + 2 * m * p * 4 + m * cout * 4 + m * cin * 2
    return io + wts + scratch + interm


def _pick_block_batch(n, H, W, cin, p, cout, budget_bytes):
    divisors = [d for d in range(1, n + 1) if n % d == 0]
    preferred = [d for d in divisors if d * H * W >= 256]
    nb = preferred[0] if preferred else divisors[-1]
    while nb > 1 and _vmem_bytes_estimate(nb, H, W, cin, p, cout) > budget_bytes:
        smaller = [d for d in divisors if d < nb]
        nb = smaller[-1] if smaller else 1
    return nb


def bottleneck_forward_nhwc(x_nhwc, kp, *, block_batch=None):
    """x_nhwc: (N, H, W, Cin) f32. kp: BN-folded bf16 weights + f32 biases."""
    N, H, W, cin = x_nhwc.shape
    w1, w2, w3 = kp["w1"], kp["w2"], kp["w3"]
    p = w1.shape[1]
    cout = w3.shape[1]
    assert cin == cout, "downsample=None requires inplanes == planes * 4"
    assert w2.shape == (9 * p, p)

    nb = block_batch or _pick_block_batch(N, H, W, cin, p, cout, BLOCK_VMEM_BUDGET)
    assert N % nb == 0

    full2 = lambda n: (0, 0)
    return pl.pallas_call(
        bottleneck_kernel,
        out_shape=jax.ShapeDtypeStruct((N, H, W, cout), x_nhwc.dtype),
        grid_spec=pltpu.PrefetchScalarGridSpec(
            num_scalar_prefetch=0,
            grid=(N // nb,),
            in_specs=[
                pl.BlockSpec((nb, H, W, cin), lambda n: (n, 0, 0, 0)),  # x
                pl.BlockSpec((cin, p), full2),                          # w1 (bf16)
                pl.BlockSpec((9 * p, p), full2),                        # w2 (im2col)
                pl.BlockSpec((p, cout), full2),                         # w3 (bf16)
                pl.BlockSpec((1, p), full2),                            # b1
                pl.BlockSpec((1, p), full2),                            # b2
                pl.BlockSpec((1, cout), full2),                         # b3
            ],
            out_specs=pl.BlockSpec((nb, H, W, cout), lambda n: (n, 0, 0, 0)),
            scratch_shapes=[pltpu.VMEM((nb, H + 2, W + 2, p), jnp.float32)],
        ),
        compiler_params=pltpu.CompilerParams(
            dimension_semantics=("parallel",),        # batch axis -> both v7x TCs
            vmem_limit_bytes=VMEM_LIMIT_BYTES,
        ),
    )(x_nhwc, w1, w2, w3, kp["b1"], kp["b2"], kp["b3"])


def init_bottleneck_params(key, inplanes, planes):
    """PyTorch-layout conv weights (OIHW, bias=False) + inference-mode BN stats."""
    cout = planes * 4
    ks = jax.random.split(key, 6)
    w1 = 0.1 * jax.random.normal(ks[0], (planes, inplanes, 1, 1), jnp.float32)
    w2 = 0.1 * jax.random.normal(ks[1], (planes, planes, 3, 3), jnp.float32)
    w3 = 0.1 * jax.random.normal(ks[2], (cout, planes, 1, 1), jnp.float32)

    def bn(k, c):
        k1, k2, k3, k4 = jax.random.split(k, 4)
        gamma = 1.0 + 0.1 * jax.random.normal(k1, (c,), jnp.float32)
        beta = 0.1 * jax.random.normal(k2, (c,), jnp.float32)
        mean = 0.1 * jax.random.normal(k3, (c,), jnp.float32)
        var = jnp.abs(jax.random.normal(k4, (c,), jnp.float32)) + 0.5
        scale = gamma / jnp.sqrt(var + 1e-5)
        bias = beta - mean * scale
        return scale, bias

    s1, b1 = bn(ks[3], planes)
    s2, b2 = bn(ks[4], planes)
    s3, b3 = bn(ks[5], cout)
    return dict(w1=w1, w2=w2, w3=w3, s1=s1, b1=b1, s2=s2, b2=b2, s3=s3, b3=b3)


def prepare_bottleneck_kernel_params(raw):
    """Fold BN scales into the conv weights (f32), switch to matmul layouts,
    cast weights to bf16 for the MXU. Biases stay f32."""
    w1 = jnp.transpose(raw["w1"][:, :, 0, 0], (1, 0)) * raw["s1"][None, :]   # (Cin, P)
    w3 = jnp.transpose(raw["w3"][:, :, 0, 0], (1, 0)) * raw["s3"][None, :]   # (P, Cout)
    w2 = jnp.transpose(raw["w2"], (2, 3, 1, 0)) * raw["s2"][None, None, None, :]
    p = raw["w2"].shape[0]
    w2 = w2.reshape(9 * p, p)                        # rows ordered [dy, dx, cin]
    return dict(
        w1=w1.astype(jnp.bfloat16),
        w2=w2.astype(jnp.bfloat16),
        w3=w3.astype(jnp.bfloat16),
        b1=raw["b1"].reshape(1, -1),
        b2=raw["b2"].reshape(1, -1),
        b3=raw["b3"].reshape(1, -1),
    )


def bottleneck_reference_nhwc(x, raw):
    """Plain-JAX f32 NHWC reference mirroring the PyTorch Bottleneck.forward."""
    hp = jax.lax.Precision.HIGHEST

    def conv(v, w_oihw, padding):
        w = jnp.transpose(w_oihw, (2, 3, 1, 0))      # HWIO
        return lax.conv_general_dilated(
            v, w, window_strides=(1, 1), padding=padding,
            dimension_numbers=("NHWC", "HWIO", "NHWC"), precision=hp)

    def bn(v, s, b):
        return v * s.reshape(1, 1, 1, -1) + b.reshape(1, 1, 1, -1)

    out = jax.nn.relu(bn(conv(x, raw["w1"], "VALID"), raw["s1"], raw["b1"]))
    out = jax.nn.relu(bn(conv(out, raw["w2"], ((1, 1), (1, 1))), raw["s2"], raw["b2"]))
    out = bn(conv(out, raw["w3"], "VALID"), raw["s3"], raw["b3"])
    return jax.nn.relu(out + x)


# ----------------------------------------------------------------------------
# Fused VAE / MLP head of `generator`:
#   zmean, zlog -> zsigma = sqrt(exp(zlog)) -> z = zmean + zsigma*eps
#   -> fc1+leaky -> fc2+leaky -> fc3+tanh -> p
# (eps is a deterministic jax.random normal passed in; torch.randn equivalent.)
# ----------------------------------------------------------------------------
def vae_head_kernel(feat_ref, wzm_ref, bzm_ref, wzl_ref, bzl_ref, eps_ref,
                    w1_ref, b1_ref, w2_ref, b2_ref, w3_ref, b3_ref,
                    p_ref, zmean_ref, zsigma_ref, z_ref):
    f32 = jnp.float32
    x = feat_ref[...]
    zmean = jnp.dot(x, wzm_ref[...], preferred_element_type=f32) + bzm_ref[...]
    zlog = jnp.dot(x, wzl_ref[...], preferred_element_type=f32) + bzl_ref[...]
    zsigma = jnp.sqrt(jnp.exp(zlog))
    z = zmean + zsigma * eps_ref[...]

    def leaky(v):
        return jnp.where(v > 0, v, 0.01 * v)

    h = leaky(jnp.dot(z, w1_ref[...], preferred_element_type=f32) + b1_ref[...])
    h = leaky(jnp.dot(h, w2_ref[...], preferred_element_type=f32) + b2_ref[...])
    h = jnp.tanh(jnp.dot(h, w3_ref[...], preferred_element_type=f32) + b3_ref[...])

    p_ref[...] = h
    zmean_ref[...] = zmean
    zsigma_ref[...] = zsigma
    z_ref[...] = z


def vae_head_forward(feat, eps, hparams, num_points):
    N = feat.shape[0]
    p_flat, zmean, zsigma, z = pl.pallas_call(
        vae_head_kernel,
        out_shape=(
            jax.ShapeDtypeStruct((N, 3 * num_points), jnp.float32),
            jax.ShapeDtypeStruct((N, 100), jnp.float32),
            jax.ShapeDtypeStruct((N, 100), jnp.float32),
            jax.ShapeDtypeStruct((N, 100), jnp.float32),
        ),
    )(feat, hparams["wzm"], hparams["bzm"], hparams["wzl"], hparams["bzl"], eps,
      hparams["w1"], hparams["b1"], hparams["w2"], hparams["b2"],
      hparams["w3"], hparams["b3"])
    return p_flat.reshape(N, 3, num_points), zmean, zsigma, z


def init_head_params(key, num_points):
    ks = jax.random.split(key, 5)

    def lin(k, fan_in, fan_out, scale):
        kw, kb = jax.random.split(k)
        w = scale * jax.random.normal(kw, (fan_in, fan_out), jnp.float32)
        b = 0.01 * jax.random.normal(kb, (1, fan_out), jnp.float32)
        return w, b

    wzm, bzm = lin(ks[0], 1000, 100, 0.02)
    wzl, bzl = lin(ks[1], 1000, 100, 0.02)
    w1, b1 = lin(ks[2], 100, 512, 0.05)
    w2, b2 = lin(ks[3], 512, 1024, 0.05)
    w3, b3 = lin(ks[4], 1024, 3 * num_points, 0.05)
    return dict(wzm=wzm, bzm=bzm, wzl=wzl, bzl=bzl,
                w1=w1, b1=b1, w2=w2, b2=b2, w3=w3, b3=b3)


def vae_head_reference(feat, eps, hparams, num_points):
    hp = jax.lax.Precision.HIGHEST
    dot = lambda a, b: jnp.dot(a, b, precision=hp)
    zmean = dot(feat, hparams["wzm"]) + hparams["bzm"]
    zlog = dot(feat, hparams["wzl"]) + hparams["bzl"]
    zsigma = jnp.sqrt(jnp.exp(zlog))
    z = zmean + zsigma * eps
    leaky = lambda v: jnp.where(v > 0, v, 0.01 * v)
    h = leaky(dot(z, hparams["w1"]) + hparams["b1"])
    h = leaky(dot(h, hparams["w2"]) + hparams["b2"])
    h = jnp.tanh(dot(h, hparams["w3"]) + hparams["b3"])
    return h.reshape(feat.shape[0], 3, num_points), zmean, zsigma, z


if __name__ == "__main__":
    key = jax.random.PRNGKey(0)
    k_x, k_b, k_f, k_h, k_e = jax.random.split(key, 5)

    # --- fused Bottleneck block (stride=1, no downsample) ----------------------
    N, planes, H, W = 2, 32, 16, 16
    inplanes = planes * 4                     # residual needs inplanes == planes*4
    x_nhwc = jax.random.normal(k_x, (N, H, W, inplanes), jnp.float32)
    raw = init_bottleneck_params(k_b, inplanes, planes)
    kparams = prepare_bottleneck_kernel_params(raw)

    out = jax.block_until_ready(bottleneck_forward_nhwc(x_nhwc, kparams))
    ref = bottleneck_reference_nhwc(x_nhwc, raw)
    assert out.shape == ref.shape == (N, H, W, inplanes)
    if not bool(jnp.allclose(out, ref, atol=5e-2, rtol=5e-2)):
        raise AssertionError("bottleneck Pallas kernel mismatch vs f32 reference")

    # --- fused VAE / MLP head of `generator` -----------------------------------
    num_points = 64
    feat = jax.random.normal(k_f, (N, 1000), jnp.float32)
    hparams = init_head_params(k_h, num_points)
    eps = jax.random.normal(k_e, (N, 100), jnp.float32)

    p, zmean, zsigma, z = vae_head_forward(feat, eps, hparams, num_points)
    p = jax.block_until_ready(p)
    p_r, zm_r, zs_r, z_r = vae_head_reference(feat, eps, hparams, num_points)
    assert p.shape == (N, 3, num_points)
    for a, b in ((p, p_r), (zmean, zm_r), (zsigma, zs_r), (z, z_r)):
        if not bool(jnp.allclose(a, b, atol=1e-2, rtol=1e-2)):
            raise AssertionError("VAE head Pallas kernel mismatch vs reference")

    print("KERNEL_OK")
</pallas_src>

<mosaic_0001>
module attributes {stable_mosaic.version = 11 : i64} {
  func.func @bottleneck_kernel(%arg0: i32, %arg1: memref<1x16x16x128xf32, #tpu.memory_space<vmem>>, %arg2: memref<128x32xbf16, #tpu.memory_space<vmem>>, %arg3: memref<288x32xbf16, #tpu.memory_space<vmem>>, %arg4: memref<32x128xbf16, #tpu.memory_space<vmem>>, %arg5: memref<1x32xf32, #tpu.memory_space<vmem>>, %arg6: memref<1x32xf32, #tpu.memory_space<vmem>>, %arg7: memref<1x128xf32, #tpu.memory_space<vmem>>, %arg8: memref<1x16x16x128xf32, #tpu.memory_space<vmem>>, %arg9: memref<1x18x18x32xf32, #tpu.memory_space<vmem>>) attributes {dimension_semantics = [#tpu.dimension_semantics<parallel>], iteration_bounds = array<i64: 2>, scalar_prefetch = 0 : i64, scratch_operands = 1 : i64, tpu.core_type = #tpu.core_type<tc>, window_params = [{transform_indices = @transform_0, window_bounds = array<i64: 1, 16, 16, 128>}, {pipeline_mode = #tpu.pipeline_mode<synchronous>, transform_indices = @transform_1, window_bounds = array<i64: 128, 32>}, {pipeline_mode = #tpu.pipeline_mode<synchronous>, transform_indices = @transform_2, window_bounds = array<i64: 288, 32>}, {pipeline_mode = #tpu.pipeline_mode<synchronous>, transform_indices = @transform_3, window_bounds = array<i64: 32, 128>}, {pipeline_mode = #tpu.pipeline_mode<synchronous>, transform_indices = @transform_4, window_bounds = array<i64: 1, 32>}, {pipeline_mode = #tpu.pipeline_mode<synchronous>, transform_indices = @transform_5, window_bounds = array<i64: 1, 32>}, {pipeline_mode = #tpu.pipeline_mode<synchronous>, transform_indices = @transform_6, window_bounds = array<i64: 1, 128>}, {transform_indices = @transform_7, window_bounds = array<i64: 1, 16, 16, 128>}]} {
    %c0 = arith.constant 0 : index
    %c0_0 = arith.constant 0 : index
    %c0_1 = arith.constant 0 : index
    %c0_2 = arith.constant 0 : index
    %0 = vector.load %arg1[%c0, %c0_0, %c0_1, %c0_2] : memref<1x16x16x128xf32, #tpu.memory_space<vmem>>, vector<1x16x16x128xf32>
    %1 = vector.shape_cast %0 : vector<1x16x16x128xf32> to vector<256x128xf32>
    %2 = arith.truncf %1 : vector<256x128xf32> to vector<256x128xbf16>
    %c0_3 = arith.constant 0 : index
    %c0_4 = arith.constant 0 : index
    %3 = vector.load %arg2[%c0_3, %c0_4] : memref<128x32xbf16, #tpu.memory_space<vmem>>, vector<128x32xbf16>
    %cst = arith.constant dense<0.000000e+00> : vector<256x32xf32>
    %4 = tpu.matmul %2, %3, %cst {dimension_numbers = #tpu.dot_dimension_numbers<[1], [0], [0], [1], [0, 0, 1, 1], [], []>} : vector<256x128xbf16>, vector<128x32xbf16>, vector<256x32xf32> -> vector<256x32xf32>
    %c0_5 = arith.constant 0 : index
    %c0_6 = arith.constant 0 : index
    %5 = vector.load %arg5[%c0_5, %c0_6] : memref<1x32xf32, #tpu.memory_space<vmem>>, vector<1x32xf32>
    %6 = vector.broadcast %5 : vector<1x32xf32> to vector<256x32xf32>
    %7 = arith.addf %4, %6 : vector<256x32xf32>
    %cst_7 = arith.constant 0.000000e+00 : f32
    %8 = vector.broadcast %cst_7 : f32 to vector<256x32xf32>
    %9 = arith.maximumf %7, %8 : vector<256x32xf32>
    %cst_8 = arith.constant 0.000000e+00 : f32
    %10 = vector.broadcast %cst_8 : f32 to vector<1x1x18x32xf32>
    %cst_9 = arith.constant 0.000000e+00 : f32
    %11 = vector.broadcast %cst_9 : f32 to vector<1x18x1x32xf32>
    %c0_10 = arith.constant 0 : index
    %c0_11 = arith.constant 0 : index
    %c0_12 = arith.constant 0 : index
    %c0_13 = arith.constant 0 : index
    %12 = vector.load %arg9[%c0_10, %c0_11, %c0_12, %c0_13] : memref<1x18x18x32xf32, #tpu.memory_space<vmem>>, vector<1x1x18x32xf32>
    tpu.vector_store %arg9[%c0_10, %c0_11, %c0_12, %c0_13], %10 {strides = array<i32>} : memref<1x18x18x32xf32, #tpu.memory_space<vmem>>, vector<1x1x18x32xf32>,
    %c0_14 = arith.constant 0 : index
    %c17 = arith.constant 17 : index
    %c0_15 = arith.constant 0 : index
    %c0_16 = arith.constant 0 : index
    %13 = vector.load %arg9[%c0_14, %c17, %c0_15, %c0_16] : memref<1x18x18x32xf32, #tpu.memory_space<vmem>>, vector<1x1x18x32xf32>
    tpu.vector_store %arg9[%c0_14, %c17, %c0_15, %c0_16], %10 {strides = array<i32>} : memref<1x18x18x32xf32, #tpu.memory_space<vmem>>, vector<1x1x18x32xf32>,
    %c0_17 = arith.constant 0 : index
    %c0_18 = arith.constant 0 : index
    %c0_19 = arith.constant 0 : index
    %c0_20 = arith.constant 0 : index
    %14 = vector.load %arg9[%c0_17, %c0_18, %c0_19, %c0_20] : memref<1x18x18x32xf32, #tpu.memory_space<vmem>>, vector<1x18x1x32xf32>
    tpu.vector_store %arg9[%c0_17, %c0_18, %c0_19, %c0_20], %11 {strides = array<i32>} : memref<1x18x18x32xf32, #tpu.memory_space<vmem>>, vector<1x18x1x32xf32>,
    %c0_21 = arith.constant 0 : index
    %c0_22 = arith.constant 0 : index
    %c17_23 = arith.constant 17 : index
    %c0_24 = arith.constant 0 : index
    %15 = vector.load %arg9[%c0_21, %c0_22, %c17_23, %c0_24] : memref<1x18x18x32xf32, #tpu.memory_space<vmem>>, vector<1x18x1x32xf32>
    tpu.vector_store %arg9[%c0_21, %c0_22, %c17_23, %c0_24], %11 {strides = array<i32>} : memref<1x18x18x32xf32, #tpu.memory_space<vmem>>, vector<1x18x1x32xf32>,
    %16 = vector.shape_cast %9 : vector<256x32xf32> to vector<1x16x16x32xf32>
    %c0_25 = arith.constant 0 : index
    %c1 = arith.constant 1 : index
    %c1_26 = arith.constant 1 : index
    %c0_27 = arith.constant 0 : index
    %17 = vector.load %arg9[%c0_25, %c1, %c1_26, %c0_27] : memref<1x18x18x32xf32, #tpu.memory_space<vmem>>, vector<1x16x16x32xf32>
    tpu.vector_store %arg9[%c0_25, %c1, %c1_26, %c0_27], %16 {strides = array<i32>} : memref<1x18x18x32xf32, #tpu.memory_space<vmem>>, vector<1x16x16x32xf32>,
    %c0_28 = arith.constant 0 : index
    %c0_29 = arith.constant 0 : index
    %c0_30 = arith.constant 0 : index
    %c0_31 = arith.constant 0 : index
    %18 = vector.load %arg9[%c0_28, %c0_29, %c0_30, %c0_31] : memref<1x18x18x32xf32, #tpu.memory_space<vmem>>, vector<1x16x16x32xf32>
    %19 = vector.shape_cast %18 : vector<1x16x16x32xf32> to vector<256x32xf32>
    %c0_32 = arith.constant 0 : index
    %c0_33 = arith.constant 0 : index
    %c1_34 = arith.constant 1 : index
    %c0_35 = arith.constant 0 : index
    %20 = vector.load %arg9[%c0_32, %c0_33, %c1_34, %c0_35] : memref<1x18x18x32xf32, #tpu.memory_space<vmem>>, vector<1x16x16x32xf32>
    %21 = vector.shape_cast %20 : vector<1x16x16x32xf32> to vector<256x32xf32>
    %c0_36 = arith.constant 0 : index
    %c0_37 = arith.constant 0 : index
    %c2 = arith.constant 2 : index
    %c0_38 = arith.constant 0 : index
    %22 = vector.load %arg9[%c0_36, %c0_37, %c2, %c0_38] : memref<1x18x18x32xf32, #tpu.memory_space<vmem>>, vector<1x16x16x32xf32>
    %23 = vector.shape_cast %22 : vector<1x16x16x32xf32> to vector<256x32xf32>
    %c0_39 = arith.constant 0 : index
    %c1_40 = arith.constant 1 : index
    %c0_41 = arith.constant 0 : index
    %c0_42 = arith.constant 0 : index
    %24 = vector.load %arg9[%c0_39, %c1_40, %c0_41, %c0_42] : memref<1x18x18x32xf32, #tpu.memory_space<vmem>>, vector<1x16x16x32xf32>
    %25 = vector.shape_cast %24 : vector<1x16x16x32xf32> to vector<256x32xf32>
    %c0_43 = arith.constant 0 : index
    %c1_44 = arith.constant 1 : index
    %c1_45 = arith.constant 1 : index
    %c0_46 = arith.constant 0 : index
    %26 = vector.load %arg9[%c0_43, %c1_44, %c1_45, %c0_46] : memref<1x18x18x32xf32, #tpu.memory_space<vmem>>, vector<1x16x16x32xf32>
    %27 = vector.shape_cast %26 : vector<1x16x16x32xf32> to vector<256x32xf32>
    %c0_47 = arith.constant 0 : index
    %c1_48 = arith.constant 1 : index
    %c2_49 = arith.constant 2 : index
    %c0_50 = arith.constant 0 : index
    %28 = vector.load %arg9[%c0_47, %c1_48, %c2_49, %c0_50] : memref<1x18x18x32xf32, #tpu.memory_space<vmem>>, vector<1x16x16x32xf32>
    %29 = vector.shape_cast %28 : vector<1x16x16x32xf32> to vector<256x32xf32>
    %c0_51 = arith.constant 0 : index
    %c2_52 = arith.constant 2 : index
    %c0_53 = arith.constant 0 : index
    %c0_54 = arith.constant 0 : index
    %30 = vector.load %arg9[%c0_51, %c2_52, %c0_53, %c0_54] : memref<1x18x18x32xf32, #tpu.memory_space<vmem>>, vector<1x16x16x32xf32>
    %31 = vector.shape_cast %30 : vector<1x16x16x32xf32> to vector<256x32xf32>
    %c0_55 = arith.constant 0 : index
    %c2_56 = arith.constant 2 : index
    %c1_57 = arith.constant 1 : index
    %c0_58 = arith.constant 0 : index
    %32 = vector.load %arg9[%c0_55, %c2_56, %c1_57, %c0_58] : memref<1x18x18x32xf32, #tpu.memory_space<vmem>>, vector<1x16x16x32xf32>
    %33 = vector.shape_cast %32 : vector<1x16x16x32xf32> to vector<256x32xf32>
    %c0_59 = arith.constant 0 : index
    %c2_60 = arith.constant 2 : index
    %c2_61 = arith.constant 2 : index
    %c0_62 = arith.constant 0 : index
    %34 = vector.load %arg9[%c0_59, %c2_60, %c2_61, %c0_62] : memref<1x18x18x32xf32, #tpu.memory_space<vmem>>, vector<1x16x16x32xf32>
    %35 = vector.shape_cast %34 : vector<1x16x16x32xf32> to vector<256x32xf32>
    %36 = tpu.concatenate %19, %21, %23, %25, %27, %29, %31, %33, %35 in 1 : vector<256x32xf32>, vector<256x32xf32>, vector<256x32xf32>, vector<256x32xf32>, vector<256x32xf32>, vector<256x32xf32>, vector<256x32xf32>, vector<256x32xf32>, vector<256x32xf32> -> vector<256x288xf32>
    %37 = arith.truncf %36 : vector<256x288xf32> to vector<256x288xbf16>
    %c0_63 = arith.constant 0 : index
    %c0_64 = arith.constant 0 : index
    %38 = vector.load %arg3[%c0_63, %c0_64] : memref<288x32xbf16, #tpu.memory_space<vmem>>, vector<288x32xbf16>
    %cst_65 = arith.constant dense<0.000000e+00> : vector<256x32xf32>
    %39 = tpu.matmul %37, %38, %cst_65 {dimension_numbers = #tpu.dot_dimension_numbers<[1], [0], [0], [1], [0, 0, 1, 1], [], []>} : vector<256x288xbf16>, vector<288x32xbf16>, vector<256x32xf32> -> vector<256x32xf32>
    %c0_66 = arith.constant 0 : index
    %c0_67 = arith.constant 0 : index
    %40 = vector.load %arg6[%c0_66, %c0_67] : memref<1x32xf32, #tpu.memory_space<vmem>>, vector<1x32xf32>
    %41 = vector.broadcast %40 : vector<1x32xf32> to vector<256x32xf32>
    %42 = arith.addf %39, %41 : vector<256x32xf32>
    %cst_68 = arith.constant 0.000000e+00 : f32
    %43 = vector.broadcast %cst_68 : f32 to vector<256x32xf32>
    %44 = arith.maximumf %42, %43 : vector<256x32xf32>
    %45 = arith.truncf %44 : vector<256x32xf32> to vector<256x32xbf16>
    %c0_69 = arith.constant 0 : index
    %c0_70 = arith.constant 0 : index
    %46 = vector.load %arg4[%c0_69, %c0_70] : memref<32x128xbf16, #tpu.memory_space<vmem>>, vector<32x128xbf16>
    %cst_71 = arith.constant dense<0.000000e+00> : vector<256x128xf32>
    %47 = tpu.matmul %45, %46, %cst_71 {dimension_numbers = #tpu.dot_dimension_numbers<[1], [0], [0], [1], [0, 0, 1, 1], [], []>} : vector<256x32xbf16>, vector<32x128xbf16>, vector<256x128xf32> -> vector<256x128xf32>
    %c0_72 = arith.constant 0 : index
    %c0_73 = arith.constant 0 : index
    %48 = vector.load %arg7[%c0_72, %c0_73] : memref<1x128xf32, #tpu.memory_space<vmem>>, vector<1x128xf32>
    %49 = vector.broadcast %48 : vector<1x128xf32> to vector<256x128xf32>
    %50 = arith.addf %47, %49 : vector<256x128xf32>
    %51 = arith.addf %50, %1 : vector<256x128xf32>
    %cst_74 = arith.constant 0.000000e+00 : f32
    %52 = vector.broadcast %cst_74 : f32 to vector<256x128xf32>
    %53 = arith.maximumf %51, %52 : vector<256x128xf32>
    %54 = vector.shape_cast %53 : vector<256x128xf32> to vector<1x16x16x128xf32>
    %c0_75 = arith.constant 0 : index
    %c0_76 = arith.constant 0 : index
    %c0_77 = arith.constant 0 : index
    %c0_78 = arith.constant 0 : index
    %55 = vector.load %arg8[%c0_75, %c0_76, %c0_77, %c0_78] : memref<1x16x16x128xf32, #tpu.memory_space<vmem>>, vector<1x16x16x128xf32>
    tpu.vector_store %arg8[%c0_75, %c0_76, %c0_77, %c0_78], %54 {strides = array<i32>} : memref<1x16x16x128xf32, #tpu.memory_space<vmem>>, vector<1x16x16x128xf32>,
    return
  }
  func.func @transform_0(%arg0: i32) -> (i32, i32, i32, i32) {
    %c0_i32 = arith.constant 0 : i32
    %c0_i32_0 = arith.constant 0 : i32
    %c0_i32_1 = arith.constant 0 : i32
    %c0_i32_2 = arith.constant 0 : i32
    return %arg0, %c0_i32, %c0_i32_0, %c0_i32_1 : i32, i32, i32, i32
  }
  func.func @transform_1(%arg0: i32) -> (i32, i32) {
    %c0_i32 = arith.constant 0 : i32
    %c0_i32_0 = arith.constant 0 : i32
    %c0_i32_1 = arith.constant 0 : i32
    return %c0_i32, %c0_i32_0 : i32, i32
  }
  func.func @transform_2(%arg0: i32) -> (i32, i32) {
    %c0_i32 = arith.constant 0 : i32
    %c0_i32_0 = arith.constant 0 : i32
    %c0_i32_1 = arith.constant 0 : i32
    return %c0_i32, %c0_i32_0 : i32, i32
  }
  func.func @transform_3(%arg0: i32) -> (i32, i32) {
    %c0_i32 = arith.constant 0 : i32
    %c0_i32_0 = arith.constant 0 : i32
    %c0_i32_1 = arith.constant 0 : i32
    return %c0_i32, %c0_i32_0 : i32, i32
  }
  func.func @transform_4(%arg0: i32) -> (i32, i32) {
    %c0_i32 = arith.constant 0 : i32
    %c0_i32_0 = arith.constant 0 : i32
    %c0_i32_1 = arith.constant 0 : i32
    return %c0_i32, %c0_i32_0 : i32, i32
  }
  func.func @transform_5(%arg0: i32) -> (i32, i32) {
    %c0_i32 = arith.constant 0 : i32
    %c0_i32_0 = arith.constant 0 : i32
    %c0_i32_1 = arith.constant 0 : i32
    return %c0_i32, %c0_i32_0 : i32, i32
  }
  func.func @transform_6(%arg0: i32) -> (i32, i32) {
    %c0_i32 = arith.constant 0 : i32
    %c0_i32_0 = arith.constant 0 : i32
    %c0_i32_1 = arith.constant 0 : i32
    return %c0_i32, %c0_i32_0 : i32, i32
  }
  func.func @transform_7(%arg0: i32) -> (i32, i32, i32, i32) {
    %c0_i32 = arith.constant 0 : i32
    %c0_i32_0 = arith.constant 0 : i32
    %c0_i32_1 = arith.constant 0 : i32
    %c0_i32_2 = arith.constant 0 : i32
    return %arg0, %c0_i32, %c0_i32_0, %c0_i32_1 : i32, i32, i32, i32
  }
}

</mosaic_0001>

<bundles_post_ra>
// kernel: tpu_custom_call.1
= control target key start
LH: loop header
LB: loop body
LE: loop exit
PB: predicated region body
PF: predicated region fallthrough
CT: control target
= control target key end

     0   :  { %12 = vsyncpa [#allocation4], 0  ;;  %s4988_s0 = inlined_call_operand.hbm [shape: f32[2,16,16,128], index: 0, kind: input, shape index: {}]   ;;  %s4989_s1 = inlined_call_operand.vmem [shape: bf16[128,32], index: 1, kind: input, shape index: {}]   ;;  %s4990_s2 = inlined_call_operand.vmem [shape: bf16[288,32], index: 2, kind: input, shape index: {}]   ;;  %s4991_s3 = inlined_call_operand.vmem [shape: bf16[32,128], index: 3, kind: input, shape index: {}]   ;;  %s4992_s4 = inlined_call_operand.vmem [shape: f32[1,32], index: 4, kind: input, shape index: {}]   ;;  %s4993_s5 = inlined_call_operand.vmem [shape: f32[1,32], index: 5, kind: input, shape index: {}]   ;;  %s4994_s6 = inlined_call_operand.vmem [shape: f32[1,128], index: 6, kind: input, shape index: {}]   ;;  %s4995_s7 = inlined_call_operand.hbm [shape: f32[2,16,16,128], index: 7, kind: output, shape index: {}]  }
   0x1   :  { %14 = vsyncpa [#allocation4 + $0x1], 0 }
   0x2   :  { %15 = vsyncpa [#allocation5], 0 }
   0x3   :  { %17 = vsyncpa [#allocation5 + $0x1], 0  ;;  %s3691_s24 = smov 0   ;;  %s3693_s25 = smov 0  }
   0x4   :  { %s3695_s26 = smov 0   ;;  %s3697_s27 = smov 0  }
   0x5 LB: > { %s3712_s28 = sadd.s32 4294967295, %s3641_s27   ;;  %s2768_s29 = sadd.s32 4294967294, %s3641_s27   ;;  %s3641_s27 = sphi %s3697_s27, %s5007_s27   ;;  %s3637_s26 = sphi %s3695_s26, %s5006_s26   ;;  %s3633_s25 = sphi %s3693_s25, %s5005_s25   ;;  %s3629_s24 = sphi %s3691_s24, %s5004_s24  }
   0x6   : > { %s3716_s30 = sadd.s32 1, %s3641_s27   ;;  %s30_s8 = sadd.s32 1, %s3637_s26 }
   0x7   : > { %s27_s9 = ssub.s32 %s3641_s27, %s3716_s30  ;;  %p37_p0 = scmp.ne.s32.totalorder %s3637_s26, %s3633_s25 }
   0x8   : > { %p28_p1 = scmp.eq.s32.totalorder %s27_s9, 0  ;;  %p38_p2 = scmp.eq.s32.totalorder %s3641_s27, 0 }
   0x9   : > { %p43_p3 = scmp.ne.s32.totalorder %s3633_s25, %s3629_s24  ;;  %p44_p4 = scmp.eq.s32.totalorder %s3712_s28, 0 }
   0xa   : > { %s3728_s10 = scalar_select %p28_p1, %s3637_s26, %s30_s8  }
   0xb   : > { %p3730_p5 = por %p38_p2, %p37_p0  ;;  %p3734_p6 = por %p44_p4, %p43_p3 }
   0xc   : > { %4996 = sst [smem:[#allocation9_spill]] %s3728_s10  ;;  %p193_p7 = scmp.eq.s32.totalorder %s3712_s28, 1 }
   0xd   : > { %p199_p8 = scmp.eq.s32.totalorder %s2768_s29, 1  ;;  %p2986_p10 = scmp.lt.s32.totalorder %s3641_s27, 2 }
   0xe   : > { %p3741_p11 = por %p193_p7, %p37_p0  ;;  %s237_s15 = sand.u32 1, %s3637_s26  }
   0xf   : > { %p3745_p12 = por %p199_p8, %p43_p3  ;;  %s2926_s16 = sshll.u32 %s3641_s27, 8 }
  0x10   : > { %s2771_s17 = sshll.u32 %s237_s15, 8  ;;  %s246_s20 = scalar_lea.hbm %s4988_s0, %s2926_s16 }
  0x11   : > { %s247_s21 = sshll.u32 %s246_s20, 4  ;;  %s241_s22 = scalar_lea.vmem [#allocation3], %s2771_s17  ;;  %s248_s21 = int_to_ptr.hbm [resolvable:$true] %s247_s21 }
  0x12   : > { %s249_s23 = sshll.u32 %s241_s22, 4  ;;  %p3756_p13 = pnand %p2986_p10, %p3730_p5  ;;  %s250_s23 = int_to_ptr.vmem [resolvable:$true] %s249_s23 }
  0x13   : > { %p2774_p0 = scmp.ge.s32.totalorder %s3641_s27, 1  ;;  %p257_p1 = scmp.lt.s32.totalorder %s3641_s27, 3 }
  0x14   : > { %s238_s8 = scalar_lea.sflag [#allocation4], %s237_s15  ;;  %s3545_s9 = sshra.s32 %s248_s21, 4  ;;  %s3546_s9 = int_to_ptr.hbm [resolvable:$true] %s3545_s9 }
  0x15   : > { %s3547_s10 = scalar_lea.hbm %s3546_s9, 256  ;;  %p3549_p3 = pneg %p3756_p13 }
  0x16   : > { %p3548_p2 = scmp.ne.s32.totalorder %s3546_s9, %s3547_s10  ;;  %s3552_s11 = scalar_lea.hbm %s4988_s0, 512 }
  0x17   : > { %p3553_p5 = scmp.lt.s32.totalorder %s3546_s9, %s4988_s0  ;;  %p3554_p8 = scmp.lt.s32.totalorder %s3552_s11, %s3547_s10 }
  0x18   : > { %p3550_p4 = pnand %p3549_p3, %p3548_p2 }
  0x19   : > { %p3555_p10 = por %p3554_p8, %p3553_p5 }
  0x1a   : > { %p3551_p7 = pneg %p3550_p4 }
  0x1c   : > { %p3556_p9 = pnand %p3555_p10, %p3551_p7 }
  0x1e   : > { %3559 = shalt.err (!%p3556_p9)
}
  0x1f   : > { %s3643_s15 = smov 128   ;;  %s3644_s20 = smov 8  }
  0x20   : > { %2981 = dma.hbm_to_vmem [thread:$0]  (!%p3756_p13), %s248_s21, 4096, %s250_s23, %s238_s8, %s3643_s15, %s3643_s15, %s3644_s20  }
  0x21   : > { %p258_p2 = pnand %p2774_p0, %p257_p1 }
  0x22   : > { %s3777_s22 = sand.u32 (!%p258_p2), 1, %s3633_s25  }
  0x23   : > { %261 = sbr.rel (%p258_p2) target bundleno = 902 (0x386), region = 48  ;;  %s2775_s10 = sshll.u32 (!%p258_p2), %s3777_s22, 8 }
  0x24   : > { %s264_s9 = scalar_lea.sflag (!%p258_p2), [#allocation4], %s3777_s22  ;;  %s3783_s16 = scalar_lea.vmem (!%p258_p2), [#allocation3], %s2775_s10 }
  0x28   : > { %3620 = dma.done.wait (%p3734_p6), %s264_s9, 4096  }
  0x29   : > { %3622 = vsyncadd (%p3734_p6), %s264_s9, 4294963200  ;;  %v2934_v0 = vld [vmem:[%s4989_s1 + $0x38] sm:$0xff]  ;;  %v2933_v1 = vld [vmem:[%s4989_s1 + $0x30] sm:$0xff]  ;;  %vm537_vm0 = vcmask 261120   ;;  %vm540_vm1 = vcmask 254976   ;;  %v3645_v29 = vmov 0.0  }
  0x2a   : > { %416 = vmatpush.bf16.msra.mxu0 %v2934_v0  ;;  %2956 = vmatpush.bf16.msra.mxu1 %v2934_v0  ;;  %v2932_v2 = vld [vmem:[%s4989_s1 + $0x28] sm:$0xff]  ;;  %v2931_v3 = vld [vmem:[%s4989_s1 + $0x20] sm:$0xff]  ;;  %v2930_v4 = vld [vmem:[%s4989_s1 + $0x18] sm:$0xff]  ;;  %538 = vst.msk [vmem:[#allocation2] sm:$0xff] %vm537_vm0, %v3645_v29  ;;  %vm546_vm2 = vcmask 253952   ;;  %s3646_s12 = smov 64  }
  0x2b   : > { %2957 = vmatpush.bf16.msra.mxu2 %v2934_v0  ;;  %v2929_v5 = vld [vmem:[%s4989_s1 + $0x10] sm:$0xff]  ;;  %v2928_v6 = vld [vmem:[%s4989_s1 + $0x8] sm:$0xff]  ;;  %v2927_v7 = vld [vmem:[%s4989_s1] sm:$0xff]  ;;  %539 = vst.msk [vmem:[#allocation2 + $0x8] sm:$0xff] %vm537_vm0, %v3645_v29  ;;  %s3647_s9 = smov 32   ;;  %s3648_s21 = smov 96  }
  0x2c   : > { %v300_v8 = vld [vmem:[%s3783_s16] sm:$0xff]  ;;  %v301_v9 = vld [vmem:[%s3783_s16 + $0x8] sm:$0xff]  ;;  %v302_v11 = vld [vmem:[%s3783_s16 + $0x10] sm:$0xff]  ;;  %541 = vst.msk [vmem:[#allocation2 + $0x10] sm:$0x3] %vm540_vm1, %v3645_v29  ;;  %vm1705_vm3 = vcmask 523264  }
  0x2d   : > { %v332_v10 = vpack.c.bf16 %v301_v9, %v300_v8  ;;  %v303_v12 = vld [vmem:[%s3783_s16 + $0x18] sm:$0xff]  ;;  %v304_v14 = vld [vmem:[%s3783_s16 + $0x20] sm:$0xff]  ;;  %v305_v15 = vld [vmem:[%s3783_s16 + $0x28] sm:$0xff]  ;;  %565 = vst.msk [vmem:[#allocation2 + $0x11] sm:$0x1] %vm546_vm2, %v3645_v29  ;;  %vm1738_vm4 = vcmask 785408  }
  0x2e   : > { %417 = vmatpush.bf16.msra.mxu0 %v2933_v1  ;;  %2958 = vmatpush.bf16.msra.mxu1 %v2933_v1  ;;  %v333_v13 = vpack.c.bf16 %v303_v12, %v302_v11  ;;  %v334_v16 = vpack.c.bf16 %v305_v15, %v304_v14  ;;  %v306_v17 = vld [vmem:[%s3783_s16 + $0x30] sm:$0xff]  ;;  %v307_v18 = vld [vmem:[%s3783_s16 + $0x38] sm:$0xff]  ;;  %v308_v20 = vld [vmem:[%s3783_s16 + $0x40] sm:$0xff]  ;;  %547 = vst.msk [vmem:[#allocation2] sm:$0x1] %vm546_vm2, %v3645_v29  ;;  %s4829_s17 = scalar_lea.vmem [#allocation6], %s2775_s10 }
  0x2f   : > { %2959 = vmatpush.bf16.msra.mxu2 %v2933_v1  ;;  %v335_v19 = vpack.c.bf16 %v307_v18, %v306_v17  ;;  %v309_v21 = vld [vmem:[%s3783_s16 + $0x48] sm:$0xff]  ;;  %v310_v23 = vld [vmem:[%s3783_s16 + $0x50] sm:$0xff]  ;;  %v311_v24 = vld [vmem:[%s3783_s16 + $0x58] sm:$0xff]  ;;  %543 = vst.msk [vmem:[#allocation2 + $0x198] sm:$0xff] %vm537_vm0, %v3645_v29  ;;  %s2955_s18 = sshll.u32 %s3712_s28, 8  ;;  %s2692_s23 = sshll.u32 %s4829_s17, 4  ;;  %s2693_s23 = int_to_ptr.vmem [resolvable:$true] %s2692_s23 }
  0x30   : > { %v336_v22 = vpack.c.bf16 %v309_v21, %v308_v20  ;;  %v337_v25 = vpack.c.bf16 %v311_v24, %v310_v23  ;;  %v312_v26 = vld [vmem:[%s3783_s16 + $0x60] sm:$0xff]  ;;  %v313_v27 = vld [vmem:[%s3783_s16 + $0x68] sm:$0xff]  ;;  %544 = vst.msk [vmem:[#allocation2 + $0x1a0] sm:$0xff] %vm537_vm0, %v3645_v29  ;;  %v314_v30 = vld [vmem:[%s3783_s16 + $0x70] sm:$0xff]  ;;  %s2691_s20 = scalar_lea.hbm %s4995_s7, %s2955_s18  ;;  %s3595_s10 = scalar_lea.hbm %s4995_s7, 512 }
  0x31   : > { %v338_v28 = vpack.c.bf16 %v313_v27, %v312_v26  ;;  %545 = vst.msk [vmem:[#allocation2 + $0x1a8] sm:$0x3] %vm540_vm1, %v3645_v29  ;;  %v315_v31 = vld [vmem:[%s3783_s16 + $0x78] sm:$0xff]  ;;  %v320_v37 = vld [vmem:[%s3783_s16 + $0xa0] sm:$0xff]  ;;  %v321_v38 = vld [vmem:[%s3783_s16 + $0xa8] sm:$0xff]  ;;  %s2694_s29 = sshll.u32 %s2691_s20, 4  ;;  %s2695_s29 = int_to_ptr.hbm [resolvable:$true] %s2694_s29 }
  0x32   : > { %418 = vmatpush.bf16.msra.mxu0 %v2932_v2  ;;  %2960 = vmatpush.bf16.msra.mxu1 %v2932_v2  ;;  %v680_v32 = vld [vmem:[#allocation2 + $0x2] sm:$0xff]  ;;  %548 = vst.msk [vmem:[#allocation2 + $0x18] sm:$0x1] %vm546_vm2, %v3645_v29  ;;  %v339_v35 = vpack.c.bf16 %v315_v31, %v314_v30  ;;  %v342_v39 = vpack.c.bf16 %v321_v38, %v320_v37  ;;  %v316_v40 = vld [vmem:[%s3783_s16 + $0x80] sm:$0xff]  ;;  %v317_v41 = vld [vmem:[%s3783_s16 + $0x88] sm:$0xff]  ;;  %s3589_s28 = sshra.s32 %s2695_s29, 4  ;;  %s3590_s28 = int_to_ptr.hbm [resolvable:$true] %s3589_s28 }
  0x33   : > { %2961 = vmatpush.bf16.msra.mxu2 %v2932_v2  ;;  %v2952_v33 = vld [vmem:[%s4990_s2 + $0x88] sm:$0xff]  ;;  %549 = vst.msk [vmem:[#allocation2 + $0x30] sm:$0x1] %vm546_vm2, %v3645_v29  ;;  %v3888_v42 = vld [vmem:[%s4992_s4] ss:$0 sm:$0xff]  ;;  %v340_v43 = vpack.c.bf16 %v317_v41, %v316_v40  ;;  %v324_v56 = vld [vmem:[%s3783_s16 + $0xc0] sm:$0xff]  ;;  %p3596_p0 = scmp.lt.s32.totalorder %s3590_s28, %s4995_s7 }
  0x34   : > { %v681_v34 = vld [vmem:[#allocation2 + $0xa] sm:$0xff]  ;;  %550 = vst.msk [vmem:[#allocation2 + $0x48] sm:$0x1] %vm546_vm2, %v3645_v29  ;;  %2972 = vmatpush.bf16.msra.mxu3 %v2952_v33  ;;  %v322_v46 = vld [vmem:[%s3783_s16 + $0xb0] sm:$0xff]  ;;  %v325_v57 = vld [vmem:[%s3783_s16 + $0xc8] sm:$0xff] }
  0x35   : > { %v3048_v36 = vpack.i.bf16 %v681_v34, %v680_v32  ;;  %551 = vst.msk [vmem:[#allocation2 + $0x60] sm:$0x1] %vm546_vm2, %v3645_v29  ;;  %v323_v47 = vld [vmem:[%s3783_s16 + $0xb8] sm:$0xff]  ;;  %v2951_v49 = vld [vmem:[%s4990_s2 + $0x80] sm:$0xff]  ;;  %v344_v58 = vpack.c.bf16 %v325_v57, %v324_v56  ;;  %v329_v30 = vld [vmem:[%s3783_s16 + $0xe8] sm:$0xff] }
  0x36   : > { %419 = vmatpush.bf16.msra.mxu0 %v2931_v3  ;;  %2962 = vmatpush.bf16.msra.mxu1 %v2931_v3  ;;  %552 = vst.msk [vmem:[#allocation2 + $0x78] sm:$0x1] %vm546_vm2, %v3645_v29  ;;  %v343_v48 = vpack.c.bf16 %v323_v47, %v322_v46  ;;  %v318_v54 = vld [vmem:[%s3783_s16 + $0x90] sm:$0xff]  ;;  %v319_v55 = vld [vmem:[%s3783_s16 + $0x98] sm:$0xff] }
  0x37   : > { %2963 = vmatpush.bf16.msra.mxu2 %v2931_v3  ;;  %3049 = vrot.lane.b32.xlu2 %v3048_v36, %s3646_s12  ;;  %553 = vst.msk [vmem:[#allocation2 + $0x90] sm:$0x1] %vm546_vm2, %v3645_v29  ;;  %v341_v59 = vpack.c.bf16 %v319_v55, %v318_v54  ;;  %v326_v8 = vld [vmem:[%s3783_s16 + $0xd0] sm:$0xff]  ;;  %v327_v9 = vld [vmem:[%s3783_s16 + $0xd8] sm:$0xff] }
  0x38   : > { %554 = vst.msk [vmem:[#allocation2 + $0xa8] sm:$0x1] %vm546_vm2, %v3645_v29  ;;  %2973 = vmatpush.bf16.msra.mxu3 %v2951_v49  ;;  %v648_v24 = vld [vmem:[#allocation2 + $0x1] sm:$0xff] }
  0x39   : > { %555 = vst.msk [vmem:[#allocation2 + $0xc0] sm:$0x1] %vm546_vm2, %v3645_v29 }
  0x3a   : > { %420 = vmatpush.bf16.msra.mxu0 %v2930_v4  ;;  %2964 = vmatpush.bf16.msra.mxu1 %v2930_v4  ;;  %556 = vst.msk [vmem:[#allocation2 + $0xd8] sm:$0x1] %vm546_vm2, %v3645_v29 }
  0x3b   : > { %2965 = vmatpush.bf16.msra.mxu2 %v2930_v4  ;;  %557 = vst.msk [vmem:[#allocation2 + $0xf0] sm:$0x1] %vm546_vm2, %v3645_v29 }
  0x3c   : > { %558 = vst.msk [vmem:[#allocation2 + $0x108] sm:$0x1] %vm546_vm2, %v3645_v29 }
  0x3d   : > { %559 = vst.msk [vmem:[#allocation2 + $0x120] sm:$0x1] %vm546_vm2, %v3645_v29 }
  0x3e   : > { %421 = vmatpush.bf16.msra.mxu0 %v2929_v5  ;;  %2966 = vmatpush.bf16.msra.mxu1 %v2929_v5  ;;  %560 = vst.msk [vmem:[#allocation2 + $0x138] sm:$0x1] %vm546_vm2, %v3645_v29 }
  0x3f   : > { %2967 = vmatpush.bf16.msra.mxu2 %v2929_v5  ;;  %561 = vst.msk [vmem:[#allocation2 + $0x150] sm:$0x1] %vm546_vm2, %v3645_v29 }
  0x40   : > { %562 = vst.msk [vmem:[#allocation2 + $0x168] sm:$0x1] %vm546_vm2, %v3645_v29 }
  0x41   : > { %563 = vst.msk [vmem:[#allocation2 + $0x180] sm:$0x1] %vm546_vm2, %v3645_v29 }
  0x42   : > { %422 = vmatpush.bf16.msra.mxu0 %v2928_v6  ;;  %2968 = vmatpush.bf16.msra.mxu1 %v2928_v6  ;;  %566 = vst.msk [vmem:[#allocation2 + $0x29] sm:$0x1] %vm546_vm2, %v3645_v29 }
  0x43   : > { %2969 = vmatpush.bf16.msra.mxu2 %v2928_v6  ;;  %567 = vst.msk [vmem:[#allocation2 + $0x41] sm:$0x1] %vm546_vm2, %v3645_v29 }
  0x44   : > { %568 = vst.msk [vmem:[#allocation2 + $0x59] sm:$0x1] %vm546_vm2, %v3645_v29 }
  0x45   : > { %569 = vst.msk [vmem:[#allocation2 + $0x71] sm:$0x1] %vm546_vm2, %v3645_v29 }
  0x46   : > { %423 = vmatpush.bf16.msra.mxu0 %v2927_v7  ;;  %2970 = vmatpush.bf16.msra.mxu1 %v2927_v7  ;;  %570 = vst.msk [vmem:[#allocation2 + $0x89] sm:$0x1] %vm546_vm2, %v3645_v29 }
  0x47   : > { %2971 = vmatpush.bf16.msra.mxu2 %v2927_v7  ;;  %571 = vst.msk [vmem:[#allocation2 + $0xa1] sm:$0x1] %vm546_vm2, %v3645_v29 }
  0x48   : > { %572 = vst.msk [vmem:[#allocation2 + $0xb9] sm:$0x1] %vm546_vm2, %v3645_v29 }
  0x49   : > { %424 = vmatmul.bf16.vlgmr.msra.gmra.mxu0 %v332_v10  ;;  %474 = vmatmul.bf16.vlgmr.msra.gmra.mxu1 %v342_v39  ;;  %573 = vst.msk [vmem:[#allocation2 + $0xd1] sm:$0x1] %vm546_vm2, %v3645_v29  ;;  %v345_v10 = vpack.c.bf16 %v327_v9, %v326_v8 }
  0x4a   : > { %2295 = vmatpush.bf16.msrb.mxu0 %v2952_v33  ;;  %574 = vst.msk [vmem:[#allocation2 + $0xe9] sm:$0x1] %vm546_vm2, %v3645_v29  ;;  %484 = vmatmul.bf16.vlgmr.msra.gmra.mxu2 %v344_v58 }
  0x4b   : > { %575 = vst.msk [vmem:[#allocation2 + $0x101] sm:$0x1] %vm546_vm2, %v3645_v29 }
  0x4c   : > { %576 = vst.msk [vmem:[#allocation2 + $0x119] sm:$0x1] %vm546_vm2, %v3645_v29 }
  0x4d   : > { %577 = vst.msk [vmem:[#allocation2 + $0x131] sm:$0x1] %vm546_vm2, %v3645_v29 }
  0x4e   : > { %2296 = vmatpush.bf16.msrb.mxu0 %v2951_v49  ;;  %578 = vst.msk [vmem:[#allocation2 + $0x149] sm:$0x1] %vm546_vm2, %v3645_v29 }
  0x4f   : > { %579 = vst.msk [vmem:[#allocation2 + $0x161] sm:$0x1] %vm546_vm2, %v3645_v29 }
  0x50   : > { %580 = vst.msk [vmem:[#allocation2 + $0x179] sm:$0x1] %vm546_vm2, %v3645_v29 }
  0x51   : > { %581 = vst.msk [vmem:[#allocation2 + $0x191] sm:$0x1] %vm546_vm2, %v3645_v29 }
  0x52   : > { %564 = vst.msk [vmem:[#allocation2 + $0x198] sm:$0x1] %vm546_vm2, %v3645_v29 }
  0x53   : > { %582 = vst.msk [vmem:[#allocation2 + $0x1a9] sm:$0x1] %vm546_vm2, %v3645_v29  ;;  %v328_v29 = vld [vmem:[%s3783_s16 + $0xe0] sm:$0xff] }
  0x54   : > { %v346_v32 = vpack.c.bf16 %v329_v30, %v328_v29  ;;  %v2947_v30 = vld [vmem:[%s4990_s2 + $0x60] sm:$0xff] }
  0x59   : > { %429 = vmatmul.bf16.gmra.mxu0 %v333_v13  ;;  %479 = vmatmul.bf16.gmra.mxu1 %v343_v48 }
  0x5a   : > { %489 = vmatmul.bf16.gmra.mxu2 %v345_v10  ;;  %v2949_v10 = vld [vmem:[%s4990_s2 + $0x70] sm:$0xff] }
  0x69   : > { %434 = vmatmul.bf16.gmra.mxu0 %v334_v16 }
  0x6a   : > { %494 = vmatmul.bf16.gmra.mxu2 %v346_v32 }
  0x79   : > { %439 = vmatmul.bf16.gmra.mxu0 %v335_v19 }
  0x89   : > { %444 = vmatmul.bf16.gmra.mxu0 %v336_v22 }
  0x99   : > { %449 = vmatmul.bf16.gmra.mxu0 %v337_v25  ;;  %v649_v25 = vld [vmem:[#allocation2 + $0x9] sm:$0xff] }
  0xa9   : > { %454 = vmatmul.bf16.gmra.mxu0 %v338_v28  ;;  %v3043_v28 = vpack.i.bf16 %v649_v25, %v648_v24  ;;  %v2948_v25 = vld [vmem:[%s4990_s2 + $0x68] sm:$0xff] }
  0xb9   : > { %459 = vmatmul.bf16.gmra.mxu0 %v339_v35 }
  0xc6   : > { %v425_v44 = vpop.f32.mrf.mxu0 }
  0xc7   : > { %v426_v45 = vadd.f32 %v3888_v42, %v425_v44 }
  0xc9   : > { %v505_v50 = vmax.f32 %v426_v45, 0.0  ;;  %464 = vmatmul.bf16.gmra.mxu0 %v340_v43 }
  0xcb   : > { %584 = vst.msk [vmem:[#allocation2 + $0x19] sm:$0xff] %vm537_vm0, %v505_v50 }
  0xce   : > { %v427_v51 = vpop.f32.mrf.mxu0 }
  0xcf   : > { %v428_v52 = vadd.f32 %v3888_v42, %v427_v51 }
  0xd1   : > { %v506_v53 = vmax.f32 %v428_v52, 0.0  ;;  %v330_v52 = vld [vmem:[%s3783_s16 + $0xf0] sm:$0xff] }
  0xd2   : > { %v3938_v63 = vld [vmem:[#allocation2 + $0x18] sm:$0xff] }
  0xd3   : > { %585 = vst.msk [vmem:[#allocation2 + $0x21] sm:$0xff] %vm537_vm0, %v506_v53  ;;  %v3985_v46 = vld [vmem:[#allocation2 + $0x19] sm:$0xff]  ;;  %v331_v53 = vld [vmem:[%s3783_s16 + $0xf8] sm:$0xff] }
  0xd4   : > { %v347_v55 = vpack.c.bf16 %v331_v53, %v330_v52  ;;  %v2942_v52 = vld [vmem:[%s4990_s2 + $0x38] sm:$0xff] }
  0xd5   : > { %2111 = vmatpush.bf16.msrb.mxu1 %v2942_v52 }
  0xd6   : > { %v430_v60 = vpop.f32.mrf.mxu0  ;;  %499 = vmatmul.bf16.gmra.mxu2 %v347_v55  ;;  %v2945_v55 = vld [vmem:[%s4990_s2 + $0x50] sm:$0xff] }
  0xd7   : > { %v431_v61 = vadd.f32 %v3888_v42, %v430_v60 }
  0xd9   : > { %v507_v62 = vmax.f32 %v431_v61, 0.0  ;;  %469 = vmatmul.bf16.gmra.mxu0 %v341_v59 }
  0xda   : > { %v776_v0 = vld [vmem:[#allocation2 + $0x1a] sm:$0xff]  ;;  %v777_v1 = vld [vmem:[#allocation2 + $0x22] sm:$0xff] }
  0xdb   : > { %v3940_v2 = vld [vmem:[#allocation2 + $0x20] sm:$0xff]  ;;  %586 = vst.msk [vmem:[#allocation2 + $0x31] sm:$0xff] %vm537_vm0, %v507_v62  ;;  %v3943_v3 = vpack.i.bf16 %v777_v1, %v776_v0 }
  0xdc   : > { %v3053_v4 = vpack.i.bf16 %v3940_v2, %v3938_v63  ;;  %v3978_v37 = vld [vmem:[#allocation2 + $0x21] sm:$0xff] }
  0xdd   : > { %3029 = vrot.lane.b32.xlu0 %v3943_v3, %s3647_s9  ;;  %v3063_v48 = vpack.i.bf16 %v3978_v37, %v3985_v46 }
  0xde   : > { %3054 = vrot.lane.b32.xlu2 %v3053_v4, %s3648_s21  ;;  %v432_v5 = vpop.f32.mrf.mxu0 }
  0xdf   : > { %v433_v6 = vadd.f32 %v3888_v42, %v432_v5  ;;  %v2950_v5 = vld [vmem:[%s4990_s2 + $0x78] sm:$0xff] }
  0xe0   : > { %2200 = vmatpush.bf16.msrb.mxu2 %v2950_v5 }
  0xe1   : > { %v508_v7 = vmax.f32 %v433_v6, 0.0 }
  0xe2   : > { %v3955_v14 = vld [vmem:[#allocation2 + $0x31] sm:$0xff] }
  0xe3   : > { %587 = vst.msk [vmem:[#allocation2 + $0x39] sm:$0xff] %vm537_vm0, %v508_v7  ;;  %v809_v20 = vld [vmem:[#allocation2 + $0x30] sm:$0xff] }
  0xe4   : > { %2201 = vmatpush.bf16.msrb.mxu2 %v2949_v10 }
  0xe6   : > { %v435_v11 = vpop.f32.mrf.mxu0 }
  0xe7   : > { %v436_v12 = vadd.f32 %v3888_v42, %v435_v11 }
  0xe8   : > { %2202 = vmatpush.bf16.msrb.mxu2 %v2948_v25 }
  0xe9   : > { %v509_v13 = vmax.f32 %v436_v12, 0.0 }
  0xea   : > { %v873_v15 = vld [vmem:[#allocation2 + $0x32] sm:$0xff]  ;;  %v874_v16 = vld [vmem:[#allocation2 + $0x3a] sm:$0xff] }
  0xeb   : > { %v3957_v17 = vld [vmem:[#allocation2 + $0x39] sm:$0xff]  ;;  %588 = vst.msk [vmem:[#allocation2 + $0x49] sm:$0xff] %vm537_vm0, %v509_v13  ;;  %v1869_v18 = vpack.c.bf16 %v874_v16, %v873_v15  ;;  %v3972_v31 = vpack.i.bf16 %v874_v16, %v873_v15 }
  0xec   : > { %v3962_v19 = vpack.i.bf16 %v3957_v17, %v3955_v14  ;;  %v810_v21 = vld [vmem:[#allocation2 + $0x38] sm:$0xff]  ;;  %2203 = vmatpush.bf16.msrb.mxu2 %v2947_v30  ;;  %v2936_v30 = vld [vmem:[%s4990_s2 + $0x8] sm:$0xff] }
  0xed   : > { %v3033_v22 = vpack.i.bf16 %v810_v21, %v809_v20  ;;  %2881 = vmatmul.msk.bf16.vlgmr.msrb.gmra.mxu0 %vm537_vm0, %v1869_v18 }
  0xee   : > { %3039 = vrot.lane.b32.xlu1 %v3962_v19, %s3648_s21  ;;  %v437_v23 = vpop.f32.mrf.mxu0 }
  0xef   : > { %3034 = vrot.lane.b32.xlu0 %v3033_v22, %s3646_s12  ;;  %v438_v26 = vadd.f32 %v3888_v42, %v437_v23 }
  0xf1   : > { %v510_v27 = vmax.f32 %v438_v26, 0.0 }
  0xf2   : > { %v811_v36 = vld [vmem:[#allocation2 + $0x48] sm:$0xff] }
  0xf3   : > { %589 = vst.msk [vmem:[#allocation2 + $0x51] sm:$0xff] %vm537_vm0, %v510_v27  ;;  %v3981_v44 = vld [vmem:[#allocation2 + $0x49] sm:$0xff] }
  0xf6   : > { %3044 = vrot.lane.b32.xlu1 %v3043_v28, %s3647_s9  ;;  %v440_v33 = vpop.f32.mrf.mxu0 }
  0xf7   : > { %3059 = vrot.lane.b32.xlu0 %v3972_v31, %s3647_s9  ;;  %v441_v34 = vadd.f32 %v3888_v42, %v440_v33 }
  0xf9   : > { %v511_v35 = vmax.f32 %v441_v34, 0.0 }
  0xfa   : > { %v875_v38 = vld [vmem:[#allocation2 + $0x4a] sm:$0xff]  ;;  %v876_v39 = vld [vmem:[#allocation2 + $0x52] sm:$0xff] }
  0xfb   : > { %v812_v40 = vld [vmem:[#allocation2 + $0x50] sm:$0xff]  ;;  %590 = vst.msk [vmem:[#allocation2 + $0x61] sm:$0xff] %vm537_vm0, %v511_v35  ;;  %v1872_v41 = vpack.c.bf16 %v876_v39, %v875_v38  ;;  %v3088_v54 = vpack.i.bf16 %v876_v39, %v875_v38 }
  0xfc   : > { %v3068_v43 = vpack.i.bf16 %v812_v40, %v811_v36  ;;  %v3983_v45 = vld [vmem:[#allocation2 + $0x51] sm:$0xff] }
  0xfd   : > { %v3989_v47 = vpack.i.bf16 %v3983_v45, %v3981_v44  ;;  %2882 = vmatmul.msk.bf16.gmra.mxu0 %vm537_vm0, %v1872_v41 }
  0xfe   : > { %3069 = vrot.lane.b32.xlu1 %v3068_v43, %s3646_s12  ;;  %v442_v49 = vpop.f32.mrf.mxu0 }
  0xff   : > { %3079 = vrot.lane.b32.xlu2 %v3989_v47, %s3648_s21  ;;  %3064 = vrot.lane.b32.xlu0 %v3063_v48, %s3647_s9  ;;  %v443_v50 = vadd.f32 %v3888_v42, %v442_v49  ;;  %v2946_v48 = vld [vmem:[%s4990_s2 + $0x58] sm:$0xff] }
 0x100   : > { %2204 = vmatpush.bf16.msrb.mxu2 %v2946_v48 }
 0x101   : > { %v512_v51 = vmax.f32 %v443_v50, 0.0 }
 0x102   : > { %v4007_v59 = vld [vmem:[#allocation2 + $0x61] sm:$0xff] }
 0x103   : > { %591 = vst.msk [vmem:[#allocation2 + $0x69] sm:$0xff] %vm537_vm0, %v512_v51 }
 0x104   : > { %2205 = vmatpush.bf16.msrb.mxu2 %v2945_v55 }
 0x106   : > { %3074 = vrot.lane.b32.xlu1 %v3943_v3, %s3646_s12  ;;  %v445_v56 = vpop.f32.mrf.mxu0  ;;  %v813_v3 = vld [vmem:[#allocation2 + $0x60] sm:$0xff] }
 0x107   : > { %3084 = vrot.lane.b32.xlu2 %v3033_v22, %s3648_s21  ;;  %3089 = vrot.lane.b32.xlu0 %v3088_v54, %s3647_s9  ;;  %v446_v57 = vadd.f32 %v3888_v42, %v445_v56 }
 0x109   : > { %v513_v58 = vmax.f32 %v446_v57, 0.0 }
 0x10a   : > { %v877_v60 = vld [vmem:[#allocation2 + $0x62] sm:$0xff]  ;;  %v878_v61 = vld [vmem:[#allocation2 + $0x6a] sm:$0xff] }
 0x10b   : > { %v4009_v62 = vld [vmem:[#allocation2 + $0x69] sm:$0xff]  ;;  %592 = vst.msk [vmem:[#allocation2 + $0x79] sm:$0xff] %vm537_vm0, %v513_v58  ;;  %v1875_v0 = vpack.c.bf16 %v878_v61, %v877_v60  ;;  %v4030_v11 = vpack.i.bf16 %v878_v61, %v877_v60 }
 0x10c   : > { %v4014_v1 = vpack.i.bf16 %v4009_v62, %v4007_v59  ;;  %v814_v4 = vld [vmem:[#allocation2 + $0x68] sm:$0xff] }
 0x10d   : > { %v3098_v6 = vpack.i.bf16 %v814_v4, %v813_v3  ;;  %2883 = vmatmul.msk.bf16.gmra.mxu0 %vm537_vm0, %v1875_v0  ;;  %v2940_v60 = vld [vmem:[%s4990_s2 + $0x28] sm:$0xff] }
 0x10e   : > { %v447_v7 = vpop.f32.mrf.mxu0 }
 0x10f   : > { %3109 = vrot.lane.b32.xlu2 %v4014_v1, %s3648_s21  ;;  %3099 = vrot.lane.b32.xlu1 %v3098_v6, %s3646_s12  ;;  %v448_v8 = vadd.f32 %v3888_v42, %v447_v7 }
 0x110   : > { %3094 = vrot.lane.b32.xlu0 %v3962_v19, %s3647_s9 }
 0x111   : > { %v514_v9 = vmax.f32 %v448_v8, 0.0 }
 0x112   : > { %v847_v16 = vld [vmem:[#allocation2 + $0x79] sm:$0xff] }
 0x113   : > { %593 = vst.msk [vmem:[#allocation2 + $0x81] sm:$0xff] %vm537_vm0, %v514_v9  ;;  %v815_v23 = vld [vmem:[#allocation2 + $0x78] sm:$0xff] }
 0x116   : > { %v450_v12 = vpop.f32.mrf.mxu0 }
 0x117   : > { %3114 = vrot.lane.b32.xlu2 %v3068_v43, %s3648_s21  ;;  %3104 = vrot.lane.b32.xlu1 %v3972_v31, %s3646_s12  ;;  %v451_v13 = vadd.f32 %v3888_v42, %v450_v12 }
 0x118   : > { %3119 = vrot.lane.b32.xlu0 %v4030_v11, %s3647_s9 }
 0x119   : > { %v515_v15 = vmax.f32 %v451_v13, 0.0  ;;  %v2939_v13 = vld [vmem:[%s4990_s2 + $0x20] sm:$0xff] }
 0x11a   : > { %v879_v18 = vld [vmem:[#allocation2 + $0x7a] sm:$0xff]  ;;  %v880_v19 = vld [vmem:[#allocation2 + $0x82] sm:$0xff] }
 0x11b   : > { %v848_v20 = vld [vmem:[#allocation2 + $0x81] sm:$0xff]  ;;  %594 = vst.msk [vmem:[#allocation2 + $0x91] sm:$0xff] %vm537_vm0, %v515_v15  ;;  %v1878_v21 = vpack.c.bf16 %v880_v19, %v879_v18  ;;  %v4055_v31 = vpack.i.bf16 %v880_v19, %v879_v18  ;;  %v2938_v19 = vld [vmem:[%s4990_s2 + $0x18] sm:$0xff] }
 0x11c   : > { %v4039_v22 = vpack.i.bf16 %v848_v20, %v847_v16  ;;  %v816_v24 = vld [vmem:[#allocation2 + $0x80] sm:$0xff] }
 0x11d   : > { %v3128_v26 = vpack.i.bf16 %v816_v24, %v815_v23  ;;  %2884 = vmatmul.msk.bf16.gmra.mxu0 %vm537_vm0, %v1878_v21  ;;  %v2943_v24 = vld [vmem:[%s4990_s2 + $0x40] sm:$0xff] }
 0x11e   : > { %v452_v27 = vpop.f32.mrf.mxu0 }
 0x11f   : > { %3139 = vrot.lane.b32.xlu2 %v4039_v22, %s3648_s21  ;;  %3129 = vrot.lane.b32.xlu1 %v3128_v26, %s3646_s12  ;;  %v453_v28 = vadd.f32 %v3888_v42, %v452_v27  ;;  %v4130_v27 = vpop.permute.xlu2 %3049 }
 0x120   : > { %3124 = vrot.lane.b32.xlu0 %v3989_v47, %s3647_s9 }
 0x121   : > { %v516_v29 = vmax.f32 %v453_v28, 0.0 }
 0x122   : > { %v849_v35 = vld [vmem:[#allocation2 + $0x91] sm:$0xff] }
 0x123   : > { %595 = vst.msk [vmem:[#allocation2 + $0x99] sm:$0xff] %vm537_vm0, %v516_v29  ;;  %v817_v43 = vld [vmem:[#allocation2 + $0x90] sm:$0xff] }
 0x126   : > { %v455_v32 = vpop.f32.mrf.mxu0 }
 0x127   : > { %3144 = vrot.lane.b32.xlu2 %v3098_v6, %s3648_s21  ;;  %3134 = vrot.lane.b32.xlu1 %v3088_v54, %s3646_s12  ;;  %v456_v33 = vadd.f32 %v3888_v42, %v455_v32  ;;  %v2941_v54 = vld [vmem:[%s4990_s2 + $0x30] sm:$0xff] }
 0x128   : > { %3149 = vrot.lane.b32.xlu0 %v4055_v31, %s3647_s9  ;;  %2112 = vmatpush.bf16.msrb.mxu1 %v2941_v54 }
 0x129   : > { %v517_v34 = vmax.f32 %v456_v33, 0.0 }
 0x12a   : > { %v881_v36 = vld [vmem:[#allocation2 + $0x92] sm:$0xff]  ;;  %v882_v38 = vld [vmem:[#allocation2 + $0x9a] sm:$0xff] }
 0x12b   : > { %v850_v39 = vld [vmem:[#allocation2 + $0x99] sm:$0xff]  ;;  %596 = vst.msk [vmem:[#allocation2 + $0xa9] sm:$0xff] %vm537_vm0, %v517_v34  ;;  %v1881_v40 = vpack.c.bf16 %v882_v38, %v881_v36  ;;  %v4085_v56 = vpack.i.bf16 %v882_v38, %v881_v36 }
 0x12c   : > { %v4063_v41 = vpack.i.bf16 %v850_v39, %v849_v35  ;;  %v818_v47 = vld [vmem:[#allocation2 + $0x98] sm:$0xff]  ;;  %2113 = vmatpush.bf16.msrb.mxu1 %v2940_v60 }
 0x12d   : > { %v3158_v49 = vpack.i.bf16 %v818_v47, %v817_v43  ;;  %2885 = vmatmul.msk.bf16.gmra.mxu0 %vm537_vm0, %v1881_v40 }
 0x12e   : > { %v457_v50 = vpop.f32.mrf.mxu0 }
 0x12f   : > { %3169 = vrot.lane.b32.xlu2 %v4063_v41, %s3648_s21  ;;  %3159 = vrot.lane.b32.xlu1 %v3158_v49, %s3646_s12  ;;  %v458_v51 = vadd.f32 %v3888_v42, %v457_v50  ;;  %v2935_v50 = vld [vmem:[%s4990_s2] sm:$0xff] }
 0x130   : > { %3154 = vrot.lane.b32.xlu0 %v4014_v1, %s3647_s9  ;;  %v475_v1 = vpop.f32.mrf.mxu1  ;;  %2114 = vmatpush.bf16.msrb.mxu1 %v2939_v13 }
 0x131   : > { %v518_v53 = vmax.f32 %v458_v51, 0.0  ;;  %v476_v10 = vadd.f32 %v3888_v42, %v475_v1 }
 0x132   : > { %v851_v0 = vld [vmem:[#allocation2 + $0xa9] sm:$0xff] }
 0x133   : > { %597 = vst.msk [vmem:[#allocation2 + $0xb1] sm:$0xff] %vm537_vm0, %v518_v53  ;;  %v819_v8 = vld [vmem:[#allocation2 + $0xa8] sm:$0xff]  ;;  %v525_v15 = vmax.f32 %v476_v10, 0.0 }
 0x134   : > { %2115 = vmatpush.bf16.msrb.mxu1 %v2938_v19 }
 0x135   : > { %604 = vst.msk [vmem:[#allocation2 + $0x109] sm:$0xff] %vm537_vm0, %v525_v15 }
 0x136   : > { %v460_v57 = vpop.f32.mrf.mxu0 }
 0x137   : > { %3174 = vrot.lane.b32.xlu2 %v3128_v26, %s3648_s21  ;;  %3164 = vrot.lane.b32.xlu1 %v4030_v11, %s3646_s12  ;;  %v461_v58 = vadd.f32 %v3888_v42, %v460_v57  ;;  %v2944_v11 = vld [vmem:[%s4990_s2 + $0x48] sm:$0xff] }
 0x138   : > { %3179 = vrot.lane.b32.xlu0 %v4085_v56, %s3647_s9  ;;  %2206 = vmatpush.bf16.msrb.mxu2 %v2944_v11  ;;  %v477_v21 = vpop.f32.mrf.mxu1  ;;  %v4160_v53 = vpop.permute.xlu2 %3054 }
 0x139   : > { %v519_v61 = vmax.f32 %v461_v58, 0.0  ;;  %v478_v23 = vadd.f32 %v3888_v42, %v477_v21 }
 0x13a   : > { %v883_v3 = vld [vmem:[#allocation2 + $0xaa] sm:$0xff]  ;;  %v884_v4 = vld [vmem:[#allocation2 + $0xb2] sm:$0xff] }
 0x13b   : > { %v852_v5 = vld [vmem:[#allocation2 + $0xb1] sm:$0xff]  ;;  %598 = vst.msk [vmem:[#allocation2 + $0xc1] sm:$0xff] %vm537_vm0, %v519_v61  ;;  %v1884_v6 = vpack.c.bf16 %v884_v4, %v883_v3  ;;  %v4128_v25 = vpack.i.bf16 %v884_v4, %v883_v3  ;;  %v526_v26 = vmax.f32 %v478_v23, 0.0  ;;  %v485_v3 = vpop.f32.mrf.mxu2 }
 0x13c   : > { %v4097_v7 = vpack.i.bf16 %v852_v5, %v851_v0  ;;  %v820_v9 = vld [vmem:[#allocation2 + $0xb0] sm:$0xff]  ;;  %2207 = vmatpush.bf16.msrb.mxu2 %v2943_v24 }
 0x13d   : > { %v4103_v12 = vpack.i.bf16 %v820_v9, %v819_v8  ;;  %2886 = vmatmul.msk.bf16.gmra.mxu0 %vm537_vm0, %v1884_v6  ;;  %605 = vst.msk [vmem:[#allocation2 + $0x111] sm:$0xff] %vm537_vm0, %v526_v26  ;;  %v486_v6 = vadd.f32 %v3888_v42, %v485_v3 }
 0x13e   : > { %v462_v16 = vpop.f32.mrf.mxu0 }
 0x13f   : > { %3199 = vrot.lane.b32.xlu2 %v4097_v7, %s3648_s21  ;;  %3189 = vrot.lane.b32.xlu1 %v4103_v12, %s3646_s12  ;;  %v463_v18 = vadd.f32 %v3888_v42, %v462_v16  ;;  %v529_v15 = vmax.f32 %v486_v6, 0.0 }
 0x140   : > { %3184 = vrot.lane.b32.xlu0 %v4039_v22, %s3647_s9  ;;  %v2937_v22 = vld [vmem:[%s4990_s2 + $0x10] sm:$0xff]  ;;  %v480_v34 = vpop.f32.mrf.mxu1 }
 0x141   : > { %v520_v20 = vmax.f32 %v463_v18, 0.0  ;;  %2116 = vmatpush.bf16.msrb.mxu1 %v2937_v22  ;;  %608 = vst.msk [vmem:[#allocation2 + $0x139] sm:$0xff] %vm537_vm0, %v529_v15 }
 0x142   : > { %v853_v33 = vld [vmem:[#allocation2 + $0xc1] sm:$0xff] }
 0x143   : > { %599 = vst.msk [vmem:[#allocation2 + $0xc9] sm:$0xff] %vm537_vm0, %v520_v20  ;;  %v821_v43 = vld [vmem:[#allocation2 + $0xc0] sm:$0xff] }
 0x145   : > { %2117 = vmatpush.bf16.msrb.mxu1 %v2936_v30 }
 0x146   : > { %v465_v28 = vpop.f32.mrf.mxu0 }
 0x147   : > { %3204 = vrot.lane.b32.xlu2 %v3158_v49, %s3648_s21  ;;  %3194 = vrot.lane.b32.xlu1 %v4055_v31, %s3646_s12  ;;  %v466_v29 = vadd.f32 %v3888_v42, %v465_v28  ;;  %v481_v31 = vadd.f32 %v3888_v42, %v480_v34 }
 0x148   : > { %3209 = vrot.lane.b32.xlu0 %v4128_v25, %s3647_s9  ;;  %v482_v55 = vpop.f32.mrf.mxu1 }
 0x149   : > { %v521_v32 = vmax.f32 %v466_v29, 0.0  ;;  %v527_v49 = vmax.f32 %v481_v31, 0.0  ;;  %2118 = vmatpush.bf16.msrb.mxu1 %v2935_v50  ;;  %v483_v57 = vadd.f32 %v3888_v42, %v482_v55 }
 0x14a   : > { %v885_v35 = vld [vmem:[#allocation2 + $0xc2] sm:$0xff]  ;;  %v886_v36 = vld [vmem:[#allocation2 + $0xca] sm:$0xff] }
 0x14b   : > { %v854_v38 = vld [vmem:[#allocation2 + $0xc9] sm:$0xff]  ;;  %600 = vst.msk [vmem:[#allocation2 + $0xd9] sm:$0xff] %vm537_vm0, %v521_v32  ;;  %v1887_v39 = vpack.c.bf16 %v886_v36, %v885_v35  ;;  %v528_v58 = vmax.f32 %v483_v57, 0.0  ;;  %v4164_v60 = vpack.i.bf16 %v886_v36, %v885_v35  ;;  %v487_v36 = vpop.f32.mrf.mxu2 }
 0x14c   : > { %v4144_v40 = vpack.i.bf16 %v854_v38, %v853_v33  ;;  %v822_v47 = vld [vmem:[#allocation2 + $0xc8] sm:$0xff]  ;;  %606 = vst.msk [vmem:[#allocation2 + $0x121] sm:$0xff] %vm537_vm0, %v527_v49  ;;  %v488_v31 = vadd.f32 %v3888_v42, %v487_v36 }
 0x14d   : > { %v4146_v48 = vpack.i.bf16 %v822_v47, %v821_v43  ;;  %2887 = vmatmul.msk.bf16.gmra.mxu0 %vm537_vm0, %v1887_v39  ;;  %607 = vst.msk [vmem:[#allocation2 + $0x129] sm:$0xff] %vm537_vm0, %v528_v58 }
 0x14e   : > { %v467_v51 = vpop.f32.mrf.mxu0  ;;  %v530_v50 = vmax.f32 %v488_v31, 0.0 }
 0x14f   : > { %3229 = vrot.lane.b32.xlu2 %v4144_v40, %s3648_s21  ;;  %3219 = vrot.lane.b32.xlu1 %v4146_v48, %s3646_s12  ;;  %v468_v52 = vadd.f32 %v3888_v42, %v467_v51  ;;  %v3030_v61 = vpop.permute.xlu0 %3029 }
 0x150   : > { %3214 = vrot.lane.b32.xlu0 %v4063_v41, %s3647_s9  ;;  %v3032_v20 = vunpack.i.h.bf16 %v3030_v61  ;;  %v3031_v21 = vunpack.i.l.bf16 %v3030_v61  ;;  %609 = vst.msk [vmem:[#allocation2 + $0x141] sm:$0xff] %vm537_vm0, %v530_v50  ;;  %v3052_v61 = vunpack.i.h.bf16 %v4130_v27 }
 0x151   : > { %v522_v54 = vmax.f32 %v468_v52, 0.0 }
 0x152   : > { %v855_v5 = vld [vmem:[#allocation2 + $0xd9] sm:$0xff]  ;;  %v1772_v38 = vsel %vm537_vm0, %v3978_v37, %v3032_v20 }
 0x153   : > { %601 = vst.msk [vmem:[#allocation2 + $0xe1] sm:$0xff] %vm537_vm0, %v522_v54  ;;  %v616_v37 = vld [vmem:[#allocation2] sm:$0xff] }
 0x154   : > { %v4184_v18 = vld [vmem:[#allocation2 + $0x122] sm:$0xff]  ;;  %v4186_v19 = vld [vmem:[#allocation2 + $0x12a] sm:$0xff] }
 0x155   : > { %v1899_v24 = vpack.c.bf16 %v4186_v19, %v4184_v18 }
 0x156   : > { %v470_v41 = vpop.f32.mrf.mxu0 }
 0x157   : > { %3234 = vrot.lane.b32.xlu2 %v4103_v12, %s3648_s21  ;;  %3224 = vrot.lane.b32.xlu1 %v4085_v56, %s3646_s12  ;;  %v471_v0 = vadd.f32 %v3888_v42, %v470_v41  ;;  %v823_v12 = vld [vmem:[#allocation2 + $0xd8] sm:$0xff] }
 0x158   : > { %3239 = vrot.lane.b32.xlu0 %v4164_v60, %s3647_s9  ;;  %2891 = vmatmul.msk.bf16.vlgmr.msra.gmra.mxu3 %vm537_vm0, %v1899_v24 }
 0x159   : > { %v4174_v1 = vpop.permute.xlu2 %3079  ;;  %v523_v4 = vmax.f32 %v471_v0, 0.0  ;;  %v490_v0 = vpop.f32.mrf.mxu2 }
 0x15a   : > { %v887_v8 = vld [vmem:[#allocation2 + $0xda] sm:$0xff]  ;;  %v888_v9 = vld [vmem:[#allocation2 + $0xe2] sm:$0xff] }
 0x15b   : > { %v856_v10 = vld [vmem:[#allocation2 + $0xe1] sm:$0xff]  ;;  %602 = vst.msk [vmem:[#allocation2 + $0xf1] sm:$0xff] %vm537_vm0, %v523_v4  ;;  %v1890_v56 = vpack.c.bf16 %v888_v9, %v887_v8  ;;  %v4210_v51 = vpack.i.bf16 %v888_v9, %v887_v8  ;;  %v491_v9 = vadd.f32 %v3888_v42, %v490_v0 }
 0x15c   : > { %v4178_v11 = vpack.i.bf16 %v856_v10, %v855_v5  ;;  %v824_v13 = vld [vmem:[#allocation2 + $0xe0] sm:$0xff]  ;;  %v3057_v10 = vunpack.i.h.bf16 %v4160_v53 }
 0x15d   : > { %v4180_v16 = vpack.i.bf16 %v824_v13, %v823_v12  ;;  %2888 = vmatmul.msk.bf16.gmra.mxu0 %vm537_vm0, %v1890_v56  ;;  %v3056_v56 = vunpack.i.l.bf16 %v4160_v53  ;;  %v531_v53 = vmax.f32 %v491_v9, 0.0  ;;  %v860_v9 = vld [vmem:[#allocation2 + $0x111] sm:$0xff] }
 0x15e   : > { %v472_v23 = vpop.f32.mrf.mxu0 }
 0x15f   : > { %3259 = vrot.lane.b32.xlu2 %v4178_v11, %s3648_s21  ;;  %3249 = vrot.lane.b32.xlu1 %v4180_v16, %s3646_s12  ;;  %v473_v22 = vadd.f32 %v3888_v42, %v472_v23  ;;  %610 = vst.msk [vmem:[#allocation2 + $0x151] sm:$0xff] %vm537_vm0, %v531_v53 }
 0x160   : > { %3244 = vrot.lane.b32.xlu0 %v4097_v7, %s3647_s9  ;;  %v3040_v26 = vpop.permute.xlu1 %3039  ;;  %v1771_v7 = vsel %vm537_vm0, %v3985_v46, %v3031_v21  ;;  %v617_v46 = vld [vmem:[#allocation2 + $0x8] sm:$0xff] }
 0x161   : > { %v3042_v28 = vunpack.i.h.bf16 %v3040_v26  ;;  %v3041_v29 = vunpack.i.l.bf16 %v3040_v26  ;;  %v3035_v30 = vpop.permute.xlu0 %3034  ;;  %v4197_v32 = vpop.permute.xlu2 %3084  ;;  %v524_v33 = vmax.f32 %v473_v22, 0.0 }
 0x162   : > { %v3037_v34 = vunpack.i.h.bf16 %v3035_v30  ;;  %v3036_v35 = vunpack.i.l.bf16 %v3035_v30  ;;  %v825_v15 = vld [vmem:[#allocation2 + $0xf0] sm:$0xff]  ;;  %v4239_v30 = vld [vmem:[#allocation2 + $0x142] sm:$0xff] }
 0x163   : > { %603 = vst.msk [vmem:[#allocation2 + $0xf9] sm:$0xff] %vm537_vm0, %v524_v33 }
 0x164   : > { %v1803_v39 = vsel %vm1705_vm3, %v1771_v7, %v3036_v35  ;;  %v1804_v43 = vsel %vm1705_vm3, %v1772_v38, %v3037_v34 }
 0x165   : > { %v1835_v47 = vsel %vm1738_vm4, %v1803_v39, %v3041_v29  ;;  %v1836_v49 = vsel %vm1738_vm4, %v1804_v43, %v3042_v28  ;;  %v4237_v29 = vld [vmem:[#allocation2 + $0x13a] sm:$0xff]  ;;  %v3082_v39 = vunpack.i.h.bf16 %v4174_v1  ;;  %v3081_v43 = vunpack.i.l.bf16 %v4174_v1 }
 0x166   : > { %v1868_v52 = vpack.c.bf16 %v1836_v49, %v1835_v47  ;;  %v1902_v34 = vpack.c.bf16 %v4239_v30, %v4237_v29  ;;  %v492_v49 = vpop.f32.mrf.mxu2 }
 0x167   : > { %3264 = vrot.lane.b32.xlu2 %v4146_v48, %s3648_s21  ;;  %3254 = vrot.lane.b32.xlu1 %v4128_v25, %s3646_s12  ;;  %v857_v48 = vld [vmem:[#allocation2 + $0xf1] sm:$0xff]  ;;  %v3051_v25 = vunpack.i.l.bf16 %v4130_v27 }
 0x168   : > { %3269 = vrot.lane.b32.xlu0 %v4210_v51, %s3647_s9  ;;  %2208 = vmatmul.bf16.vlgmr.msrb.gmra.mxu2 %v1868_v52  ;;  %v3045_v54 = vpop.permute.xlu1 %3044 }
 0x169   : > { %v3047_v55 = vunpack.i.h.bf16 %v3045_v54  ;;  %v3046_v57 = vunpack.i.l.bf16 %v3045_v54  ;;  %v3060_v58 = vpop.permute.xlu0 %3059  ;;  %v4219_v41 = vpop.permute.xlu2 %3109  ;;  %2892 = vmatmul.msk.bf16.gmra.mxu3 %vm537_vm0, %v1902_v34 }
 0x16a   : > { %v889_v5 = vld [vmem:[#allocation2 + $0xf2] sm:$0xff]  ;;  %v890_v6 = vld [vmem:[#allocation2 + $0xfa] sm:$0xff]  ;;  %v3062_v21 = vunpack.i.h.bf16 %v3060_v58  ;;  %v3061_v22 = vunpack.i.l.bf16 %v3060_v58 }
 0x16b   : > { %v1674_v3 = vsel %vm537_vm0, %v617_v46, %v3047_v55  ;;  %v1673_v4 = vsel %vm537_vm0, %v616_v37, %v3046_v57  ;;  %v858_v8 = vld [vmem:[#allocation2 + $0xf9] sm:$0xff]  ;;  %v1893_v12 = vpack.c.bf16 %v890_v6, %v889_v5  ;;  %v493_v37 = vadd.f32 %v3888_v42, %v492_v49 }
 0x16c   : > { %v4228_v13 = vpack.i.bf16 %v858_v8, %v857_v48  ;;  %v826_v20 = vld [vmem:[#allocation2 + $0xf8] sm:$0xff]  ;;  %v1706_v23 = vsel %vm1705_vm3, %v1673_v4, %v3051_v25  ;;  %v1707_v24 = vsel %vm1705_vm3, %v1674_v3, %v3052_v61  ;;  %v1774_v47 = vsel %vm537_vm0, %v3957_v17, %v3062_v21  ;;  %v891_v3 = vld [vmem:[#allocation2 + $0x10a] sm:$0xff] }
 0x16d   : > { %v4230_v27 = vpack.i.bf16 %v826_v20, %v825_v15  ;;  %2889 = vmatmul.msk.bf16.gmra.mxu0 %vm537_vm0, %v1893_v12  ;;  %v1739_v26 = vsel %vm1738_vm4, %v1706_v23, %v3056_v56  ;;  %v1740_v28 = vsel %vm1738_vm4, %v1707_v24, %v3057_v10  ;;  %v532_v57 = vmax.f32 %v493_v37, 0.0  ;;  %v892_v4 = vld [vmem:[#allocation2 + $0x112] sm:$0xff]  ;;  %v827_v10 = vld [vmem:[#allocation2 + $0x108] sm:$0xff] }
 0x16e   : > { %v1867_v33 = vpack.c.bf16 %v1740_v28, %v1739_v26  ;;  %v4264_v61 = vpack.i.bf16 %v890_v6, %v889_v5  ;;  %v859_v5 = vld [vmem:[#allocation2 + $0x109] sm:$0xff]  ;;  %v3086_v6 = vunpack.i.l.bf16 %v4197_v32  ;;  %v495_v12 = vpop.f32.mrf.mxu2  ;;  %v1896_v23 = vpack.c.bf16 %v892_v4, %v891_v3 }
 0x16f   : > { %3289 = vrot.lane.b32.xlu2 %v4228_v13, %s3648_s21  ;;  %3279 = vrot.lane.b32.xlu1 %v4230_v27, %s3646_s12  ;;  %611 = vst.msk [vmem:[#allocation2 + $0x159] sm:$0xff] %vm537_vm0, %v532_v57  ;;  %v828_v56 = vld [vmem:[#allocation2 + $0x110] sm:$0xff]  ;;  %v496_v21 = vadd.f32 %v3888_v42, %v495_v12 }
 0x170   : > { %3274 = vrot.lane.b32.xlu0 %v4144_v40, %s3647_s9  ;;  %v3070_v35 = vpop.permute.xlu1 %3069  ;;  %2119 = vmatmul.bf16.vlgmr.msrb.gmra.mxu1 %v1867_v33  ;;  %v1773_v40 = vsel %vm537_vm0, %v3955_v14, %v3061_v22  ;;  %v4286_v22 = vpack.i.bf16 %v860_v9, %v859_v5 }
 0x171   : > { %v3072_v36 = vunpack.i.h.bf16 %v3070_v35  ;;  %v3071_v38 = vunpack.i.l.bf16 %v3070_v35  ;;  %v4250_v7 = vpop.permute.xlu2 %3114  ;;  %v3065_v31 = vpop.permute.xlu0 %3064  ;;  %v533_v26 = vmax.f32 %v496_v21, 0.0 }
 0x172   : > { %v3067_v1 = vunpack.i.h.bf16 %v3065_v31  ;;  %v3066_v58 = vunpack.i.l.bf16 %v3065_v31 }
 0x173   : > { %v1805_v50 = vsel %vm1705_vm3, %v1773_v40, %v3071_v38  ;;  %v1806_v52 = vsel %vm1705_vm3, %v1774_v47, %v3072_v36  ;;  %612 = vst.msk [vmem:[#allocation2 + $0x169] sm:$0xff] %vm537_vm0, %v533_v26  ;;  %v2954_v36 = vld [vmem:[%s4991_s3 + $0x8] sm:$0xff] }
 0x174   : > { %v1837_v46 = vsel %vm1738_vm4, %v1805_v50, %v3081_v43  ;;  %v1838_v54 = vsel %vm1738_vm4, %v1806_v52, %v3082_v39  ;;  %v1676_v8 = vsel %vm537_vm0, %v3940_v2, %v3067_v1  ;;  %v3112_v39 = vunpack.i.h.bf16 %v4219_v41  ;;  %2500 = vmatpush.bf16.msrb.mxu3 %v2954_v36 }
 0x175   : > { %v1871_v55 = vpack.c.bf16 %v1838_v54, %v1837_v46  ;;  %v3111_v50 = vunpack.i.l.bf16 %v4219_v41  ;;  %v4321_v1 = vpack.i.bf16 %v892_v4, %v891_v3  ;;  %v861_v3 = vld [vmem:[#allocation2 + $0x121] sm:$0xff] }
 0x176   : > { %v4291_v28 = vld [vmem:[#allocation2 + $0x152] sm:$0xff]  ;;  %v4293_v53 = vld [vmem:[#allocation2 + $0x15a] sm:$0xff]  ;;  %v497_v49 = vpop.f32.mrf.mxu2 }
 0x177   : > { %3294 = vrot.lane.b32.xlu2 %v4180_v16, %s3648_s21  ;;  %3284 = vrot.lane.b32.xlu1 %v4164_v60, %s3646_s12  ;;  %v3087_v16 = vunpack.i.h.bf16 %v4197_v32  ;;  %v1675_v60 = vsel %vm537_vm0, %v3938_v63, %v3066_v58  ;;  %v4288_v63 = vpack.i.bf16 %v828_v56, %v827_v10  ;;  %v1905_v35 = vpack.c.bf16 %v4293_v53, %v4291_v28 }
 0x178   : > { %3309 = vrot.lane.b32.xlu0 %v4264_v61, %s3647_s9  ;;  %2213 = vmatmul.bf16.gmra.mxu2 %v1871_v55  ;;  %v3075_v14 = vpop.permute.xlu1 %3074  ;;  %v498_v37 = vadd.f32 %v3888_v42, %v497_v49 }
 0x179   : > { %v4273_v17 = vpop.permute.xlu2 %3139  ;;  %v3077_v48 = vunpack.i.h.bf16 %v3075_v14  ;;  %v3076_v0 = vunpack.i.l.bf16 %v3075_v14  ;;  %v3090_v25 = vpop.permute.xlu0 %3089  ;;  %2893 = vmatmul.msk.bf16.gmra.mxu3 %vm537_vm0, %v1905_v35 }
 0x17a   : > { %v3092_v33 = vunpack.i.h.bf16 %v3090_v25  ;;  %v3091_v34 = vunpack.i.l.bf16 %v3090_v25  ;;  %v534_v41 = vmax.f32 %v498_v37, 0.0  ;;  %v3141_v49 = vunpack.i.l.bf16 %v4273_v17 }
 0x17b   : > { %v1708_v15 = vsel %vm1705_vm3, %v1675_v60, %v3076_v0  ;;  %v1709_v20 = vsel %vm1705_vm3, %v1676_v8, %v3077_v48  ;;  %v830_v60 = vld [vmem:[#allocation2 + $0x128] sm:$0xff]  ;;  %v3116_v8 = vunpack.i.l.bf16 %v4250_v7 }
 0x17c   : > { %v1741_v24 = vsel %vm1738_vm4, %v1708_v15, %v3086_v6  ;;  %v1742_v32 = vsel %vm1738_vm4, %v1709_v20, %v3087_v16  ;;  %v1775_v52 = vsel %vm537_vm0, %v3981_v44, %v3091_v34  ;;  %613 = vst.msk [vmem:[#allocation2 + $0x171] sm:$0xff] %vm537_vm0, %v534_v41  ;;  %v620_v44 = vld [vmem:[#allocation2 + $0x30] sm:$0xff] }
 0x17d   : > { %v1870_v2 = vpack.c.bf16 %v1742_v32, %v1741_v24  ;;  %2890 = vmatmul.msk.bf16.gmra.mxu0 %vm537_vm0, %v1896_v23  ;;  %v862_v6 = vld [vmem:[#allocation2 + $0x129] sm:$0xff] }
 0x17e   : > { %v500_v56 = vpop.f32.mrf.mxu2  ;;  %v4339_v21 = vpack.i.bf16 %v862_v6, %v861_v3 }
 0x17f   : > { %3304 = vrot.lane.b32.xlu2 %v4286_v22, %s3648_s21  ;;  %3299 = vrot.lane.b32.xlu1 %v4288_v63, %s3646_s12  ;;  %v501_v20 = vadd.f32 %v3888_v42, %v500_v56 }
 0x180   : > { %3314 = vrot.lane.b32.xlu0 %v4178_v11, %s3647_s9  ;;  %2124 = vmatmul.bf16.gmra.mxu1 %v1870_v2  ;;  %v1776_v11 = vsel %vm537_vm0, %v3983_v45, %v3092_v33  ;;  %v621_v45 = vld [vmem:[#allocation2 + $0x38] sm:$0xff] }
 0x181   : > { %v4307_v38 = vpop.permute.xlu2 %3144  ;;  %v3100_v31 = vpop.permute.xlu1 %3099  ;;  %v535_v2 = vmax.f32 %v501_v20, 0.0 }
 0x182   : > { %v3102_v43 = vunpack.i.h.bf16 %v3100_v31  ;;  %v3101_v47 = vunpack.i.l.bf16 %v3100_v31  ;;  %v3095_v40 = vpop.permute.xlu0 %3094 }
 0x183   : > { %v3097_v14 = vunpack.i.h.bf16 %v3095_v40  ;;  %v3096_v48 = vunpack.i.l.bf16 %v3095_v40  ;;  %v4349_v34 = vld [vmem:[#allocation2 + $0x16a] sm:$0xff]  ;;  %v4351_v42 = vld [vmem:[#allocation2 + $0x172] sm:$0xff]  ;;  %614 = vst.msk [vmem:[#allocation2 + $0x181] sm:$0xff] %vm537_vm0, %v535_v2  ;;  %v3142_v40 = vunpack.i.h.bf16 %v4273_v17 }
 0x184   : > { %v1807_v46 = vsel %vm1705_vm3, %v1775_v52, %v3101_v47  ;;  %v1808_v54 = vsel %vm1705_vm3, %v1776_v11, %v3102_v43  ;;  %v1908_v35 = vpack.c.bf16 %v4351_v42, %v4349_v34 }
 0x185   : > { %v1839_v55 = vsel %vm1738_vm4, %v1807_v46, %v3111_v50  ;;  %v1840_v57 = vsel %vm1738_vm4, %v1808_v54, %v3112_v39  ;;  %v1678_v9 = vsel %vm537_vm0, %v621_v45, %v3097_v14  ;;  %v1677_v10 = vsel %vm537_vm0, %v620_v44, %v3096_v48  ;;  %v3511_v46 = vld [vmem:[%s4992_s4] ss:$0 sm:$0xff]  ;;  %v622_v14 = vld [vmem:[#allocation2 + $0x48] sm:$0xff]  ;;  %v623_v48 = vld [vmem:[#allocation2 + $0x50] sm:$0xff] }
 0x186   : > { %v1874_v58 = vpack.c.bf16 %v1840_v57, %v1839_v55  ;;  %v502_v11 = vpop.f32.mrf.mxu2  ;;  %v4387_v44 = vld [vmem:[#allocation2 + $0x139] sm:$0xff] }
 0x187   : > { %3334 = vrot.lane.b32.xlu2 %v4230_v27, %s3648_s21  ;;  %3319 = vrot.lane.b32.xlu1 %v4210_v51, %s3646_s12  ;;  %v829_v27 = vld [vmem:[#allocation2 + $0x120] sm:$0xff]  ;;  %v3117_v51 = vunpack.i.h.bf16 %v4250_v7  ;;  %v503_v54 = vadd.f32 %v3511_v46, %v502_v11 }
 0x188   : > { %3324 = vrot.lane.b32.xlu0 %v4321_v1, %s3647_s9  ;;  %2218 = vmatmul.bf16.gmra.mxu2 %v1874_v58  ;;  %v4341_v23 = vpack.i.bf16 %v830_v60, %v829_v27 }
 0x189   : > { %v4330_v0 = vpop.permute.xlu2 %3169  ;;  %v3105_v25 = vpop.permute.xlu1 %3104  ;;  %2894 = vmatmul.msk.bf16.gmra.mxu3 %vm537_vm0, %v1908_v35 }
 0x18a   : > { %v3107_v4 = vunpack.i.h.bf16 %v3105_v25  ;;  %v3106_v5 = vunpack.i.l.bf16 %v3105_v25  ;;  %v3120_v16 = vpop.permute.xlu0 %3119 }
 0x18b   : > { %v3122_v26 = vunpack.i.h.bf16 %v3120_v16  ;;  %v3121_v33 = vunpack.i.l.bf16 %v3120_v16  ;;  %v3146_v16 = vunpack.i.l.bf16 %v4307_v38 }
 0x18c   : > { %v1710_v12 = vsel %vm1705_vm3, %v1677_v10, %v3106_v5  ;;  %v1711_v15 = vsel %vm1705_vm3, %v1678_v9, %v3107_v4  ;;  %v831_v4 = vld [vmem:[#allocation2 + $0x138] sm:$0xff]  ;;  %v3147_v5 = vunpack.i.h.bf16 %v4307_v38 }
 0x18d   : > { %v1743_v24 = vsel %vm1738_vm4, %v1710_v12, %v3116_v8  ;;  %v1744_v32 = vsel %vm1738_vm4, %v1711_v15, %v3117_v51  ;;  %v1777_v50 = vsel %vm537_vm0, %v4007_v59, %v3121_v33  ;;  %v536_v59 = vmax.f32 %v503_v54, 0.0  ;;  %v753_v33 = vld [vmem:[#allocation2 + $0x81] sm:$0xff] }
 0x18e   : > { %v1873_v7 = vpack.c.bf16 %v1744_v32, %v1743_v24 }
 0x18f   : > { %3339 = vrot.lane.b32.xlu2 %v4339_v21, %s3648_s21  ;;  %3329 = vrot.lane.b32.xlu1 %v4341_v23, %s3646_s12  ;;  %615 = vst.msk [vmem:[#allocation2 + $0x189] sm:$0xff] %vm537_vm0, %v536_v59 }
 0x190   : > { %3349 = vrot.lane.b32.xlu0 %v4228_v13, %s3647_s9  ;;  %2129 = vmatmul.bf16.gmra.mxu1 %v1873_v7  ;;  %v1778_v13 = vsel %vm537_vm0, %v4009_v62, %v3122_v26  ;;  %v4376_v62 = vpack.i.bf16 %v4186_v19, %v4184_v18  ;;  %v752_v26 = vld [vmem:[#allocation2 + $0x79] sm:$0xff] }
 0x191   : > { %v4358_v36 = vpop.permute.xlu2 %3174  ;;  %v3130_v31 = vpop.permute.xlu1 %3129 }
 0x192   : > { %v3132_v39 = vunpack.i.h.bf16 %v3130_v31  ;;  %v3131_v43 = vunpack.i.l.bf16 %v3130_v31  ;;  %v3125_v47 = vpop.permute.xlu0 %3124 }
 0x193   : > { %v3127_v58 = vunpack.i.h.bf16 %v3125_v47  ;;  %v3126_v41 = vunpack.i.l.bf16 %v3125_v47  ;;  %v3171_v47 = vunpack.i.l.bf16 %v4330_v0 }
 0x194   : > { %v1809_v52 = vsel %vm1705_vm3, %v1777_v50, %v3131_v43  ;;  %v1810_v37 = vsel %vm1705_vm3, %v1778_v13, %v3132_v39  ;;  %v3172_v43 = vunpack.i.h.bf16 %v4330_v0  ;;  %v624_v0 = vld [vmem:[#allocation2 + $0x60] sm:$0xff] }
 0x195   : > { %v1841_v55 = vsel %vm1738_vm4, %v1809_v52, %v3141_v49  ;;  %v1842_v17 = vsel %vm1738_vm4, %v1810_v37, %v3142_v40  ;;  %v1680_v6 = vsel %vm537_vm0, %v623_v48, %v3127_v58  ;;  %v1679_v27 = vsel %vm537_vm0, %v622_v14, %v3126_v41  ;;  %v4442_v41 = vld [vmem:[#allocation2 + $0x159] sm:$0xff] }
 0x196   : > { %v1877_v57 = vpack.c.bf16 %v1842_v17, %v1841_v55  ;;  %v4409_v20 = vld [vmem:[#allocation2 + $0x182] sm:$0xff]  ;;  %v4411_v24 = vld [vmem:[#allocation2 + $0x18a] sm:$0xff]  ;;  %v4430_v52 = vpack.i.bf16 %v4239_v30, %v4237_v29  ;;  %v834_v14 = vld [vmem:[#allocation2 + $0x158] sm:$0xff]  ;;  %v3176_v48 = vunpack.i.l.bf16 %v4358_v36 }
 0x197   : > { %3344 = vrot.lane.b32.xlu2 %v4288_v63, %s3648_s21  ;;  %3359 = vrot.lane.b32.xlu1 %v4264_v61, %s3646_s12  ;;  %v4389_v63 = vld [vmem:[#allocation2 + $0x141] sm:$0xff]  ;;  %v1911_v32 = vpack.c.bf16 %v4411_v24, %v4409_v20  ;;  %v4440_v29 = vld [vmem:[#allocation2 + $0x151] sm:$0xff] }
 0x198   : > { %3354 = vrot.lane.b32.xlu0 %v4376_v62, %s3647_s9  ;;  %2223 = vmatmul.bf16.gmra.mxu2 %v1877_v57  ;;  %v832_v61 = vld [vmem:[#allocation2 + $0x140] sm:$0xff]  ;;  %v4399_v8 = vpack.i.bf16 %v4389_v63, %v4387_v44  ;;  %v625_v55 = vld [vmem:[#allocation2 + $0x68] sm:$0xff] }
 0x199   : > { %v4385_v18 = vpop.permute.xlu2 %3199  ;;  %v3135_v19 = vpop.permute.xlu1 %3134  ;;  %v4401_v9 = vpack.i.bf16 %v832_v61, %v831_v4  ;;  %2895 = vmatmul.msk.bf16.gmra.mxu3 %vm537_vm0, %v1911_v32  ;;  %v4452_v4 = vpack.i.bf16 %v4442_v41, %v4440_v29 }
 0x19a   : > { %v3137_v45 = vunpack.i.h.bf16 %v3135_v19  ;;  %v3136_v25 = vunpack.i.l.bf16 %v3135_v19  ;;  %v3150_v3 = vpop.permute.xlu0 %3149 }
 0x19b   : > { %v3152_v38 = vunpack.i.h.bf16 %v3150_v3  ;;  %v3151_v15 = vunpack.i.l.bf16 %v3150_v3 }
 0x19c   : > { %v1712_v60 = vsel %vm1705_vm3, %v1679_v27, %v3136_v25  ;;  %v1713_v51 = vsel %vm1705_vm3, %v1680_v6, %v3137_v45 }
 0x19d   : > { %v1745_v10 = vsel %vm1738_vm4, %v1712_v60, %v3146_v16  ;;  %v1746_v56 = vsel %vm1738_vm4, %v1713_v51, %v3147_v5  ;;  %v1779_v40 = vsel %vm537_vm0, %v752_v26, %v3151_v15  ;;  %v2953_v60 = vld [vmem:[%s4991_s3] sm:$0xff]  ;;  %v3201_v26 = vunpack.i.l.bf16 %v4385_v18 }
 0x19e   : > { %v1876_v12 = vpack.c.bf16 %v1746_v56, %v1745_v10  ;;  %v754_v56 = vld [vmem:[#allocation2 + $0x91] sm:$0xff]  ;;  %2501 = vmatpush.bf16.msrb.mxu3 %v2953_v60 }
 0x19f   : > { %3369 = vrot.lane.b32.xlu2 %v4399_v8, %s3648_s21  ;;  %3364 = vrot.lane.b32.xlu1 %v4401_v9, %s3646_s12 }
 0x1a0   : > { %3374 = vrot.lane.b32.xlu0 %v4286_v22, %s3647_s9  ;;  %2134 = vmatmul.bf16.gmra.mxu1 %v1876_v12  ;;  %v1780_v22 = vsel %vm537_vm0, %v753_v33, %v3152_v38  ;;  %v755_v12 = vld [vmem:[#allocation2 + $0x99] sm:$0xff] }
 0x1a1   : > { %v4417_v7 = vpop.permute.xlu2 %3204  ;;  %v3160_v2 = vpop.permute.xlu1 %3159 }
 0x1a2   : > { %v3162_v35 = vunpack.i.h.bf16 %v3160_v2  ;;  %v3161_v31 = vunpack.i.l.bf16 %v3160_v2  ;;  %v3155_v39 = vpop.permute.xlu0 %3154  ;;  %v3202_v2 = vunpack.i.h.bf16 %v4385_v18  ;;  %v626_v18 = vld [vmem:[#allocation2 + $0x78] sm:$0xff] }
 0x1a3   : > { %v3157_v46 = vunpack.i.h.bf16 %v3155_v39  ;;  %v3156_v54 = vunpack.i.l.bf16 %v3155_v39 }
 0x1a4   : > { %v1811_v49 = vsel %vm1705_vm3, %v1779_v40, %v3161_v31  ;;  %v1812_v13 = vsel %vm1705_vm3, %v1780_v22, %v3162_v35 }
 0x1a5   : > { %v1843_v50 = vsel %vm1738_vm4, %v1811_v49, %v3171_v47  ;;  %v1844_v11 = vsel %vm1738_vm4, %v1812_v13, %v3172_v43  ;;  %v1682_v19 = vsel %vm537_vm0, %v625_v55, %v3157_v46  ;;  %v1681_v45 = vsel %vm537_vm0, %v624_v0, %v3156_v54  ;;  %v627_v13 = vld [vmem:[#allocation2 + $0x80] sm:$0xff]  ;;  %v4491_v54 = vld [vmem:[#allocation2 + $0x171] sm:$0xff] }
 0x1a6   : > { %v1880_v37 = vpack.c.bf16 %v1844_v11, %v1843_v50  ;;  %v4479_v47 = vpack.i.bf16 %v4293_v53, %v4291_v28  ;;  %v4489_v28 = vld [vmem:[#allocation2 + $0x169] sm:$0xff]  ;;  %v3206_v55 = vunpack.i.l.bf16 %v4417_v7 }
 0x1a7   : > { %3384 = vrot.lane.b32.xlu2 %v4341_v23, %s3648_s21  ;;  %3379 = vrot.lane.b32.xlu1 %v4321_v1, %s3646_s12  ;;  %v833_v23 = vld [vmem:[#allocation2 + $0x150] sm:$0xff]  ;;  %v3177_v1 = vunpack.i.h.bf16 %v4358_v36 }
 0x1a8   : > { %3389 = vrot.lane.b32.xlu0 %v4430_v52, %s3647_s9  ;;  %2228 = vmatmul.bf16.gmra.mxu2 %v1880_v37  ;;  %v4454_v61 = vpack.i.bf16 %v834_v14, %v833_v23  ;;  %v836_v0 = vld [vmem:[#allocation2 + $0x170] sm:$0xff]  ;;  %v4501_v23 = vpack.i.bf16 %v4491_v54, %v4489_v28 }
 0x1a9   : > { %v4438_v17 = vpop.permute.xlu2 %3229  ;;  %v3165_v57 = vpop.permute.xlu1 %3164 }
 0x1aa   : > { %v3167_v30 = vunpack.i.h.bf16 %v3165_v57  ;;  %v3166_v59 = vunpack.i.l.bf16 %v3165_v57  ;;  %v3180_v58 = vpop.permute.xlu0 %3179  ;;  %v3232_v60 = vunpack.i.h.bf16 %v4438_v17 }
 0x1ab   : > { %v3182_v36 = vunpack.i.h.bf16 %v3180_v58  ;;  %v3181_v27 = vunpack.i.l.bf16 %v3180_v58 }
 0x1ac   : > { %v1714_v25 = vsel %vm1705_vm3, %v1681_v45, %v3166_v59  ;;  %v1715_v3 = vsel %vm1705_vm3, %v1682_v19, %v3167_v30 }
 0x1ad   : > { %v1747_v5 = vsel %vm1738_vm4, %v1714_v25, %v3176_v48  ;;  %v1748_v16 = vsel %vm1738_vm4, %v1715_v3, %v3177_v1  ;;  %v1781_v33 = vsel %vm537_vm0, %v754_v56, %v3181_v27 }
 0x1ae   : > { %v1879_v6 = vpack.c.bf16 %v1748_v16, %v1747_v5  ;;  %v756_v5 = vld [vmem:[#allocation2 + $0xa9] sm:$0xff]  ;;  %v757_v16 = vld [vmem:[#allocation2 + $0xb1] sm:$0xff] }
 0x1af   : > { %3399 = vrot.lane.b32.xlu2 %v4452_v4, %s3648_s21  ;;  %3394 = vrot.lane.b32.xlu1 %v4454_v61, %s3646_s12 }
 0x1b0   : > { %3404 = vrot.lane.b32.xlu0 %v4339_v21, %s3647_s9  ;;  %2139 = vmatmul.bf16.gmra.mxu1 %v1879_v6  ;;  %v1782_v21 = vsel %vm537_vm0, %v755_v12, %v3182_v36 }
 0x1b1   : > { %v4467_v51 = vpop.permute.xlu2 %3234  ;;  %v3190_v10 = vpop.permute.xlu1 %3189 }
 0x1b2   : > { %v3192_v38 = vunpack.i.h.bf16 %v3190_v10  ;;  %v3191_v15 = vunpack.i.l.bf16 %v3190_v10  ;;  %v3185_v32 = vpop.permute.xlu0 %3184  ;;  %v3231_v10 = vunpack.i.l.bf16 %v4438_v17  ;;  %v903_v17 = vld [vmem:[#allocation2 + $0x19a] sm:$0xff] }
 0x1b3   : > { %v3187_v40 = vunpack.i.h.bf16 %v3185_v32  ;;  %v3186_v49 = vunpack.i.l.bf16 %v3185_v32 }
 0x1b4   : > { %v1813_v35 = vsel %vm1705_vm3, %v1781_v33, %v3191_v15  ;;  %v1814_v31 = vsel %vm1705_vm3, %v1782_v21, %v3192_v38 }
 0x1b5   : > { %v1845_v39 = vsel %vm1738_vm4, %v1813_v35, %v3201_v26  ;;  %v1846_v43 = vsel %vm1738_vm4, %v1814_v31, %v3202_v2  ;;  %v1684_v57 = vsel %vm537_vm0, %v627_v13, %v3187_v40  ;;  %v1683_v30 = vsel %vm537_vm0, %v626_v18, %v3186_v49  ;;  %v904_v35 = vld [vmem:[#allocation2 + $0x1a2] sm:$0xff] }
 0x1b6   : > { %v1883_v22 = vpack.c.bf16 %v1846_v43, %v1845_v39  ;;  %v4525_v2 = vpack.i.bf16 %v4351_v42, %v4349_v34  ;;  %v1914_v31 = vpack.c.bf16 %v904_v35, %v903_v17  ;;  %v628_v39 = vld [vmem:[#allocation2 + $0x90] sm:$0xff]  ;;  %v629_v43 = vld [vmem:[#allocation2 + $0x98] sm:$0xff]  ;;  %v838_v13 = vld [vmem:[#allocation2 + $0x188] sm:$0xff] }
 0x1b7   : > { %3414 = vrot.lane.b32.xlu2 %v4401_v9, %s3648_s21  ;;  %3409 = vrot.lane.b32.xlu1 %v4376_v62, %s3646_s12  ;;  %v835_v9 = vld [vmem:[#allocation2 + $0x168] sm:$0xff]  ;;  %v3207_v62 = vunpack.i.h.bf16 %v4417_v7  ;;  %v840_v17 = vld [vmem:[#allocation2 + $0x1a0] sm:$0xff] }
 0x1b8   : > { %3419 = vrot.lane.b32.xlu0 %v4479_v47, %s3647_s9  ;;  %2233 = vmatmul.bf16.gmra.mxu2 %v1883_v22  ;;  %v4503_v14 = vpack.i.bf16 %v836_v0, %v835_v9  ;;  %v4535_v22 = vld [vmem:[#allocation2 + $0x181] sm:$0xff]  ;;  %v4537_v18 = vld [vmem:[#allocation2 + $0x189] sm:$0xff]  ;;  %v4544_v9 = vpop.f32.mrf.mxu0 }
 0x1b9   : > { %v4487_v50 = vpop.permute.xlu2 %3259  ;;  %v3195_v11 = vpop.permute.xlu1 %3194  ;;  %2896 = vmatmul.msk.bf16.gmra.mxu3 %vm537_vm0, %v1914_v31 }
 0x1ba   : > { %v3197_v53 = vunpack.i.h.bf16 %v3195_v11  ;;  %v3196_v37 = vunpack.i.l.bf16 %v3195_v11  ;;  %v3210_v46 = vpop.permute.xlu0 %3209  ;;  %v3237_v11 = vunpack.i.h.bf16 %v4467_v51 }
 0x1bb   : > { %v3212_v7 = vunpack.i.h.bf16 %v3210_v46  ;;  %v3211_v45 = vunpack.i.l.bf16 %v3210_v46 }
 0x1bc   : > { %v1716_v59 = vsel %vm1705_vm3, %v1683_v30, %v3196_v37  ;;  %v1717_v58 = vsel %vm1705_vm3, %v1684_v57, %v3197_v53  ;;  %v3236_v53 = vunpack.i.l.bf16 %v4467_v51 }
 0x1bd   : > { %v1749_v1 = vsel %vm1738_vm4, %v1716_v59, %v3206_v55  ;;  %v1750_v48 = vsel %vm1738_vm4, %v1717_v58, %v3207_v62  ;;  %v1784_v56 = vsel %vm537_vm0, %v757_v16, %v3212_v7  ;;  %v1783_v12 = vsel %vm537_vm0, %v756_v5, %v3211_v45  ;;  %v758_v7 = vld [vmem:[#allocation2 + $0xc1] sm:$0xff]  ;;  %v759_v45 = vld [vmem:[#allocation2 + $0xc9] sm:$0xff] }
 0x1be   : > { %v1882_v19 = vpack.c.bf16 %v1750_v48, %v1749_v1  ;;  %v3458_v55 = vpack.i.bf16 %v4537_v18, %v4535_v22 }
 0x1bf   : > { %3429 = vrot.lane.b32.xlu2 %v4501_v23, %s3648_s21  ;;  %3424 = vrot.lane.b32.xlu1 %v4503_v14, %s3646_s12 }
 0x1c0   : > { %3434 = vrot.lane.b32.xlu0 %v4399_v8, %s3647_s9  ;;  %2144 = vmatmul.bf16.gmra.mxu1 %v1882_v19 }
 0x1c1   : > { %v4513_v25 = vpop.permute.xlu2 %3264  ;;  %v3220_v3 = vpop.permute.xlu1 %3219 }
 0x1c2   : > { %v3222_v6 = vunpack.i.h.bf16 %v3220_v3  ;;  %v3221_v36 = vunpack.i.l.bf16 %v3220_v3  ;;  %v3215_v27 = vpop.permute.xlu0 %3214 }
 0x1c3   : > { %v3217_v21 = vunpack.i.h.bf16 %v3215_v27  ;;  %v3216_v33 = vunpack.i.l.bf16 %v3215_v27 }
 0x1c4   : > { %v1815_v38 = vsel %vm1705_vm3, %v1783_v12, %v3221_v36  ;;  %v1816_v8 = vsel %vm1705_vm3, %v1784_v56, %v3222_v6  ;;  %v3262_v6 = vunpack.i.h.bf16 %v4487_v50  ;;  %v3261_v36 = vunpack.i.l.bf16 %v4487_v50 }
 0x1c5   : > { %v1847_v15 = vsel %vm1738_vm4, %v1815_v38, %v3231_v10  ;;  %v1848_v32 = vsel %vm1738_vm4, %v1816_v8, %v3232_v60  ;;  %v1686_v37 = vsel %vm537_vm0, %v629_v43, %v3217_v21  ;;  %v1685_v46 = vsel %vm537_vm0, %v628_v39, %v3216_v33  ;;  %v4569_v38 = vpop.f32.mrf.mxu0  ;;  %v872_v21 = vld [vmem:[#allocation2 + $0x1a1] sm:$0xff]  ;;  %v839_v33 = vld [vmem:[#allocation2 + $0x198] sm:$0xff] }
 0x1c6   : > { %v1886_v26 = vpack.c.bf16 %v1848_v32, %v1847_v15  ;;  %v3478_v8 = vpack.i.bf16 %v4411_v24, %v4409_v20  ;;  %v871_v32 = vld [vmem:[#allocation2 + $0x199] sm:$0xff]  ;;  %v630_v20 = vld [vmem:[#allocation2 + $0xa8] sm:$0xff]  ;;  %v631_v24 = vld [vmem:[#allocation2 + $0xb0] sm:$0xff] }
 0x1c7   : > { %3444 = vrot.lane.b32.xlu2 %v4454_v61, %s3648_s21  ;;  %3439 = vrot.lane.b32.xlu1 %v4430_v52, %s3646_s12  ;;  %v837_v52 = vld [vmem:[#allocation2 + $0x180] sm:$0xff] }
 0x1c8   : > { %3449 = vrot.lane.b32.xlu0 %v4525_v2, %s3647_s9  ;;  %2238 = vmatmul.bf16.gmra.mxu2 %v1886_v26  ;;  %v4550_v57 = vpack.i.bf16 %v838_v13, %v837_v52 }
 0x1c9   : > { %v4533_v34 = vpop.permute.xlu2 %3289  ;;  %v3225_v42 = vpop.permute.xlu1 %3224 }
 0x1ca   : > { %v3227_v40 = vunpack.i.h.bf16 %v3225_v42  ;;  %v3226_v49 = vunpack.i.l.bf16 %v3225_v42  ;;  %v3240_v61 = vpop.permute.xlu0 %3239 }
 0x1cb   : > { %v3242_v58 = vunpack.i.h.bf16 %v3240_v61  ;;  %v3241_v1 = vunpack.i.l.bf16 %v3240_v61 }
 0x1cc   : > { %v1718_v0 = vsel %vm1705_vm3, %v1685_v46, %v3226_v49  ;;  %v1719_v62 = vsel %vm1705_vm3, %v1686_v37, %v3227_v40  ;;  %v3488_v40 = vpack.i.bf16 %v872_v21, %v871_v32  ;;  %v3483_v49 = vpack.i.bf16 %v840_v17, %v839_v33 }
 0x1cd   : > { %v1751_v30 = vsel %vm1738_vm4, %v1718_v0, %v3236_v53  ;;  %v1752_v59 = vsel %vm1738_vm4, %v1719_v62, %v3237_v11  ;;  %v1786_v27 = vsel %vm537_vm0, %v759_v45, %v3242_v58  ;;  %v1785_v60 = vsel %vm537_vm0, %v758_v7, %v3241_v1 }
 0x1ce   : > { %v1885_v51 = vpack.c.bf16 %v1752_v59, %v1751_v30  ;;  %v760_v59 = vld [vmem:[#allocation2 + $0xd9] sm:$0xff]  ;;  %v3292_v7 = vunpack.i.h.bf16 %v4533_v34  ;;  %v3291_v45 = vunpack.i.l.bf16 %v4533_v34 }
 0x1cf   : > { %3459 = vrot.lane.b32.xlu2 %v3458_v55, %s3648_s21  ;;  %3454 = vrot.lane.b32.xlu1 %v4550_v57, %s3646_s12 }
 0x1d0   : > { %3464 = vrot.lane.b32.xlu0 %v4452_v4, %s3647_s9  ;;  %2149 = vmatmul.bf16.gmra.mxu1 %v1885_v51  ;;  %v761_v51 = vld [vmem:[#allocation2 + $0xe1] sm:$0xff] }
 0x1d1   : > { %v4559_v48 = vpop.permute.xlu2 %3294  ;;  %v3250_v19 = vpop.permute.xlu1 %3249 }
 0x1d2   : > { %v3252_v3 = vunpack.i.h.bf16 %v3250_v19  ;;  %v3251_v5 = vunpack.i.l.bf16 %v3250_v19  ;;  %v3245_v16 = vpop.permute.xlu0 %3244  ;;  %v3296_v21 = vunpack.i.l.bf16 %v4559_v48 }
 0x1d3   : > { %v3247_v50 = vunpack.i.h.bf16 %v3245_v16  ;;  %v3246_v26 = vunpack.i.l.bf16 %v3245_v16 }
 0x1d4   : > { %v1817_v10 = vsel %vm1705_vm3, %v1785_v60, %v3251_v5  ;;  %v1818_v4 = vsel %vm1705_vm3, %v1786_v27, %v3252_v3 }
 0x1d5   : > { %v1849_v56 = vsel %vm1738_vm4, %v1817_v10, %v3261_v36  ;;  %v1850_v12 = vsel %vm1738_vm4, %v1818_v4, %v3262_v6  ;;  %v1688_v61 = vsel %vm537_vm0, %v631_v24, %v3247_v50  ;;  %v1687_v52 = vsel %vm537_vm0, %v630_v20, %v3246_v26  ;;  %v4621_v20 = vld [vmem:[%s4993_s5] ss:$0 sm:$0xff] }
 0x1d6   : > { %v1889_v15 = vpack.c.bf16 %v1850_v12, %v1849_v56  ;;  %v632_v12 = vld [vmem:[#allocation2 + $0xc0] sm:$0xff]  ;;  %v3297_v26 = vunpack.i.h.bf16 %v4559_v48 }
 0x1d7   : > { %3474 = vrot.lane.b32.xlu2 %v4503_v14, %s3648_s21  ;;  %3469 = vrot.lane.b32.xlu1 %v4479_v47, %s3646_s12  ;;  %v3267_v14 = vunpack.i.h.bf16 %v4513_v25  ;;  %v3266_v47 = vunpack.i.l.bf16 %v4513_v25  ;;  %v4590_v25 = vpop.f32.mrf.mxu0 }
 0x1d8   : > { %3479 = vrot.lane.b32.xlu0 %v3478_v8, %s3647_s9  ;;  %2243 = vmatmul.bf16.gmra.mxu2 %v1889_v15  ;;  %v633_v8 = vld [vmem:[#allocation2 + $0xc8] sm:$0xff] }
 0x1d9   : > { %v4578_v35 = vpop.permute.xlu2 %3304  ;;  %v3255_v31 = vpop.permute.xlu1 %3254 }
 0x1da   : > { %v3257_v39 = vunpack.i.h.bf16 %v3255_v31  ;;  %v3256_v43 = vunpack.i.l.bf16 %v3255_v31  ;;  %v3270_v42 = vpop.permute.xlu0 %3269 }
 0x1db   : > { %v3272_v0 = vunpack.i.h.bf16 %v3270_v42  ;;  %v3271_v62 = vunpack.i.l.bf16 %v3270_v42 }
 0x1dc   : > { %v1720_v13 = vsel %vm1705_vm3, %v1687_v52, %v3256_v43  ;;  %v1721_v11 = vsel %vm1705_vm3, %v1688_v61, %v3257_v39  ;;  %v763_v61 = vld [vmem:[#allocation2 + $0xf9] sm:$0xff] }
 0x1dd   : > { %v1753_v53 = vsel %vm1738_vm4, %v1720_v13, %v3266_v47  ;;  %v1754_v37 = vsel %vm1738_vm4, %v1721_v11, %v3267_v14  ;;  %v1788_v3 = vsel %vm537_vm0, %v761_v51, %v3272_v0  ;;  %v1787_v5 = vsel %vm537_vm0, %v760_v59, %v3271_v62  ;;  %v762_v47 = vld [vmem:[#allocation2 + $0xf1] sm:$0xff] }
 0x1de   : > { %v1888_v46 = vpack.c.bf16 %v1754_v37, %v1753_v53  ;;  %v3306_v53 = vunpack.i.l.bf16 %v4578_v35  ;;  %v3307_v59 = vunpack.i.h.bf16 %v4578_v35 }
 0x1df   : > { %3489 = vrot.lane.b32.xlu2 %v3488_v40, %s3648_s21  ;;  %3484 = vrot.lane.b32.xlu1 %v3483_v49, %s3646_s12  ;;  %v4610_v56 = vpop.f32.mrf.mxu0 }
 0x1e0   : > { %3494 = vrot.lane.b32.xlu0 %v4501_v23, %s3647_s9  ;;  %2154 = vmatmul.bf16.gmra.mxu1 %v1888_v46  ;;  %s3591_s9 = scalar_lea.hbm %s3590_s28, 256 }
 0x1e1   : > { %v4594_v55 = vpop.permute.xlu2 %3334  ;;  %v3280_v30 = vpop.permute.xlu1 %3279  ;;  %p3592_p6 = scmp.ne.s32.totalorder %s3590_s28, %s3591_s9  ;;  %p3597_p1 = scmp.lt.s32.totalorder %s3595_s10, %s3591_s9 }
 0x1e2   : > { %v3282_v58 = vunpack.i.h.bf16 %v3280_v30  ;;  %v3281_v1 = vunpack.i.l.bf16 %v3280_v30  ;;  %v3275_v19 = vpop.permute.xlu0 %3274 }
 0x1e3   : > { %v3277_v60 = vunpack.i.h.bf16 %v3275_v19  ;;  %v3276_v10 = vunpack.i.l.bf16 %v3275_v19  ;;  %p3593_p9 = pnand %p3592_p6, %p3741_p11  ;;  %p3598_p3 = por %p3597_p1, %p3596_p0 }
 0x1e4   : > { %v1819_v16 = vsel %vm1705_vm3, %v1787_v5, %v3281_v1  ;;  %v1820_v23 = vsel %vm1705_vm3, %v1788_v3, %v3282_v58 }
 0x1e5   : > { %v1851_v6 = vsel %vm1738_vm4, %v1819_v16, %v3291_v45  ;;  %v1852_v36 = vsel %vm1738_vm4, %v1820_v23, %v3292_v7  ;;  %v1689_v33 = vsel %vm537_vm0, %v632_v12, %v3276_v10  ;;  %p3594_p13 = pneg %p3593_p9 }
 0x1e6   : > { %v1892_v27 = vpack.c.bf16 %v1852_v36, %v1851_v6 }
 0x1e7   : > { %3504 = vrot.lane.b32.xlu2 %v4550_v57, %s3648_s21  ;;  %3499 = vrot.lane.b32.xlu1 %v4525_v2, %s3646_s12  ;;  %v1690_v57 = vsel %vm537_vm0, %v633_v8, %v3277_v60  ;;  %v4631_v30 = vpop.f32.mrf.mxu0  ;;  %v635_v60 = vld [vmem:[#allocation2 + $0xe0] sm:$0xff]  ;;  %v3336_v8 = vunpack.i.l.bf16 %v4594_v55  ;;  %s2680_s12 = scalar_lea.sflag [#allocation5], %s3777_s22  ;;  %p3599_p4 = pnand %p3598_p3, %p3594_p13 }
 0x1e8   : > { %2248 = vmatmul.bf16.gmra.mxu2 %v1892_v27  ;;  %v634_v27 = vld [vmem:[#allocation2 + $0xd8] sm:$0xff] }
 0x1e9   : > { %v4608_v34 = vpop.permute.xlu2 %3339  ;;  %v3285_v4 = vpop.permute.xlu1 %3284 }
 0x1ea   : > { %v3287_v15 = vunpack.i.h.bf16 %v3285_v4  ;;  %v3286_v32 = vunpack.i.l.bf16 %v3285_v4  ;;  %v3310_v50 = vpop.permute.xlu0 %3309 }
 0x1eb   : > { %v2209_v2 = vpop.f32.mrf.mxu2  ;;  %v3312_v42 = vunpack.i.h.bf16 %v3310_v50  ;;  %v3311_v40 = vunpack.i.l.bf16 %v3310_v50 }
 0x1ec   : > { %v1722_v17 = vsel %vm1705_vm3, %v1689_v33, %v3286_v32  ;;  %v1723_v31 = vsel %vm1705_vm3, %v1690_v57, %v3287_v15 }
 0x1ed   : > { %v1755_v24 = vsel %vm1738_vm4, %v1722_v17, %v3296_v21  ;;  %v1756_v39 = vsel %vm1738_vm4, %v1723_v31, %v3297_v26  ;;  %v2120_v43 = vpop.f32.mrf.mxu1  ;;  %v1790_v37 = vsel %vm537_vm0, %v763_v61, %v3312_v42  ;;  %v1789_v46 = vsel %vm537_vm0, %v762_v47, %v3311_v40 }
 0x1ee   : > { %v1891_v48 = vpack.c.bf16 %v1756_v39, %v1755_v24  ;;  %v2121_v49 = vadd.f32 %v4621_v20, %v2120_v43  ;;  %v3337_v21 = vunpack.i.h.bf16 %v4594_v55 }
 0x1ef   : > { %v4650_v24 = vpop.f32.mrf.mxu0 }
 0x1f0   : > { %2159 = vmatmul.bf16.gmra.mxu1 %v1891_v48  ;;  %v2210_v1 = vadd.f32 %v2209_v2, %v2121_v49  ;;  %v764_v49 = vld [vmem:[#allocation2 + $0x109] sm:$0xff] }
 0x1f1   : > { %v3300_v14 = vpop.permute.xlu1 %3299  ;;  %v4629_v0 = vpop.permute.xlu2 %3344 }
 0x1f2   : > { %v3302_v52 = vunpack.i.h.bf16 %v3300_v14  ;;  %v3301_v13 = vunpack.i.l.bf16 %v3300_v14  ;;  %v3315_v11 = vpop.permute.xlu0 %3314  ;;  %v2299_v6 = vadd.f32 %v4544_v9, %v2210_v1  ;;  %v765_v14 = vld [vmem:[#allocation2 + $0x111] sm:$0xff] }
 0x1f3   : > { %v2211_v62 = vpop.f32.mrf.mxu2  ;;  %v3317_v3 = vunpack.i.h.bf16 %v3315_v11  ;;  %v3316_v5 = vunpack.i.l.bf16 %v3315_v11  ;;  %v3341_v11 = vunpack.i.l.bf16 %v4608_v34 }
 0x1f4   : > { %v1821_v51 = vsel %vm1705_vm3, %v1789_v46, %v3301_v13  ;;  %v1822_v58 = vsel %vm1705_vm3, %v1790_v37, %v3302_v52  ;;  %v2378_v33 = vmax.f32 %v2299_v6, 0.0 }
 0x1f5   : > { %v1853_v19 = vsel %vm1738_vm4, %v1821_v51, %v3306_v53  ;;  %v2122_v7 = vpop.f32.mrf.mxu1  ;;  %v1854_v45 = vsel %vm1738_vm4, %v1822_v58, %v3307_v59  ;;  %v1692_v15 = vsel %vm537_vm0, %v635_v60, %v3317_v3  ;;  %v1691_v32 = vsel %vm537_vm0, %v634_v27, %v3316_v5  ;;  %v636_v60 = vld [vmem:[#allocation2 + $0xf0] sm:$0xff] }
 0x1f6   : > { %v2123_v16 = vadd.f32 %v4621_v20, %v2122_v7  ;;  %v1895_v23 = vpack.c.bf16 %v1854_v45, %v1853_v19 }
 0x1f7   : > { %v4666_v6 = vpop.f32.mrf.mxu0 }
 0x1f8   : > { %v2212_v36 = vadd.f32 %v2211_v62, %v2123_v16  ;;  %2253 = vmatmul.bf16.gmra.mxu2 %v1895_v23  ;;  %v3342_v62 = vunpack.i.h.bf16 %v4608_v34 }
 0x1f9   : > { %v3320_v35 = vpop.permute.xlu1 %3319  ;;  %v4647_v17 = vpop.permute.xlu2 %3369 }
 0x1fa   : > { %v3322_v10 = vunpack.i.h.bf16 %v3320_v35  ;;  %v3321_v4 = vunpack.i.l.bf16 %v3320_v35  ;;  %v3325_v12 = vpop.permute.xlu0 %3324  ;;  %v2301_v50 = vadd.f32 %v4569_v38, %v2212_v36  ;;  %v3347_v35 = vunpack.i.h.bf16 %v4629_v0 }
 0x1fb   : > { %v2214_v26 = vpop.f32.mrf.mxu2  ;;  %v3327_v48 = vunpack.i.h.bf16 %v3325_v12  ;;  %v3326_v38 = vunpack.i.l.bf16 %v3325_v12 }
 0x1fc   : > { %v1724_v9 = vsel %vm1705_vm3, %v1691_v32, %v3321_v4  ;;  %v1725_v57 = vsel %vm1705_vm3, %v1692_v15, %v3322_v10  ;;  %v2379_v2 = vmax.f32 %v2301_v50, 0.0  ;;  %v637_v10 = vld [vmem:[#allocation2 + $0xf8] sm:$0xff]  ;;  %v3346_v15 = vunpack.i.l.bf16 %v4629_v0 }
 0x1fd   : > { %v1757_v31 = vsel %vm1738_vm4, %v1724_v9, %v3336_v8  ;;  %v2125_v39 = vpop.f32.mrf.mxu1  ;;  %v1758_v43 = vsel %vm1738_vm4, %v1725_v57, %v3337_v21  ;;  %v1792_v53 = vsel %vm537_vm0, %v765_v14, %v3327_v48  ;;  %v1791_v37 = vsel %vm537_vm0, %v764_v49, %v3326_v38  ;;  %v4678_v38 = vpop.f32.mrf.mxu3  ;;  %v766_v49 = vld [vmem:[#allocation2 + $0x121] sm:$0xff]  ;;  %v767_v14 = vld [vmem:[#allocation2 + $0x129] sm:$0xff] }
 0x1fe   : > { %v2410_v42 = vpack.c.bf16 %v2379_v2, %v2378_v33  ;;  %v1894_v40 = vpack.c.bf16 %v1758_v43, %v1757_v31  ;;  %v2126_v47 = vadd.f32 %v4621_v20, %v2125_v39 }
 0x200   : > { %2905 = vmatmul.msk.bf16.vlgmr.msrb.gmra.mxu3 %vm537_vm0, %v2410_v42  ;;  %2164 = vmatmul.bf16.gmra.mxu1 %v1894_v40  ;;  %v2215_v1 = vadd.f32 %v2214_v26, %v2126_v47 }
 0x201   : > { %v3330_v55 = vpop.permute.xlu1 %3329  ;;  %v4663_v45 = vpop.permute.xlu2 %3384 }
 0x202   : > { %v3332_v61 = vunpack.i.h.bf16 %v3330_v55  ;;  %v3331_v52 = vunpack.i.l.bf16 %v3330_v55  ;;  %v3350_v13 = vpop.permute.xlu0 %3349  ;;  %v2304_v27 = vadd.f32 %v4590_v25, %v2215_v1  ;;  %v4682_v55 = vpop.f32.mrf.mxu0 }
 0x203   : > { %v2216_v46 = vpop.f32.mrf.mxu2  ;;  %v3352_v3 = vunpack.i.h.bf16 %v3350_v13  ;;  %v3351_v5 = vunpack.i.l.bf16 %v3350_v13 }
 0x204   : > { %v1823_v59 = vsel %vm1705_vm3, %v1791_v37, %v3331_v52  ;;  %v1824_v51 = vsel %vm1705_vm3, %v1792_v53, %v3332_v61  ;;  %v2380_v2 = vmax.f32 %v2304_v27, 0.0 }
 0x205   : > { %v1855_v58 = vsel %vm1738_vm4, %v1823_v59, %v3341_v11  ;;  %v2127_v19 = vpop.f32.mrf.mxu1  ;;  %v1856_v7 = vsel %vm1738_vm4, %v1824_v51, %v3342_v62  ;;  %v1694_v32 = vsel %vm537_vm0, %v637_v10, %v3352_v3  ;;  %v1693_v50 = vsel %vm537_vm0, %v636_v60, %v3351_v5  ;;  %v638_v60 = vld [vmem:[#allocation2 + $0x108] sm:$0xff]  ;;  %v639_v10 = vld [vmem:[#allocation2 + $0x110] sm:$0xff] }
 0x206   : > { %v2128_v16 = vadd.f32 %v4621_v20, %v2127_v19  ;;  %v1898_v23 = vpack.c.bf16 %v1856_v7, %v1855_v58  ;;  %v3371_v11 = vunpack.i.l.bf16 %v4647_v17  ;;  %v3372_v62 = vunpack.i.h.bf16 %v4647_v17 }
 0x207   : > { %v3387_v17 = vunpack.i.h.bf16 %v4663_v45 }
 0x208   : > { %v2217_v34 = vadd.f32 %v2216_v46, %v2128_v16  ;;  %2258 = vmatmul.bf16.gmra.mxu2 %v1898_v23 }
 0x209   : > { %v3360_v36 = vpop.permute.xlu1 %3359  ;;  %v4680_v40 = vpop.permute.xlu2 %3399 }
 0x20a   : > { %v3362_v4 = vunpack.i.h.bf16 %v3360_v36  ;;  %v3361_v12 = vunpack.i.l.bf16 %v3360_v36  ;;  %v3355_v8 = vpop.permute.xlu0 %3354  ;;  %v2306_v26 = vadd.f32 %v4610_v56, %v2217_v34 }
 0x20b   : > { %v2219_v21 = vpop.f32.mrf.mxu2  ;;  %v3357_v0 = vunpack.i.h.bf16 %v3355_v8  ;;  %v3356_v48 = vunpack.i.l.bf16 %v3355_v8 }
 0x20c   : > { %v1726_v9 = vsel %vm1705_vm3, %v1693_v50, %v3361_v12  ;;  %v1727_v57 = vsel %vm1705_vm3, %v1694_v32, %v3362_v4  ;;  %v2381_v43 = vmax.f32 %v2306_v26, 0.0 }
 0x20d   : > { %v1759_v25 = vsel %vm1738_vm4, %v1726_v9, %v3346_v15  ;;  %v1760_v33 = vsel %vm1738_vm4, %v1727_v57, %v3347_v35  ;;  %v2130_v31 = vpop.f32.mrf.mxu1  ;;  %v1794_v53 = vsel %vm537_vm0, %v767_v14, %v3357_v0  ;;  %v1793_v37 = vsel %vm537_vm0, %v766_v49, %v3356_v48  ;;  %v4696_v35 = vpop.f32.mrf.mxu3 }
 0x20e   : > { %v1897_v39 = vpack.c.bf16 %v1760_v33, %v1759_v25  ;;  %v2411_v42 = vpack.c.bf16 %v2381_v43, %v2380_v2  ;;  %v2131_v47 = vadd.f32 %v4621_v20, %v2130_v31  ;;  %v3386_v15 = vunpack.i.l.bf16 %v4663_v45  ;;  %v4703_v57 = vpop.f32.mrf.mxu0 }
 0x210   : > { %2169 = vmatmul.bf16.gmra.mxu1 %v1897_v39  ;;  %2906 = vmatmul.msk.bf16.gmra.mxu3 %vm537_vm0, %v2411_v42  ;;  %v2220_v1 = vadd.f32 %v2219_v21, %v2131_v47 }
 0x211   : > { %v3365_v56 = vpop.permute.xlu1 %3364  ;;  %v3415_v32 = vpop.permute.xlu2 %3414 }
 0x212   : > { %v3367_v61 = vunpack.i.h.bf16 %v3365_v56  ;;  %v3366_v52 = vunpack.i.l.bf16 %v3365_v56  ;;  %v3375_v13 = vpop.permute.xlu0 %3374  ;;  %v2309_v27 = vadd.f32 %v4631_v30, %v2220_v1 }
 0x213   : > { %v2221_v46 = vpop.f32.mrf.mxu2  ;;  %v3377_v3 = vunpack.i.h.bf16 %v3375_v13  ;;  %v3376_v5 = vunpack.i.l.bf16 %v3375_v13 }
 0x214   : > { %v1825_v59 = vsel %vm1705_vm3, %v1793_v37, %v3366_v52  ;;  %v1826_v51 = vsel %vm1705_vm3, %v1794_v53, %v3367_v61  ;;  %v2382_v31 = vmax.f32 %v2309_v27, 0.0  ;;  %v3401_v61 = vunpack.i.l.bf16 %v4680_v40 }
 0x215   : > { %v1857_v58 = vsel %vm1738_vm4, %v1825_v59, %v3371_v11  ;;  %v2132_v19 = vpop.f32.mrf.mxu1  ;;  %v1858_v7 = vsel %vm1738_vm4, %v1826_v51, %v3372_v62  ;;  %v1696_v50 = vsel %vm537_vm0, %v639_v10, %v3377_v3  ;;  %v1695_v26 = vsel %vm537_vm0, %v638_v60, %v3376_v5  ;;  %v4717_v37 = vpop.f32.mrf.mxu3 }
 0x216   : > { %v2133_v16 = vadd.f32 %v4621_v20, %v2132_v19  ;;  %v1901_v23 = vpack.c.bf16 %v1858_v7, %v1857_v58  ;;  %v3402_v53 = vunpack.i.h.bf16 %v4680_v40  ;;  %v4722_v58 = vpop.f32.mrf.mxu0 }
 0x218   : > { %v2222_v34 = vadd.f32 %v2221_v46, %v2133_v16  ;;  %2263 = vmatmul.bf16.gmra.mxu2 %v1901_v23  ;;  %v3417_v23 = vunpack.i.h.bf16 %v3415_v32 }
 0x219   : > { %v3380_v36 = vpop.permute.xlu1 %3379  ;;  %v3430_v59 = vpop.permute.xlu2 %3429 }
 0x21a   : > { %v3382_v4 = vunpack.i.h.bf16 %v3380_v36  ;;  %v3381_v12 = vunpack.i.l.bf16 %v3380_v36  ;;  %v3390_v8 = vpop.permute.xlu0 %3389  ;;  %v2311_v21 = vadd.f32 %v4650_v24, %v2222_v34  ;;  %v640_v36 = vld [vmem:[#allocation2 + $0x120] sm:$0xff] }
 0x21b   : > { %v2224_v9 = vpop.f32.mrf.mxu2  ;;  %v3392_v0 = vunpack.i.h.bf16 %v3390_v8  ;;  %v3391_v48 = vunpack.i.l.bf16 %v3390_v8 }
 0x21c   : > { %v1728_v25 = vsel %vm1705_vm3, %v1695_v26, %v3381_v12  ;;  %v1729_v30 = vsel %vm1705_vm3, %v1696_v50, %v3382_v4  ;;  %v2383_v43 = vmax.f32 %v2311_v21, 0.0  ;;  %v3416_v4 = vunpack.i.l.bf16 %v3415_v32 }
 0x21d   : > { %v1761_v33 = vsel %vm1738_vm4, %v1728_v25, %v3386_v15  ;;  %v1762_v2 = vsel %vm1738_vm4, %v1729_v30, %v3387_v17  ;;  %v2135_v45 = vpop.f32.mrf.mxu1  ;;  %v1796_v52 = vsel %vm537_vm0, %v4389_v63, %v3392_v0  ;;  %v1795_v13 = vsel %vm537_vm0, %v4387_v44, %v3391_v48  ;;  %v641_v17 = vld [vmem:[#allocation2 + $0x128] sm:$0xff]  ;;  %v4734_v25 = vpop.f32.mrf.mxu3 }
 0x21e   : > { %v1900_v39 = vpack.c.bf16 %v1762_v2, %v1761_v33  ;;  %v2412_v42 = vpack.c.bf16 %v2383_v43, %v2382_v31  ;;  %v2136_v24 = vadd.f32 %v4621_v20, %v2135_v45  ;;  %v4736_v43 = vpop.f32.mrf.mxu0 }
 0x220   : > { %2174 = vmatmul.bf16.gmra.mxu1 %v1900_v39  ;;  %2907 = vmatmul.msk.bf16.gmra.mxu3 %vm537_vm0, %v2412_v42  ;;  %v2225_v1 = vadd.f32 %v2224_v9, %v2136_v24 }
 0x221   : > { %v3395_v56 = vpop.permute.xlu1 %3394  ;;  %v3445_v31 = vpop.permute.xlu2 %3444 }
 0x222   : > { %v3397_v49 = vunpack.i.h.bf16 %v3395_v56  ;;  %v3396_v14 = vunpack.i.l.bf16 %v3395_v56  ;;  %v3405_v47 = vpop.permute.xlu0 %3404  ;;  %v2314_v34 = vadd.f32 %v4666_v6, %v2225_v1 }
 0x223   : > { %v2226_v11 = vpop.f32.mrf.mxu2  ;;  %v3407_v7 = vunpack.i.h.bf16 %v3405_v47  ;;  %v3406_v44 = vunpack.i.l.bf16 %v3405_v47 }
 0x224   : > { %v1827_v46 = vsel %vm1705_vm3, %v1795_v13, %v3396_v14  ;;  %v1828_v62 = vsel %vm1705_vm3, %v1796_v52, %v3397_v49  ;;  %v2384_v30 = vmax.f32 %v2314_v34, 0.0  ;;  %v3431_v49 = vunpack.i.l.bf16 %v3430_v59 }
 0x225   : > { %v1859_v51 = vsel %vm1738_vm4, %v1827_v46, %v3401_v61  ;;  %v2137_v19 = vpop.f32.mrf.mxu1  ;;  %v1860_v63 = vsel %vm1738_vm4, %v1828_v62, %v3402_v53  ;;  %v1698_v12 = vsel %vm537_vm0, %v641_v17, %v3407_v7  ;;  %v1697_v8 = vsel %vm537_vm0, %v640_v36, %v3406_v44  ;;  %v4749_v7 = vpop.f32.mrf.mxu3 }
 0x226   : > { %v2138_v3 = vadd.f32 %v4621_v20, %v2137_v19  ;;  %v1904_v40 = vpack.c.bf16 %v1860_v63, %v1859_v51  ;;  %v3432_v52 = vunpack.i.h.bf16 %v3430_v59  ;;  %v3446_v17 = vunpack.i.l.bf16 %v3445_v31 }
 0x228   : > { %v2227_v5 = vadd.f32 %v2226_v11, %v2138_v3  ;;  %2268 = vmatmul.bf16.gmra.mxu2 %v1904_v40  ;;  %v2325_v40 = vpop.f32.mrf.mxu0 }
 0x229   : > { %v3410_v16 = vpop.permute.xlu1 %3409 }
 0x22a   : > { %v3412_v27 = vunpack.i.h.bf16 %v3410_v16  ;;  %v3411_v60 = vunpack.i.l.bf16 %v3410_v16  ;;  %v3420_v10 = vpop.permute.xlu0 %3419  ;;  %v2316_v15 = vadd.f32 %v4682_v55, %v2227_v5  ;;  %v642_v5 = vld [vmem:[#allocation2 + $0x138] sm:$0xff]  ;;  %v643_v16 = vld [vmem:[#allocation2 + $0x140] sm:$0xff] }
 0x22b   : > { %v2229_v50 = vpop.f32.mrf.mxu2  ;;  %v3422_v45 = vunpack.i.h.bf16 %v3420_v10  ;;  %v3421_v39 = vunpack.i.l.bf16 %v3420_v10 }
 0x22c   : > { %v1730_v26 = vsel %vm1705_vm3, %v1697_v8, %v3411_v60  ;;  %v1731_v21 = vsel %vm1705_vm3, %v1698_v12, %v3412_v27  ;;  %v2385_v2 = vmax.f32 %v2316_v15, 0.0  ;;  %v3447_v12 = vunpack.i.h.bf16 %v3445_v31 }
 0x22d   : > { %v1763_v9 = vsel %vm1738_vm4, %v1730_v26, %v3416_v4  ;;  %v1764_v6 = vsel %vm1738_vm4, %v1731_v21, %v3417_v23  ;;  %v2140_v33 = vpop.f32.mrf.mxu1  ;;  %v1798_v14 = vsel %vm537_vm0, %v4442_v41, %v3422_v45  ;;  %v1797_v47 = vsel %vm537_vm0, %v4440_v29, %v3421_v39  ;;  %v3460_v29 = vpop.permute.xlu2 %3459 }
 0x22e   : > { %v1903_v32 = vpack.c.bf16 %v1764_v6, %v1763_v9  ;;  %v2413_v55 = vpack.c.bf16 %v2385_v2, %v2384_v30  ;;  %v2141_v0 = vadd.f32 %v4621_v20, %v2140_v33  ;;  %v4760_v31 = vpop.f32.mrf.mxu3 }
 0x230   : > { %2179 = vmatmul.bf16.gmra.mxu1 %v1903_v32  ;;  %2908 = vmatmul.msk.bf16.gmra.mxu3 %vm537_vm0, %v2413_v55  ;;  %v2230_v53 = vadd.f32 %v2229_v50, %v2141_v0  ;;  %v3461_v0 = vunpack.i.l.bf16 %v3460_v29 }
 0x231   : > { %v3425_v48 = vpop.permute.xlu1 %3424 }
 0x232   : > { %v3427_v42 = vunpack.i.h.bf16 %v3425_v48  ;;  %v3426_v56 = vunpack.i.l.bf16 %v3425_v48  ;;  %v3435_v24 = vpop.permute.xlu0 %3434  ;;  %v2319_v59 = vadd.f32 %v4703_v57, %v2230_v53 }
 0x233   : > { %v2231_v61 = vpop.f32.mrf.mxu2  ;;  %v3437_v1 = vunpack.i.h.bf16 %v3435_v24  ;;  %v3436_v19 = vunpack.i.l.bf16 %v3435_v24 }
 0x234   : > { %v1829_v13 = vsel %vm1705_vm3, %v1797_v47, %v3426_v56  ;;  %v1830_v11 = vsel %vm1705_vm3, %v1798_v14, %v3427_v42  ;;  %v2386_v15 = vmax.f32 %v2319_v59, 0.0  ;;  %v3462_v14 = vunpack.i.h.bf16 %v3460_v29 }
 0x235   : > { %v1861_v46 = vsel %vm1738_vm4, %v1829_v13, %v3431_v49  ;;  %v2142_v62 = vpop.f32.mrf.mxu1  ;;  %v1862_v51 = vsel %vm1738_vm4, %v1830_v11, %v3432_v52  ;;  %v1700_v27 = vsel %vm537_vm0, %v643_v16, %v3437_v1  ;;  %v1699_v60 = vsel %vm537_vm0, %v642_v5, %v3436_v19  ;;  %v3475_v48 = vpop.permute.xlu2 %3474 }
 0x236   : > { %v2143_v63 = vadd.f32 %v4621_v20, %v2142_v62  ;;  %v1907_v41 = vpack.c.bf16 %v1862_v51, %v1861_v46  ;;  %v4767_v49 = vpop.f32.mrf.mxu0 }
 0x238   : > { %v2232_v44 = vadd.f32 %v2231_v61, %v2143_v63  ;;  %2273 = vmatmul.bf16.gmra.mxu2 %v1907_v41  ;;  %v644_v63 = vld [vmem:[#allocation2 + $0x150] sm:$0xff]  ;;  %v645_v41 = vld [vmem:[#allocation2 + $0x158] sm:$0xff] }
 0x239   : > { %v3440_v3 = vpop.permute.xlu1 %3439 }
 0x23a   : > { %v3442_v23 = vunpack.i.h.bf16 %v3440_v3  ;;  %v3441_v34 = vunpack.i.l.bf16 %v3440_v3  ;;  %v3450_v36 = vpop.permute.xlu0 %3449  ;;  %v2321_v10 = vadd.f32 %v4722_v58, %v2232_v44  ;;  %v3476_v3 = vunpack.i.l.bf16 %v3475_v48 }
 0x23b   : > { %v2234_v4 = vpop.f32.mrf.mxu2  ;;  %v3452_v6 = vunpack.i.h.bf16 %v3450_v36  ;;  %v3451_v30 = vunpack.i.l.bf16 %v3450_v36  ;;  %v3477_v36 = vunpack.i.h.bf16 %v3475_v48 }
 0x23c   : > { %v1732_v57 = vsel %vm1705_vm3, %v1699_v60, %v3441_v34  ;;  %v1733_v8 = vsel %vm1705_vm3, %v1700_v27, %v3442_v23  ;;  %v2387_v50 = vmax.f32 %v2321_v10, 0.0 }
 0x23d   : > { %v1765_v26 = vsel %vm1738_vm4, %v1732_v57, %v3446_v17  ;;  %v2145_v21 = vpop.f32.mrf.mxu1  ;;  %v1766_v9 = vsel %vm1738_vm4, %v1733_v8, %v3447_v12  ;;  %v1800_v42 = vsel %vm537_vm0, %v4491_v54, %v3452_v6  ;;  %v1799_v56 = vsel %vm537_vm0, %v4489_v28, %v3451_v30  ;;  %v4777_v17 = vpop.f32.mrf.mxu3 }
 0x23e   : > { %v1906_v33 = vpack.c.bf16 %v1766_v9, %v1765_v26  ;;  %v2414_v32 = vpack.c.bf16 %v2387_v50, %v2386_v15  ;;  %v2146_v2 = vadd.f32 %v4621_v20, %v2145_v21  ;;  %v3490_v60 = vpop.permute.xlu2 %3489  ;;  %v2330_v57 = vpop.f32.mrf.mxu0 }
 0x23f   : > { %v3491_v9 = vunpack.i.l.bf16 %v3490_v60 }
 0x240   : > { %2184 = vmatmul.bf16.gmra.mxu1 %v1906_v33  ;;  %2909 = vmatmul.msk.bf16.gmra.mxu3 %vm537_vm0, %v2414_v32  ;;  %v2235_v52 = vadd.f32 %v2234_v4, %v2146_v2  ;;  %v3492_v33 = vunpack.i.h.bf16 %v3490_v60 }
 0x241   : > { %v3455_v58 = vpop.permute.xlu1 %3454 }
 0x242   : > { %v3457_v45 = vunpack.i.h.bf16 %v3455_v58  ;;  %v3456_v39 = vunpack.i.l.bf16 %v3455_v58  ;;  %v3465_v55 = vpop.permute.xlu0 %3464  ;;  %v2324_v28 = vadd.f32 %v4736_v43, %v2235_v52 }
 0x243   : > { %v2236_v24 = vpop.f32.mrf.mxu2  ;;  %v3467_v46 = vunpack.i.h.bf16 %v3465_v55  ;;  %v3466_v62 = vunpack.i.l.bf16 %v3465_v55 }
 0x244   : > { %v1831_v47 = vsel %vm1705_vm3, %v1799_v56, %v3456_v39  ;;  %v1832_v61 = vsel %vm1705_vm3, %v1800_v42, %v3457_v45  ;;  %v2388_v10 = vmax.f32 %v2324_v28, 0.0  ;;  %v647_v28 = vld [vmem:[#allocation2 + $0x170] sm:$0xff] }
 0x245   : > { %v1863_v13 = vsel %vm1738_vm4, %v1831_v47, %v3461_v0  ;;  %v2147_v11 = vpop.f32.mrf.mxu1  ;;  %v1864_v53 = vsel %vm1738_vm4, %v1832_v61, %v3462_v14  ;;  %v1702_v5 = vsel %vm537_vm0, %v645_v41, %v3467_v46  ;;  %v1701_v16 = vsel %vm537_vm0, %v644_v63, %v3466_v62 }
 0x246   : > { %v2148_v54 = vadd.f32 %v4621_v20, %v2147_v11  ;;  %v1910_v51 = vpack.c.bf16 %v1864_v53, %v1863_v13  ;;  %v3505_v61 = vpop.permute.xlu2 %3504  ;;  %v2333_v11 = vpop.f32.mrf.mxu0 }
 0x247   : > { %v3506_v63 = vunpack.i.l.bf16 %v3505_v61 }
 0x248   : > { %v2237_v1 = vadd.f32 %v2236_v24, %v2148_v54  ;;  %2278 = vmatmul.bf16.gmra.mxu2 %v1910_v51  ;;  %v4792_v24 = vpop.f32.mrf.mxu3  ;;  %v3507_v54 = vunpack.i.h.bf16 %v3505_v61  ;;  %v646_v51 = vld [vmem:[#allocation2 + $0x168] sm:$0xff] }
 0x249   : > { %v3470_v19 = vpop.permute.xlu1 %3469 }
 0x24a   : > { %v3472_v29 = vunpack.i.h.bf16 %v3470_v19  ;;  %v3471_v59 = vunpack.i.l.bf16 %v3470_v19  ;;  %v3480_v44 = vpop.permute.xlu0 %3479  ;;  %v2326_v23 = vadd.f32 %v2325_v40, %v2237_v1 }
 0x24b   : > { %v2239_v34 = vpop.f32.mrf.mxu2  ;;  %v3482_v50 = vunpack.i.h.bf16 %v3480_v44  ;;  %v3481_v26 = vunpack.i.l.bf16 %v3480_v44 }
 0x24c   : > { %v1734_v43 = vsel %vm1705_vm3, %v1701_v16, %v3471_v59  ;;  %v1735_v27 = vsel %vm1705_vm3, %v1702_v5, %v3472_v29  ;;  %v2389_v4 = vmax.f32 %v2326_v23, 0.0 }
 0x24d   : > { %v1767_v12 = vsel %vm1738_vm4, %v1734_v43, %v3476_v3  ;;  %v2150_v8 = vpop.f32.mrf.mxu1  ;;  %v1768_v15 = vsel %vm1738_vm4, %v1735_v27, %v3477_v36  ;;  %v1802_v58 = vsel %vm537_vm0, %v4537_v18, %v3482_v50  ;;  %v1801_v45 = vsel %vm537_vm0, %v4535_v22, %v3481_v26 }
 0x24e   : > { %v1909_v40 = vpack.c.bf16 %v1768_v15, %v1767_v12  ;;  %v2415_v21 = vpack.c.bf16 %v2389_v4, %v2388_v10  ;;  %v2151_v6 = vadd.f32 %v4621_v20, %v2150_v8  ;;  %v2335_v4 = vpop.f32.mrf.mxu0 }
 0x250   : > { %2189 = vmatmul.bf16.gmra.mxu1 %v1909_v40  ;;  %2910 = vmatmul.msk.bf16.gmra.mxu3 %vm537_vm0, %v2415_v21  ;;  %v2240_v42 = vadd.f32 %v2239_v34, %v2151_v6  ;;  %v4803_v60 = vpop.f32.mrf.mxu3 }
 0x251   : > { %v3485_v30 = vpop.permute.xlu1 %3484 }
 0x252   : > { %v3487_v32 = vunpack.i.h.bf16 %v3485_v30  ;;  %v3486_v2 = vunpack.i.l.bf16 %v3485_v30  ;;  %v3495_v48 = vpop.permute.xlu0 %3494  ;;  %v2329_v53 = vadd.f32 %v4767_v49, %v2240_v42 }
 0x253   : > { %v2241_v39 = vpop.f32.mrf.mxu2  ;;  %v3497_v52 = vunpack.i.h.bf16 %v3495_v48  ;;  %v3496_v18 = vunpack.i.l.bf16 %v3495_v48 }
 0x254   : > { %v1833_v55 = vsel %vm1705_vm3, %v1801_v45, %v3486_v2  ;;  %v1834_v0 = vsel %vm1705_vm3, %v1802_v58, %v3487_v32  ;;  %v2390_v49 = vmax.f32 %v2329_v53, 0.0 }
 0x255   : > { %v1865_v56 = vsel %vm1738_vm4, %v1833_v55, %v3491_v9  ;;  %v2152_v14 = vpop.f32.mrf.mxu1  ;;  %v1866_v47 = vsel %vm1738_vm4, %v1834_v0, %v3492_v33  ;;  %v1704_v41 = vsel %vm537_vm0, %v647_v28, %v3497_v52  ;;  %v1703_v29 = vsel %vm537_vm0, %v646_v51, %v3496_v18 }
 0x256   : > { %v2153_v13 = vadd.f32 %v4621_v20, %v2152_v14  ;;  %v1913_v22 = vpack.c.bf16 %v1866_v47, %v1865_v56  ;;  %v2338_v6 = vpop.f32.mrf.mxu0 }
 0x258   : > { %v2242_v46 = vadd.f32 %v2241_v39, %v2153_v13  ;;  %2283 = vmatmul.bf16.gmra.mxu2 %v1913_v22  ;;  %v4808_v40 = vpop.f32.mrf.mxu3 }
 0x259   : > { %v3500_v62 = vpop.permute.xlu1 %3499 }
 0x25a   : > { %v3502_v1 = vunpack.i.h.bf16 %v3500_v62  ;;  %v3501_v19 = vunpack.i.l.bf16 %v3500_v62  ;;  %v2331_v59 = vadd.f32 %v2330_v57, %v2242_v46  ;;  %v4821_v62 = vld [vmem:[%s4994_s6] ss:$0 sm:$0xff] }
 0x25b   : > { %v2244_v44 = vpop.f32.mrf.mxu2 }
 0x25c   : > { %v1736_v3 = vsel %vm1705_vm3, %v1703_v29, %v3501_v19  ;;  %v1737_v5 = vsel %vm1705_vm3, %v1704_v41, %v3502_v1  ;;  %v2391_v16 = vmax.f32 %v2331_v59, 0.0 }
 0x25d   : > { %v1769_v23 = vsel %vm1738_vm4, %v1736_v3, %v3506_v63  ;;  %v1770_v34 = vsel %vm1738_vm4, %v1737_v5, %v3507_v54  ;;  %v2155_v36 = vpop.f32.mrf.mxu1  ;;  %v3512_v63 = vld [vmem:[%s3783_s16] sm:$0xff] }
 0x25e   : > { %v1912_v43 = vpack.c.bf16 %v1770_v34, %v1769_v23  ;;  %v2416_v27 = vpack.c.bf16 %v2391_v16, %v2390_v49  ;;  %v2156_v10 = vadd.f32 %v4621_v20, %v2155_v36  ;;  %v2340_v0 = vpop.f32.mrf.mxu0 }
 0x260   : > { %2194 = vmatmul.bf16.gmra.mxu1 %v1912_v43  ;;  %2911 = vmatmul.msk.bf16.gmra.mxu3 %vm537_vm0, %v2416_v27  ;;  %v2245_v57 = vadd.f32 %v2244_v44, %v2156_v10  ;;  %v4811_v45 = vpop.f32.mrf.mxu3 }
 0x262   : > { %v2334_v50 = vadd.f32 %v2333_v11, %v2245_v57 }
 0x263   : > { %v2246_v12 = vpop.f32.mrf.mxu2 }
 0x264   : > { %v2392_v30 = vmax.f32 %v2334_v50, 0.0 }
 0x265   : > { %v2157_v8 = vpop.f32.mrf.mxu1 }
 0x266   : > { %v2158_v15 = vadd.f32 %v4621_v20, %v2157_v8  ;;  %v2343_v53 = vpop.f32.mrf.mxu0 }
 0x268   : > { %v2247_v26 = vadd.f32 %v2246_v12, %v2158_v15  ;;  %v4815_v61 = vpop.f32.mrf.mxu3 }
 0x26a   : > { %v2336_v21 = vadd.f32 %v2335_v4, %v2247_v26  ;;  %v3513_v4 = vld [vmem:[%s3783_s16 + $0x8] sm:$0xff] }
 0x26b   : > { %v2249_v9 = vpop.f32.mrf.mxu2 }
 0x26c   : > { %v2393_v33 = vmax.f32 %v2336_v21, 0.0 }
 0x26d   : > { %v2160_v32 = vpop.f32.mrf.mxu1 }
 0x26e   : > { %v2417_v2 = vpack.c.bf16 %v2393_v33, %v2392_v30  ;;  %v2161_v58 = vadd.f32 %v4621_v20, %v2160_v32  ;;  %v2345_v5 = vpop.f32.mrf.mxu0  ;;  %v3514_v30 = vld [vmem:[%s3783_s16 + $0x10] sm:$0xff] }
 0x270   : > { %2912 = vmatmul.msk.bf16.gmra.mxu3 %vm537_vm0, %v2417_v2  ;;  %v2250_v55 = vadd.f32 %v2249_v9, %v2161_v58 }
 0x272   : > { %v2339_v56 = vadd.f32 %v2338_v6, %v2250_v55 }
 0x273   : > { %v2251_v39 = vpop.f32.mrf.mxu2 }
 0x274   : > { %v2394_v18 = vmax.f32 %v2339_v56, 0.0 }
 0x275   : > { %v2162_v48 = vpop.f32.mrf.mxu1 }
 0x276   : > { %v2163_v42 = vadd.f32 %v4621_v20, %v2162_v48 }
 0x278   : > { %v2252_v14 = vadd.f32 %v2251_v39, %v2163_v42 }
 0x27a   : > { %v2341_v47 = vadd.f32 %v2340_v0, %v2252_v14 }
 0x27b   : > { %v2254_v52 = vpop.f32.mrf.mxu2 }
 0x27c   : > { %v2395_v13 = vmax.f32 %v2341_v47, 0.0 }
 0x27d   : > { %v2165_v22 = vpop.f32.mrf.mxu1 }
 0x27e   : > { %v2418_v11 = vpack.c.bf16 %v2395_v13, %v2394_v18  ;;  %v2166_v46 = vadd.f32 %v4621_v20, %v2165_v22 }
 0x280   : > { %2913 = vmatmul.msk.bf16.gmra.mxu3 %vm537_vm0, %v2418_v11  ;;  %v2255_v28 = vadd.f32 %v2254_v52, %v2166_v46  ;;  %v3515_v52 = vld [vmem:[%s3783_s16 + $0x18] sm:$0xff] }
 0x282   : > { %v2344_v59 = vadd.f32 %v2343_v53, %v2255_v28 }
 0x283   : > { %v2256_v54 = vpop.f32.mrf.mxu2  ;;  %v2503_v51 = vpop.f32.mrf.mxu3 }
 0x284   : > { %v2504_v1 = vadd.f32 %v4821_v62, %v2503_v51  ;;  %v2396_v34 = vmax.f32 %v2344_v59, 0.0  ;;  %v3516_v51 = vld [vmem:[%s3783_s16 + $0x20] sm:$0xff] }
 0x285   : > { %v2167_v19 = vpop.f32.mrf.mxu1 }
 0x286   : > { %v2583_v41 = vadd.f32 %v3512_v63, %v2504_v1  ;;  %v2168_v29 = vadd.f32 %v4621_v20, %v2167_v19 }
 0x288   : > { %v2615_v44 = vmax.f32 %v2583_v41, 0.0  ;;  %v2257_v3 = vadd.f32 %v2256_v54, %v2168_v29 }
 0x28a   : > { %2647 = vst [vmem:[%s4829_s17] sm:$0xff] %v2615_v44  ;;  %v2346_v49 = vadd.f32 %v2345_v5, %v2257_v3 }
 0x28b   : > { %v2259_v16 = vpop.f32.mrf.mxu2  ;;  %v2505_v23 = vpop.f32.mrf.mxu3 }
 0x28c   : > { %v2397_v36 = vmax.f32 %v2346_v49, 0.0  ;;  %v2506_v43 = vadd.f32 %v4821_v62, %v2505_v23  ;;  %v3517_v23 = vld [vmem:[%s3783_s16 + $0x28] sm:$0xff] }
 0x28d   : > { %v2170_v27 = vpop.f32.mrf.mxu1 }
 0x28e   : > { %v2419_v10 = vpack.c.bf16 %v2397_v36, %v2396_v34  ;;  %v2584_v12 = vadd.f32 %v3513_v4, %v2506_v43  ;;  %v2171_v8 = vadd.f32 %v4621_v20, %v2170_v27 }
 0x290   : > { %v2616_v57 = vmax.f32 %v2584_v12, 0.0  ;;  %2914 = vmatmul.msk.bf16.gmra.mxu3 %vm537_vm0, %v2419_v10  ;;  %v2260_v50 = vadd.f32 %v2259_v16, %v2171_v8 }
 0x292   : > { %2648 = vst [vmem:[%s4829_s17 + $0x8] sm:$0xff] %v2616_v57  ;;  %v2349_v32 = vadd.f32 %v4678_v38, %v2260_v50  ;;  %v3518_v57 = vld [vmem:[%s3783_s16 + $0x30] sm:$0xff] }
 0x293   : > { %v2261_v15 = vpop.f32.mrf.mxu2  ;;  %v2508_v26 = vpop.f32.mrf.mxu3 }
 0x294   : > { %v2509_v21 = vadd.f32 %v4821_v62, %v2508_v26  ;;  %v2398_v0 = vmax.f32 %v2349_v32, 0.0 }
 0x295   : > { %v2172_v9 = vpop.f32.mrf.mxu1 }
 0x296   : > { %v2173_v6 = vadd.f32 %v4621_v20, %v2172_v9  ;;  %v2585_v33 = vadd.f32 %v3514_v30, %v2509_v21 }
 0x298   : > { %v2262_v2 = vadd.f32 %v2261_v15, %v2173_v6  ;;  %v2617_v58 = vmax.f32 %v2585_v33, 0.0 }
 0x29a   : > { %v2351_v39 = vadd.f32 %v4696_v35, %v2262_v2  ;;  %2649 = vst [vmem:[%s4829_s17 + $0x10] sm:$0xff] %v2617_v58 }
 0x29b   : > { %v2264_v55 = vpop.f32.mrf.mxu2  ;;  %v2510_v42 = vpop.f32.mrf.mxu3 }
 0x29c   : > { %v2399_v48 = vmax.f32 %v2351_v39, 0.0  ;;  %v2511_v56 = vadd.f32 %v4821_v62, %v2510_v42  ;;  %v3519_v39 = vld [vmem:[%s3783_s16 + $0x38] sm:$0xff] }
 0x29d   : > { %v2175_v14 = vpop.f32.mrf.mxu1 }
 0x29e   : > { %v2420_v47 = vpack.c.bf16 %v2399_v48, %v2398_v0  ;;  %v2586_v18 = vadd.f32 %v3515_v52, %v2511_v56  ;;  %v2176_v13 = vadd.f32 %v4621_v20, %v2175_v14 }
 0x2a0   : > { %v2618_v38 = vmax.f32 %v2586_v18, 0.0  ;;  %2915 = vmatmul.msk.bf16.gmra.mxu3 %vm537_vm0, %v2420_v47  ;;  %v2265_v22 = vadd.f32 %v2264_v55, %v2176_v13  ;;  %v3520_v47 = vld [vmem:[%s4993_s5] ss:$0 sm:$0xff]  ;;  %v3521_v18 = vld [vmem:[%s3783_s16 + $0x40] sm:$0xff] }
 0x2a2   : > { %2650 = vst [vmem:[%s4829_s17 + $0x18] sm:$0xff] %v2618_v38  ;;  %v2354_v1 = vadd.f32 %v4717_v37, %v2265_v22 }
 0x2a3   : > { %v2266_v35 = vpop.f32.mrf.mxu2  ;;  %v2513_v11 = vpop.f32.mrf.mxu3 }
 0x2a4   : > { %v2514_v53 = vadd.f32 %v4821_v62, %v2513_v11  ;;  %v2400_v59 = vmax.f32 %v2354_v1, 0.0 }
 0x2a5   : > { %v2177_v46 = vpop.f32.mrf.mxu1 }
 0x2a6   : > { %v2178_v54 = vadd.f32 %v4621_v20, %v2177_v46  ;;  %v2587_v28 = vadd.f32 %v3516_v51, %v2514_v53 }
 0x2a8   : > { %v2267_v19 = vadd.f32 %v2266_v35, %v2178_v54  ;;  %v2619_v63 = vmax.f32 %v2587_v28, 0.0 }
 0x2aa   : > { %v2356_v41 = vadd.f32 %v4734_v25, %v2267_v19  ;;  %2651 = vst [vmem:[%s4829_s17 + $0x20] sm:$0xff] %v2619_v63  ;;  %v3522_v19 = vld [vmem:[%s3783_s16 + $0x48] sm:$0xff] }
 0x2ab   : > { %v2269_v29 = vpop.f32.mrf.mxu2  ;;  %v2515_v3 = vpop.f32.mrf.mxu3 }
 0x2ac   : > { %v2401_v44 = vmax.f32 %v2356_v41, 0.0  ;;  %v2516_v5 = vadd.f32 %v4821_v62, %v2515_v3 }
 0x2ad   : > { %v2180_v49 = vpop.f32.mrf.mxu1 }
 0x2ae   : > { %v2421_v16 = vpack.c.bf16 %v2401_v44, %v2400_v59  ;;  %v2588_v34 = vadd.f32 %v3517_v23, %v2516_v5  ;;  %v2181_v36 = vadd.f32 %v4621_v20, %v2180_v49  ;;  %v3523_v49 = vld [vmem:[%s3783_s16 + $0x50] sm:$0xff] }
 0x2b0   : > { %v2620_v37 = vmax.f32 %v2588_v34, 0.0  ;;  %2916 = vmatmul.msk.bf16.gmra.mxu3 %vm537_vm0, %v2421_v16  ;;  %v2270_v43 = vadd.f32 %v2269_v29, %v2181_v36 }
 0x2b2   : > { %2652 = vst [vmem:[%s4829_s17 + $0x28] sm:$0xff] %v2620_v37  ;;  %v2359_v15 = vadd.f32 %v4749_v7, %v2270_v43 }
 0x2b3   : > { %v2271_v25 = vpop.f32.mrf.mxu2  ;;  %v2518_v27 = vpop.f32.mrf.mxu3 }
 0x2b4   : > { %v2519_v10 = vadd.f32 %v4821_v62, %v2518_v27  ;;  %v2402_v6 = vmax.f32 %v2359_v15, 0.0 }
 0x2b5   : > { %v2182_v4 = vpop.f32.mrf.mxu1 }
 0x2b6   : > { %v2183_v12 = vadd.f32 %v4621_v20, %v2182_v4  ;;  %v2589_v8 = vadd.f32 %v3518_v57, %v2519_v10 }
 0x2b8   : > { %v2272_v50 = vadd.f32 %v2271_v25, %v2183_v12  ;;  %v2621_v26 = vmax.f32 %v2589_v8, 0.0  ;;  %v3524_v8 = vld [vmem:[%s3783_s16 + $0x58] sm:$0xff] }
 0x2ba   : > { %v2361_v21 = vadd.f32 %v4760_v31, %v2272_v50  ;;  %2653 = vst [vmem:[%s4829_s17 + $0x30] sm:$0xff] %v2621_v26 }
 0x2bb   : > { %v2274_v9 = vpop.f32.mrf.mxu2  ;;  %v2520_v33 = vpop.f32.mrf.mxu3 }
 0x2bc   : > { %v2403_v30 = vmax.f32 %v2361_v21, 0.0  ;;  %v2521_v32 = vadd.f32 %v4821_v62, %v2520_v33  ;;  %v3525_v33 = vld [vmem:[%s3783_s16 + $0x60] sm:$0xff] }
 0x2bd   : > { %v2185_v2 = vpop.f32.mrf.mxu1 }
 0x2be   : > { %v2422_v58 = vpack.c.bf16 %v2403_v30, %v2402_v6  ;;  %v2590_v55 = vadd.f32 %v3519_v39, %v2521_v32  ;;  %v2186_v0 = vadd.f32 %v4621_v20, %v2185_v2 }
 0x2c0   : > { %v2622_v7 = vmax.f32 %v2590_v55, 0.0  ;;  %2917 = vmatmul.msk.bf16.gmra.mxu3 %vm537_vm0, %v2422_v58  ;;  %v2275_v48 = vadd.f32 %v2274_v9, %v2186_v0 }
 0x2c2   : > { %2654 = vst [vmem:[%s4829_s17 + $0x38] sm:$0xff] %v2622_v7  ;;  %v2364_v20 = vadd.f32 %v4777_v17, %v2275_v48 }
 0x2c3   : > { %v2276_v31 = vpop.f32.mrf.mxu2  ;;  %v2523_v42 = vpop.f32.mrf.mxu3 }
 0x2c4   : > { %v2524_v56 = vadd.f32 %v4821_v62, %v2523_v42  ;;  %v2404_v53 = vmax.f32 %v2364_v20, 0.0 }
 0x2c5   : > { %v2187_v14 = vpop.f32.mrf.mxu1 }
 0x2c6   : > { %v2188_v52 = vadd.f32 %v3520_v47, %v2187_v14  ;;  %v2591_v13 = vadd.f32 %v3521_v18, %v2524_v56  ;;  %v3526_v56 = vld [vmem:[%s3783_s16 + $0x68] sm:$0xff] }
 0x2c8   : > { %v2277_v38 = vadd.f32 %v2276_v31, %v2188_v52  ;;  %v2623_v35 = vmax.f32 %v2591_v13, 0.0  ;;  %v3527_v52 = vld [vmem:[%s3783_s16 + $0x70] sm:$0xff] }
 0x2ca   : > { %v2366_v22 = vadd.f32 %v4792_v24, %v2277_v38  ;;  %2655 = vst [vmem:[%s4829_s17 + $0x40] sm:$0xff] %v2623_v35  ;;  %v3528_v35 = vld [vmem:[%s3783_s16 + $0x78] sm:$0xff] }
 0x2cb   : > { %v2279_v11 = vpop.f32.mrf.mxu2  ;;  %v2525_v54 = vpop.f32.mrf.mxu3 }
 0x2cc   : > { %v2405_v46 = vmax.f32 %v2366_v22, 0.0  ;;  %v2526_v51 = vadd.f32 %v4821_v62, %v2525_v54  ;;  %v3529_v54 = vld [vmem:[%s3783_s16 + $0x80] sm:$0xff] }
 0x2cd   : > { %v2190_v28 = vpop.f32.mrf.mxu1 }
 0x2ce   : > { %v2423_v1 = vpack.c.bf16 %v2405_v46, %v2404_v53  ;;  %v2592_v63 = vadd.f32 %v3522_v19, %v2526_v51  ;;  %v2191_v41 = vadd.f32 %v3520_v47, %v2190_v28 }
 0x2d0   : > { %v2624_v17 = vmax.f32 %v2592_v63, 0.0  ;;  %2918 = vmatmul.msk.bf16.gmra.mxu3 %vm537_vm0, %v2423_v1  ;;  %v2280_v24 = vadd.f32 %v2279_v11, %v2191_v41  ;;  %v3530_v63 = vld [vmem:[%s3783_s16 + $0x88] sm:$0xff] }
 0x2d2   : > { %2656 = vst [vmem:[%s4829_s17 + $0x48] sm:$0xff] %v2624_v17  ;;  %v2369_v23 = vadd.f32 %v4803_v60, %v2280_v24 }
 0x2d3   : > { %v2281_v29 = vpop.f32.mrf.mxu2  ;;  %v2528_v59 = vpop.f32.mrf.mxu3 }
 0x2d4   : > { %v2529_v44 = vadd.f32 %v4821_v62, %v2528_v59  ;;  %v2406_v25 = vmax.f32 %v2369_v23, 0.0  ;;  %v3531_v59 = vld [vmem:[%s3783_s16 + $0x90] sm:$0xff] }
 0x2d5   : > { %v2192_v3 = vpop.f32.mrf.mxu1 }
 0x2d6   : > { %v2193_v5 = vadd.f32 %v3520_v47, %v2192_v3  ;;  %v2593_v16 = vadd.f32 %v3523_v49, %v2529_v44 }
 0x2d8   : > { %v2282_v34 = vadd.f32 %v2281_v29, %v2193_v5  ;;  %v2625_v36 = vmax.f32 %v2593_v16, 0.0  ;;  %v3532_v16 = vld [vmem:[%s3783_s16 + $0x98] sm:$0xff] }
 0x2da   : > { %v2371_v37 = vadd.f32 %v4808_v40, %v2282_v34  ;;  %2657 = vst [vmem:[%s4829_s17 + $0x50] sm:$0xff] %v2625_v36 }
 0x2db   : > { %v2530_v27 = vpop.f32.mrf.mxu3  ;;  %v2284_v10 = vpop.f32.mrf.mxu2 }
 0x2dc   : > { %v2407_v43 = vmax.f32 %v2371_v37, 0.0  ;;  %v2531_v4 = vadd.f32 %v4821_v62, %v2530_v27 }
 0x2dd   : > { %v2195_v12 = vpop.f32.mrf.mxu1 }
 0x2de   : > { %v2424_v57 = vpack.c.bf16 %v2407_v43, %v2406_v25  ;;  %v2594_v15 = vadd.f32 %v3524_v8, %v2531_v4  ;;  %v2196_v50 = vadd.f32 %v3520_v47, %v2195_v12  ;;  %v3533_v25 = vld [vmem:[%s3783_s16 + $0xa0] sm:$0xff]  ;;  %v3534_v12 = vld [vmem:[%s3783_s16 + $0xa8] sm:$0xff] }
 0x2e0   : > { %v2626_v60 = vmax.f32 %v2594_v15, 0.0  ;;  %2919 = vmatmul.msk.bf16.gmra.mxu3 %vm537_vm0, %v2424_v57  ;;  %v2285_v26 = vadd.f32 %v2284_v10, %v2196_v50 }
 0x2e2   : > { %2658 = vst [vmem:[%s4829_s17 + $0x58] sm:$0xff] %v2626_v60  ;;  %v2374_v2 = vadd.f32 %v4811_v45, %v2285_v26  ;;  %v3535_v60 = vld [vmem:[%s3783_s16 + $0xb0] sm:$0xff] }
 0x2e3   : > { %v2533_v40 = vpop.f32.mrf.mxu3  ;;  %v2286_v30 = vpop.f32.mrf.mxu2 }
 0x2e4   : > { %v2534_v21 = vadd.f32 %v4821_v62, %v2533_v40  ;;  %v2408_v0 = vmax.f32 %v2374_v2, 0.0 }
 0x2e5   : > { %v2197_v9 = vpop.f32.mrf.mxu1 }
 0x2e6   : > { %v2198_v6 = vadd.f32 %v3520_v47, %v2197_v9  ;;  %v2595_v32 = vadd.f32 %v3525_v33, %v2534_v21 }
 0x2e8   : > { %v2287_v58 = vadd.f32 %v2286_v30, %v2198_v6  ;;  %v2627_v39 = vmax.f32 %v2595_v32, 0.0  ;;  %v3536_v6 = vld [vmem:[%s3783_s16 + $0xb8] sm:$0xff] }
 0x2ea   : > { %v2376_v55 = vadd.f32 %v4815_v61, %v2287_v58  ;;  %2659 = vst [vmem:[%s4829_s17 + $0x60] sm:$0xff] %v2627_v39  ;;  %v3537_v58 = vld [vmem:[%s3783_s16 + $0xc0] sm:$0xff] }
 0x2eb   : > { %v2535_v31 = vpop.f32.mrf.mxu3 }
 0x2ec   : > { %v2409_v7 = vmax.f32 %v2376_v55, 0.0  ;;  %v2536_v48 = vadd.f32 %v4821_v62, %v2535_v31  ;;  %v3538_v31 = vld [vmem:[%s3783_s16 + $0xc8] sm:$0xff] }
 0x2ee   : > { %v2425_v42 = vpack.c.bf16 %v2409_v7, %v2408_v0  ;;  %v2596_v14 = vadd.f32 %v3526_v56, %v2536_v48 }
 0x2f0   : > { %v2628_v47 = vmax.f32 %v2596_v14, 0.0  ;;  %2920 = vmatmul.msk.bf16.gmra.mxu3 %vm537_vm0, %v2425_v42 }
 0x2f2   : > { %2660 = vst [vmem:[%s4829_s17 + $0x68] sm:$0xff] %v2628_v47  ;;  %v3539_v47 = vld [vmem:[%s3783_s16 + $0xd0] sm:$0xff] }
 0x2f3   : > { %v2538_v45 = vpop.f32.mrf.mxu3 }
 0x2f4   : > { %v2539_v61 = vadd.f32 %v4821_v62, %v2538_v45 }
 0x2f6   : > { %v2597_v18 = vadd.f32 %v3527_v52, %v2539_v61 }
 0x2f8   : > { %v2629_v13 = vmax.f32 %v2597_v18, 0.0 }
 0x2fa   : > { %2661 = vst [vmem:[%s4829_s17 + $0x70] sm:$0xff] %v2629_v13  ;;  %v3540_v13 = vld [vmem:[%s3783_s16 + $0xd8] sm:$0xff] }
 0x2fb   : > { %v2540_v20 = vpop.f32.mrf.mxu3 }
 0x2fc   : > { %v2541_v38 = vadd.f32 %v4821_v62, %v2540_v20 }
 0x2fe   : > { %v2598_v22 = vadd.f32 %v3528_v35, %v2541_v38 }
 0x300   : > { %v2630_v11 = vmax.f32 %v2598_v22, 0.0 }
 0x302   : > { %2662 = vst [vmem:[%s4829_s17 + $0x78] sm:$0xff] %v2630_v11  ;;  %v3541_v11 = vld [vmem:[%s3783_s16 + $0xe0] sm:$0xff] }
 0x303   : > { %v2543_v53 = vpop.f32.mrf.mxu3 }
 0x304   : > { %v2544_v46 = vadd.f32 %v4821_v62, %v2543_v53 }
 0x306   : > { %v2599_v51 = vadd.f32 %v3529_v54, %v2544_v46 }
 0x308   : > { %v2631_v28 = vmax.f32 %v2599_v51, 0.0 }
 0x30a   : > { %2663 = vst [vmem:[%s4829_s17 + $0x80] sm:$0xff] %v2631_v28  ;;  %v3542_v28 = vld [vmem:[%s3783_s16 + $0xe8] sm:$0xff] }
 0x30b   : > { %v2545_v1 = vpop.f32.mrf.mxu3 }
 0x30c   : > { %v2546_v19 = vadd.f32 %v4821_v62, %v2545_v1 }
 0x30e   : > { %v2600_v41 = vadd.f32 %v3530_v63, %v2546_v19 }
 0x310   : > { %v2632_v17 = vmax.f32 %v2600_v41, 0.0 }
 0x312   : > { %2664 = vst [vmem:[%s4829_s17 + $0x88] sm:$0xff] %v2632_v17  ;;  %v3543_v17 = vld [vmem:[%s3783_s16 + $0xf0] sm:$0xff] }
 0x313   : > { %v2548_v29 = vpop.f32.mrf.mxu3 }
 0x314   : > { %v2549_v24 = vadd.f32 %v4821_v62, %v2548_v29 }
 0x316   : > { %v2601_v44 = vadd.f32 %v3531_v59, %v2549_v24 }
 0x318   : > { %v2633_v3 = vmax.f32 %v2601_v44, 0.0 }
 0x31a   : > { %2665 = vst [vmem:[%s4829_s17 + $0x90] sm:$0xff] %v2633_v3  ;;  %v3544_v3 = vld [vmem:[%s3783_s16 + $0xf8] sm:$0xff] }
 0x31b   : > { %v2550_v5 = vpop.f32.mrf.mxu3 }
 0x31c   : > { %v2551_v49 = vadd.f32 %v4821_v62, %v2550_v5 }
 0x31e   : > { %v2602_v23 = vadd.f32 %v3532_v16, %v2551_v49 }
 0x320   : > { %v2634_v34 = vmax.f32 %v2602_v23, 0.0 }
 0x322   : > { %2666 = vst [vmem:[%s4829_s17 + $0x98] sm:$0xff] %v2634_v34 }
 0x323   : > { %v2553_v36 = vpop.f32.mrf.mxu3 }
 0x324   : > { %v2554_v37 = vadd.f32 %v4821_v62, %v2553_v36 }
 0x326   : > { %v2603_v43 = vadd.f32 %v3533_v25, %v2554_v37 }
 0x328   : > { %v2635_v27 = vmax.f32 %v2603_v43, 0.0 }
 0x32a   : > { %2667 = vst [vmem:[%s4829_s17 + $0xa0] sm:$0xff] %v2635_v27 }
 0x32b   : > { %v2555_v10 = vpop.f32.mrf.mxu3 }
 0x32c   : > { %v2556_v4 = vadd.f32 %v4821_v62, %v2555_v10 }
 0x32e   : > { %v2604_v57 = vadd.f32 %v3534_v12, %v2556_v4 }
 0x330   : > { %v2636_v8 = vmax.f32 %v2604_v57, 0.0 }
 0x332   : > { %2668 = vst [vmem:[%s4829_s17 + $0xa8] sm:$0xff] %v2636_v8 }
 0x333   : > { %v2558_v15 = vpop.f32.mrf.mxu3 }
 0x334   : > { %v2559_v50 = vadd.f32 %v4821_v62, %v2558_v15 }
 0x336   : > { %v2605_v26 = vadd.f32 %v3535_v60, %v2559_v50 }
 0x338   : > { %v2637_v40 = vmax.f32 %v2605_v26, 0.0 }
 0x33a   : > { %2669 = vst [vmem:[%s4829_s17 + $0xb0] sm:$0xff] %v2637_v40 }
 0x33b   : > { %v2560_v21 = vpop.f32.mrf.mxu3 }
 0x33c   : > { %v2561_v9 = vadd.f32 %v4821_v62, %v2560_v21 }
 0x33e   : > { %v2606_v30 = vadd.f32 %v3536_v6, %v2561_v9 }
 0x340   : > { %v2638_v33 = vmax.f32 %v2606_v30, 0.0 }
 0x342   : > { %2670 = vst [vmem:[%s4829_s17 + $0xb8] sm:$0xff] %v2638_v33 }
 0x343   : > { %v2563_v32 = vpop.f32.mrf.mxu3 }
 0x344   : > { %v2564_v2 = vadd.f32 %v4821_v62, %v2563_v32 }
 0x346   : > { %v2607_v39 = vadd.f32 %v3537_v58, %v2564_v2 }
 0x348   : > { %v2639_v55 = vmax.f32 %v2607_v39, 0.0 }
 0x34a   : > { %2671 = vst [vmem:[%s4829_s17 + $0xc0] sm:$0xff] %v2639_v55 }
 0x34b   : > { %v2565_v0 = vpop.f32.mrf.mxu3 }
 0x34c   : > { %v2566_v7 = vadd.f32 %v4821_v62, %v2565_v0 }
 0x34e   : > { %v2608_v48 = vadd.f32 %v3538_v31, %v2566_v7 }
 0x350   : > { %v2640_v42 = vmax.f32 %v2608_v48, 0.0 }
 0x352   : > { %2672 = vst [vmem:[%s4829_s17 + $0xc8] sm:$0xff] %v2640_v42 }
 0x353   : > { %v2568_v56 = vpop.f32.mrf.mxu3 }
 0x354   : > { %v2569_v14 = vadd.f32 %v4821_v62, %v2568_v56 }
 0x356   : > { %v2609_v45 = vadd.f32 %v3539_v47, %v2569_v14 }
 0x358   : > { %v2641_v61 = vmax.f32 %v2609_v45, 0.0 }
 0x35a   : > { %2673 = vst [vmem:[%s4829_s17 + $0xd0] sm:$0xff] %v2641_v61 }
 0x35b   : > { %v2570_v52 = vpop.f32.mrf.mxu3 }
 0x35c   : > { %v2571_v18 = vadd.f32 %v4821_v62, %v2570_v52 }
 0x35e   : > { %v2610_v20 = vadd.f32 %v3540_v13, %v2571_v18 }
 0x360   : > { %v2642_v38 = vmax.f32 %v2610_v20, 0.0 }
 0x362   : > { %2674 = vst [vmem:[%s4829_s17 + $0xd8] sm:$0xff] %v2642_v38 }
 0x363   : > { %v2573_v35 = vpop.f32.mrf.mxu3 }
 0x364   : > { %v2574_v22 = vadd.f32 %v4821_v62, %v2573_v35 }
 0x366   : > { %v2611_v53 = vadd.f32 %v3541_v11, %v2574_v22 }
 0x368   : > { %v2643_v46 = vmax.f32 %v2611_v53, 0.0 }
 0x36a   : > { %2675 = vst [vmem:[%s4829_s17 + $0xe0] sm:$0xff] %v2643_v46 }
 0x36b   : > { %v2575_v54 = vpop.f32.mrf.mxu3 }
 0x36c   : > { %v2576_v51 = vadd.f32 %v4821_v62, %v2575_v54 }
 0x36e   : > { %v2612_v1 = vadd.f32 %v3542_v28, %v2576_v51 }
 0x370   : > { %v2644_v19 = vmax.f32 %v2612_v1, 0.0 }
 0x372   : > { %2676 = vst [vmem:[%s4829_s17 + $0xe8] sm:$0xff] %v2644_v19 }
 0x373   : > { %v2578_v63 = vpop.f32.mrf.mxu3 }
 0x374   : > { %v2579_v41 = vadd.f32 %v4821_v62, %v2578_v63 }
 0x376   : > { %v2613_v29 = vadd.f32 %v3543_v17, %v2579_v41 }
 0x378   : > { %v2645_v24 = vmax.f32 %v2613_v29, 0.0 }
 0x37a   : > { %2677 = vst [vmem:[%s4829_s17 + $0xf0] sm:$0xff] %v2645_v24 }
 0x37b   : > { %v2580_v59 = vpop.f32.mrf.mxu3 }
 0x37c   : > { %v2581_v44 = vadd.f32 %v4821_v62, %v2580_v59 }
 0x37e   : > { %v2614_v5 = vadd.f32 %v3544_v3, %v2581_v44 }
 0x380   : > { %v2646_v49 = vmax.f32 %v2614_v5, 0.0 }
 0x382   : > { %2678 = vst [vmem:[%s4829_s17 + $0xf8] sm:$0xff] %v2646_v49 }
 0x383   : > { %3602 = shalt.err (!%p3599_p4)
}
 0x384   : > { %s3649_s22 = smov 128   ;;  %s3650_s16 = smov 8  }
 0x385   : > { %2976 = dma.vmem_to_hbm [thread:$0]  (%p3741_p11), %s2693_s23, 4096, %s2695_s29, %s2680_s12, %s3649_s22, %s3649_s22, %s3650_s16  }
 0x386 PF: > { %s2709_s17 = sand.u32 1, %s3629_s24   ;;  %p5002_p7 = scmp.ge.s32.totalorder %s3641_s27, 2 }
 0x387   : > { %s2710_s19 = scalar_lea.sflag [#allocation5], %s2709_s17 }
 0x388   : > { %p2983_p5 = pnand %p5002_p7, %p3745_p12 }
 0x38a   : > { %p2984_p8 = pneg %p2983_p5 }
 0x38c   : > { %3624 = dma.done.wait (%p2984_p8), %s2710_s19, 4096  }
 0x38d   : > { %3626 = vsyncadd (%p2984_p8), %s2710_s19, 4294963200  ;;  %s5003_s15 = sld [smem:[#allocation9_spill]]  ;;  %p20_p10 = scmp.ge.s32.totalorder %s3716_s30, 4  }
 0x38e   : > { %s5004_s24 = smov %s3633_s25  ;;  %s5005_s25 = smov %s3637_s26 }
 0x38f   : > { %s5007_s27 = smov %s3716_s30  ;;  %22 = sbr.rel (!%p20_p10) target bundleno = 5 (0x5), region = 96 }
 0x393   : > { %s5006_s26 = smov %s5003_s15 }
 0x394   :  { %2716 = vsyncpa [#allocation4], 1 }
 0x395   :  { %2718 = vsyncpa [#allocation4 + $0x1], 1 }
 0x396   :  { %2719 = vsyncpa [#allocation5], 1 }
 0x397   :  { %2721 = vsyncpa [#allocation5 + $0x1], 1 }

</bundles_post_ra>
